<compile_context>
chip_gen: v6e
topology: v6e:2x2x1
jax: 0.10.0
libtpu: 0.0.40
codegen_flags: <defaults>
</compile_context>

<pallas_src>
import jax
import jax.numpy as jnp
from jax import lax
from jax.experimental import pallas as pl
from jax.experimental.pallas import tpu as pltpu


def _round_up(x, m):
    return ((x + m - 1) // m) * m


# ----------------------------- fused multi-layer GRU kernel -----------------------------
def gru_stack_kernel(x_ref, wih_ref, whh_ref, bih_ref, bhn_ref, len_ref,
                     y_ref, hT_ref, h_scr, gi_scr):
    """All GRU layers over one (batch_chunk, time_chunk) tile.

    x_ref:   (TC, BC, Hp)    embedded input chunk, time-major (compute dtype)
    wih_ref: (L, Hp, 3*Hp)   per-gate-padded W_ih^T, whole array resident in VMEM
    whh_ref: (L, Hp, 3*Hp)   per-gate-padded W_hh^T, whole array resident in VMEM
    bih_ref: (L, 1, 3*Hp)    f32, b_ih with b_hr/b_hz folded in
    bhn_ref: (L, 1, Hp)      f32, n-gate hidden bias (must stay inside r*(...))
    len_ref: (BC, 128)       int32 sequence lengths (lane-dense)
    y_ref:   (TC, BC, Hp)    output chunk; also reused in place as the next layer's input
    hT_ref:  (L, BC, Hp)     final hidden per layer (resident across the time axis)
    h_scr:   (L, BC, Hp) f32 recurrent state, persists across time-chunk grid steps
    gi_scr:  (TC, BC, 3Hp)   precomputed input gates (compute dtype)
    """
    TC, BC, Hp = x_ref.shape
    L = wih_ref.shape[0]
    G3 = 3 * Hp
    cdt = wih_ref.dtype  # MXU input dtype (f32 or bf16)

    t_chunk = pl.program_id(1)
    n_chunks = pl.num_programs(1)

    # Zero the carried hidden state at the first time chunk of each batch chunk.
    @pl.when(t_chunk == 0)
    def _():
        h_scr[...] = jnp.zeros_like(h_scr)

    # Hoisted, lane-dense length broadcast: one (BC, Hp) int32 vreg block reused every step.
    lens = jnp.broadcast_to(len_ref[...][:, :1], (BC, Hp))      # (BC, Hp) int32
    t0 = t_chunk * TC

    # Keep unroll modest at large Hp to avoid vreg spills (64-vreg file on all generations).
    unroll = TC if TC <= 8 else (2 if Hp >= 512 else 4)

    for l in range(L):  # layers fused: activations never leave VMEM between layers
        src = x_ref if l == 0 else y_ref
        # ---- Hoisted input-to-hidden matmul: one big MXU op per layer per time chunk. ----
        x2d = src[...].astype(cdt).reshape(TC * BC, Hp)
        gi = jnp.dot(x2d, wih_ref[l], preferred_element_type=jnp.float32) + bih_ref[l]
        gi_scr[...] = gi.reshape(TC, BC, G3).astype(gi_scr.dtype)

        # Hoist the n-gate hidden-bias broadcast out of the recurrent loop.
        bhn_rows = jnp.broadcast_to(bhn_ref[l], (BC, Hp))       # (BC, Hp) f32

        def step(t, carry, l=l, bhn_rows=bhn_rows):
            h_prev = h_scr[l]                                               # (BC, Hp) f32
            gh = jnp.dot(h_prev.astype(cdt), whh_ref[l],
                         preferred_element_type=jnp.float32)                # (BC, 3Hp) f32
            gi_t = gi_scr[t].astype(jnp.float32)                            # (BC, 3Hp) f32
            # Gate slices land on 128-lane boundaries (Hp is a multiple of 128).
            i_r, i_z, i_n = gi_t[:, :Hp], gi_t[:, Hp:2 * Hp], gi_t[:, 2 * Hp:]
            h_r, h_z = gh[:, :Hp], gh[:, Hp:2 * Hp]
            h_n = gh[:, 2 * Hp:] + bhn_rows                                 # only n-gate bias
            r = jax.nn.sigmoid(i_r + h_r)
            z = jax.nn.sigmoid(i_z + h_z)
            n = jnp.tanh(i_n + r * h_n)
            h_new = (1.0 - z) * n + z * h_prev
            m = (t0 + t) < lens                                             # (BC, Hp) bool
            h_scr[l] = jnp.where(m, h_new, h_prev)                          # freeze finished
            y_ref[t] = jnp.where(m, h_new, 0.0).astype(y_ref.dtype)         # padded steps -> 0
            return carry

        lax.fori_loop(0, TC, step, 0, unroll=unroll)

    # Final hidden: write once, at the last time chunk of each batch chunk.
    @pl.when(t_chunk == n_chunks - 1)
    def _():
        hT_ref[...] = h_scr[...]


def gru_stack(x_tm, wih, whh, bih, bhn, lens2d, *, time_chunk, batch_chunks,
              out_dtype, vmem_limit_bytes):
    """x_tm: (Tp, Bp, Hp); wih/whh: (L, Hp, 3Hp); bih: (L,1,3Hp); bhn: (L,1,Hp); lens2d: (Bp,128)."""
    Tp, Bp, Hp = x_tm.shape
    L = wih.shape[0]
    G3 = 3 * Hp
    TC = time_chunk
    nT = Tp // TC
    nB = batch_chunks
    BC = Bp // nB

    x_spec = pl.BlockSpec((TC, BC, Hp), lambda b, t: (t, b, 0))
    y_spec = pl.BlockSpec((TC, BC, Hp), lambda b, t: (t, b, 0))
    hT_spec = pl.BlockSpec((L, BC, Hp), lambda b, t: (0, b, 0))
    len_spec = pl.BlockSpec((BC, 128), lambda b, t: (b, 0))
    # Whole-array, single-resident VMEM operands (constant index map -> no double buffering).
    vmem_full = pl.BlockSpec(memory_space=pltpu.MemorySpace.VMEM)

    return pl.pallas_call(
        gru_stack_kernel,
        out_shape=(jax.ShapeDtypeStruct((Tp, Bp, Hp), out_dtype),
                   jax.ShapeDtypeStruct((L, Bp, Hp), jnp.float32)),
        grid_spec=pltpu.PrefetchScalarGridSpec(
            num_scalar_prefetch=0,
            grid=(nB, nT),
            in_specs=[x_spec, vmem_full, vmem_full, vmem_full, vmem_full, len_spec],
            out_specs=(y_spec, hT_spec),
            scratch_shapes=[pltpu.VMEM((L, BC, Hp), jnp.float32),
                            pltpu.VMEM((TC, BC, G3), x_tm.dtype)]),
        compiler_params=pltpu.CompilerParams(
            dimension_semantics=("parallel", "arbitrary"),
            vmem_limit_bytes=vmem_limit_bytes),
    )(x_tm, wih, whh, bih, bhn, lens2d)


# ----------------------------- one-time parameter preparation -----------------------------
def _pad_gru_weight_T(w, H, Hp):
    """PyTorch gate-stacked (3H, H) weight -> transposed, per-gate zero-padded (Hp, 3*Hp)."""
    w3 = w.reshape(3, H, H).astype(jnp.float32)                        # (gate, out, in)
    wp = jnp.zeros((3, Hp, Hp), jnp.float32).at[:, :H, :H].set(w3)
    return jnp.transpose(wp, (2, 0, 1)).reshape(Hp, 3 * Hp)            # (in, gate*out)


def prepare_params(params, num_layers, *, compute_dtype=jnp.float32):
    """Hoisted re-packing/padding/casting of all parameters (run once, reuse per forward)."""
    H = params["emb"].shape[1]
    Hp = _round_up(H, 128)                                             # lane granularity
    emb_p = jnp.zeros((params["emb"].shape[0], Hp), jnp.float32).at[:, :H].set(
        params["emb"].astype(jnp.float32)).astype(compute_dtype)
    wih, whh, bih, bhn = [], [], [], []
    for l in range(num_layers):
        wih.append(_pad_gru_weight_T(params[f"w_ih_{l}"], H, Hp))
        whh.append(_pad_gru_weight_T(params[f"w_hh_{l}"], H, Hp))
        b_ih3 = params[f"b_ih_{l}"].reshape(3, H).astype(jnp.float32)
        b_hh3 = params[f"b_hh_{l}"].reshape(3, H).astype(jnp.float32)
        # Fold b_hr, b_hz into b_ih (b_hn must stay inside r*(W_hn h + b_hn)).
        comb = b_ih3.at[0].add(b_hh3[0]).at[1].add(b_hh3[1])
        bih.append(jnp.zeros((3, Hp), jnp.float32).at[:, :H].set(comb).reshape(1, 3 * Hp))
        bhn.append(jnp.zeros((1, Hp), jnp.float32).at[0, :H].set(b_hh3[2]))
    return {
        "emb": emb_p,                                      # (V, Hp) compute dtype
        "wih": jnp.stack(wih).astype(compute_dtype),       # (L, Hp, 3Hp)
        "whh": jnp.stack(whh).astype(compute_dtype),       # (L, Hp, 3Hp)
        "bih": jnp.stack(bih),                             # (L, 1, 3Hp) f32
        "bhn": jnp.stack(bhn),                             # (L, 1, Hp)  f32
        "H": H, "Hp": Hp, "L": num_layers,
        "pad_idx": params["emb"].shape[0] - 1,
        "compute_dtype": jnp.dtype(compute_dtype),
    }


def _auto_time_chunk(T, BC, Hp, L, csz, budget_bytes):
    """Largest time chunk whose VMEM working set fits an explicit budget."""
    G3 = 3 * Hp
    fixed = L * 2 * Hp * G3 * csz          # single-resident wih + whh
    fixed += L * (G3 + Hp) * 4             # biases (f32)
    fixed += 2 * L * BC * Hp * 4           # hT output block (double-buffered, f32)
    fixed += L * BC * Hp * 4               # h_scr
    fixed += 2 * BC * 128 * 4              # lens block
    per_t = BC * Hp * 4 * csz              # x + y blocks, double-buffered
    per_t += BC * G3 * csz                 # gi_scr (compute dtype)
    avail = budget_bytes - fixed
    tc = avail // per_t if avail > 0 else 1
    return int(max(1, min(tc, 256, T)))


# ----------------------------- module: params + forward -----------------------------
def init_params(key, state_dim, hidden, num_layers):
    """Deterministic init mirroring nn.Embedding + nn.GRU parameter shapes."""
    params = {}
    key, k_emb = jax.random.split(key)
    emb = jax.random.normal(k_emb, (state_dim + 1, hidden), dtype=jnp.float32)
    emb = emb.at[state_dim].set(0.0)                                   # padding_idx = state_dim
    params["emb"] = emb
    bound = 1.0 / jnp.sqrt(jnp.float32(hidden))
    for l in range(num_layers):
        key, k1, k2, k3, k4 = jax.random.split(key, 5)
        params[f"w_ih_{l}"] = jax.random.uniform(k1, (3 * hidden, hidden),
                                                 minval=-bound, maxval=bound)
        params[f"w_hh_{l}"] = jax.random.uniform(k2, (3 * hidden, hidden),
                                                 minval=-bound, maxval=bound)
        params[f"b_ih_{l}"] = jax.random.uniform(k3, (3 * hidden,),
                                                 minval=-bound, maxval=bound)
        params[f"b_hh_{l}"] = jax.random.uniform(k4, (3 * hidden,),
                                                 minval=-bound, maxval=bound)
    return params


def state_seq_emb_forward(prepared, state_seq, seq_len, *, time_chunk=None,
                          batch_chunks=None,
                          vmem_budget_bytes=48 * 1024 * 1024,   # v7x-safe; raise on v5e/v6e (128 MiB VMEM)
                          vmem_limit_bytes=64 * 1024 * 1024):
    """Returns (padded GRU outputs (B, T, H), final hidden (num_layers, B, H)).

    Equivalent to (pad_packed_sequence(h)[0], x_rnn) of the PyTorch module.
    """
    B, T = state_seq.shape
    H, Hp, L = prepared["H"], prepared["Hp"], prepared["L"]
    cdt = prepared["compute_dtype"]
    pad_idx = prepared["pad_idx"]

    # Batch chunking: 2 chunks shard the "parallel" batch axis across v7x's two TensorCores.
    # Auto only splits when each chunk keeps >=256 MXU rows; pass batch_chunks=2 on v7x for
    # smaller batches (keep BC >= 8 sublanes).
    if batch_chunks is None:
        batch_chunks = 2 if B >= 512 else 1
    batch_chunks = 2 if batch_chunks >= 2 else 1
    Bp = _round_up(max(B, 1), 8 * batch_chunks)
    BC = Bp // batch_chunks

    csz = jnp.dtype(cdt).itemsize
    if time_chunk is None:
        time_chunk = _auto_time_chunk(T, BC, Hp, L, csz, vmem_budget_bytes)
    TC = max(1, min(int(time_chunk), T))
    Tp = _round_up(T, TC)

    # Padded-index rows of the embedding are zero; padded lanes stay exactly 0 through the GRU.
    seq_p = jnp.full((Bp, Tp), pad_idx, dtype=jnp.int32).at[:B, :T].set(
        state_seq.astype(jnp.int32))
    len_p = jnp.zeros((Bp,), jnp.int32).at[:B].set(seq_len.astype(jnp.int32))
    lens2d = jnp.repeat(len_p[:, None], 128, axis=1)                   # lane-dense lengths

    # Embedding lookup (gather) as glue in plain JAX.
    # TODO(synk): an in-kernel DMA-gather embedding would avoid materializing (Bp, Tp, Hp) in HBM.
    x = jnp.take(prepared["emb"], seq_p, axis=0)                       # (Bp, Tp, Hp) compute dtype
    x_tm = jnp.transpose(x, (1, 0, 2))                                 # (Tp, Bp, Hp) time-major

    y, hT = gru_stack(x_tm, prepared["wih"], prepared["whh"], prepared["bih"],
                      prepared["bhn"], lens2d,
                      time_chunk=TC, batch_chunks=batch_chunks,
                      out_dtype=cdt, vmem_limit_bytes=vmem_limit_bytes)

    outputs = jnp.transpose(y, (1, 0, 2))[:B, :T, :H].astype(jnp.float32)
    h_n = hT[:, :B, :H].astype(jnp.float32)
    return outputs, h_n


# ----------------------------- pure-JAX reference for verification -----------------------------
def reference_forward(params, state_seq, seq_len, num_layers):
    B, T = state_seq.shape
    x = jnp.take(params["emb"], state_seq, axis=0).astype(jnp.float32)      # (B, T, H)
    mask = (jnp.arange(T)[None, :] < seq_len[:, None]).astype(jnp.float32)  # (B, T)
    layer_in = x
    h_finals = []
    for l in range(num_layers):
        w_ih, w_hh = params[f"w_ih_{l}"], params[f"w_hh_{l}"]
        b_ih, b_hh = params[f"b_ih_{l}"], params[f"b_hh_{l}"]

        def step(h, inp):
            x_t, m_t = inp
            gi = x_t @ w_ih.T + b_ih
            gh = h @ w_hh.T + b_hh
            i_r, i_z, i_n = jnp.split(gi, 3, axis=-1)
            h_r, h_z, h_n = jnp.split(gh, 3, axis=-1)
            r = jax.nn.sigmoid(i_r + h_r)
            z = jax.nn.sigmoid(i_z + h_z)
            n = jnp.tanh(i_n + r * h_n)
            h_new = (1 - z) * n + z * h
            m = m_t[:, None]
            h_next = m * h_new + (1 - m) * h
            return h_next, h_next * m

        h0 = jnp.zeros((B, params["emb"].shape[1]), jnp.float32)
        hT, ys = lax.scan(step, h0, (jnp.transpose(layer_in, (1, 0, 2)), mask.T))
        layer_in = jnp.transpose(ys, (1, 0, 2))
        h_finals.append(hT)
    return layer_in, jnp.stack(h_finals, axis=0)


# ----------------------------- main -----------------------------
if __name__ == "__main__":
    state_dim, action_dim, hidden, num_layers = 16, 4, 32, 2
    B, T = 4, 8

    key = jax.random.PRNGKey(0)
    params = init_params(key, state_dim, hidden, num_layers)

    key, k_seq = jax.random.split(key)
    seq_len = jnp.array([8, 6, 5, 3], dtype=jnp.int32)       # sorted descending (enforce_sorted)
    state_seq = jax.random.randint(k_seq, (B, T), 0, state_dim, dtype=jnp.int32)
    pad_mask = jnp.arange(T)[None, :] >= seq_len[:, None]
    state_seq = jnp.where(pad_mask, state_dim, state_seq)    # pad positions -> padding_idx

    ref_out, ref_hn = reference_forward(params, state_seq, seq_len, num_layers)

    # f32 path: exact-semantics check against the pure-JAX reference.
    prep_f32 = prepare_params(params, num_layers, compute_dtype=jnp.float32)
    outputs, h_n = state_seq_emb_forward(prep_f32, state_seq, seq_len)
    outputs = jax.block_until_ready(outputs)
    h_n = jax.block_until_ready(h_n)
    assert outputs.shape == (B, T, hidden) and h_n.shape == (num_layers, B, hidden)
    assert jnp.allclose(outputs, ref_out, atol=1e-5, rtol=1e-5)
    assert jnp.allclose(h_n, ref_hn, atol=1e-5, rtol=1e-5)

    # bf16 MXU-input path (valid on v5e/v6e/v7x): f32 accumulation + f32 gate math preserved;
    # embeddings, activations and gi_scr stored in bf16.
    prep_bf16 = prepare_params(params, num_layers, compute_dtype=jnp.bfloat16)
    out_bf16, hn_bf16 = state_seq_emb_forward(prep_bf16, state_seq, seq_len)
    out_bf16 = jax.block_until_ready(out_bf16)
    hn_bf16 = jax.block_until_ready(hn_bf16)
    assert jnp.allclose(out_bf16, ref_out, atol=6e-2)
    assert jnp.allclose(hn_bf16, ref_hn, atol=6e-2)

    print("KERNEL_OK")
</pallas_src>

<mosaic_0001>
module attributes {stable_mosaic.version = 11 : i64} {
  func.func @gru_stack_kernel(%arg0: i32, %arg1: i32, %arg2: memref<8x8x128xf32, #tpu.memory_space<vmem>>, %arg3: memref<2x128x384xf32, #tpu.memory_space<vmem>>, %arg4: memref<2x128x384xf32, #tpu.memory_space<vmem>>, %arg5: memref<2x1x384xf32, #tpu.memory_space<vmem>>, %arg6: memref<2x1x128xf32, #tpu.memory_space<vmem>>, %arg7: memref<8x128xi32, #tpu.memory_space<vmem>>, %arg8: memref<8x8x128xf32, #tpu.memory_space<vmem>>, %arg9: memref<2x8x128xf32, #tpu.memory_space<vmem>>, %arg10: memref<2x8x128xf32, #tpu.memory_space<vmem>>, %arg11: memref<8x8x384xf32, #tpu.memory_space<vmem>>) attributes {dimension_semantics = [#tpu.dimension_semantics<parallel>, #tpu.dimension_semantics<arbitrary>], iteration_bounds = array<i64: 1, 1>, scalar_prefetch = 0 : i64, scratch_operands = 2 : i64, tpu.core_type = #tpu.core_type<tc>, window_params = [{transform_indices = @transform_0, window_bounds = array<i64: 8, 8, 128>}, {pipeline_mode = #tpu.pipeline_mode<synchronous>, transform_indices = @transform_1, window_bounds = array<i64: 2, 128, 384>}, {pipeline_mode = #tpu.pipeline_mode<synchronous>, transform_indices = @transform_2, window_bounds = array<i64: 2, 128, 384>}, {pipeline_mode = #tpu.pipeline_mode<synchronous>, transform_indices = @transform_3, window_bounds = array<i64: 2, 1, 384>}, {pipeline_mode = #tpu.pipeline_mode<synchronous>, transform_indices = @transform_4, window_bounds = array<i64: 2, 1, 128>}, {transform_indices = @transform_5, window_bounds = array<i64: 8, 128>}, {transform_indices = @transform_6, window_bounds = array<i64: 8, 8, 128>}, {transform_indices = @transform_7, window_bounds = array<i64: 2, 8, 128>}]} {
    %c0_i32 = arith.constant 0 : i32
    %0 = arith.cmpi eq, %arg1, %c0_i32 : i32
    %1 = arith.extui %0 : i1 to i32
    %c0_i32_0 = arith.constant 0 : i32
    %2 = arith.cmpi ne, %1, %c0_i32_0 : i32
    scf.if %2 {
      %cst_333 = arith.constant 0.000000e+00 : f32
      %809 = vector.broadcast %cst_333 : f32 to vector<2x8x128xf32>
      %c0_334 = arith.constant 0 : index
      %c0_335 = arith.constant 0 : index
      %c0_336 = arith.constant 0 : index
      %810 = vector.load %arg10[%c0_334, %c0_335, %c0_336] : memref<2x8x128xf32, #tpu.memory_space<vmem>>, vector<2x8x128xf32>
      tpu.vector_store %arg10[%c0_334, %c0_335, %c0_336], %809 {strides = array<i32>} : memref<2x8x128xf32, #tpu.memory_space<vmem>>, vector<2x8x128xf32>,
    } else {
    }
    %c0 = arith.constant 0 : index
    %c0_1 = arith.constant 0 : index
    %3 = vector.load %arg7[%c0, %c0_1] : memref<8x128xi32, #tpu.memory_space<vmem>>, vector<8x128xi32>
    %4 = vector.extract_strided_slice %3 {offsets = [0, 0], sizes = [8, 1], strides = [1, 1]} : vector<8x128xi32> to vector<8x1xi32>
    %5 = vector.shape_cast %4 : vector<8x1xi32> to vector<8x1xi32>
    %6 = vector.broadcast %5 : vector<8x1xi32> to vector<8x128xi32>
    %c8_i32 = arith.constant 8 : i32
    %7 = arith.muli %arg1, %c8_i32 : i32
    %c0_2 = arith.constant 0 : index
    %c0_3 = arith.constant 0 : index
    %c0_4 = arith.constant 0 : index
    %8 = vector.load %arg2[%c0_2, %c0_3, %c0_4] : memref<8x8x128xf32, #tpu.memory_space<vmem>>, vector<8x8x128xf32>
    %9 = vector.shape_cast %8 : vector<8x8x128xf32> to vector<64x128xf32>
    %c0_5 = arith.constant 0 : index
    %c0_6 = arith.constant 0 : index
    %c0_7 = arith.constant 0 : index
    %10 = vector.load %arg3[%c0_5, %c0_6, %c0_7] : memref<2x128x384xf32, #tpu.memory_space<vmem>>, vector<1x128x384xf32>
    %11 = vector.shape_cast %10 : vector<1x128x384xf32> to vector<128x384xf32>
    %cst = arith.constant dense<0.000000e+00> : vector<64x384xf32>
    %12 = tpu.matmul %9, %11, %cst {dimension_numbers = #tpu.dot_dimension_numbers<[1], [0], [0], [1], [0, 0, 1, 1], [], []>} : vector<64x128xf32>, vector<128x384xf32>, vector<64x384xf32> -> vector<64x384xf32>
    %c0_8 = arith.constant 0 : index
    %c0_9 = arith.constant 0 : index
    %c0_10 = arith.constant 0 : index
    %13 = vector.load %arg5[%c0_8, %c0_9, %c0_10] : memref<2x1x384xf32, #tpu.memory_space<vmem>>, vector<1x1x384xf32>
    %14 = vector.shape_cast %13 : vector<1x1x384xf32> to vector<1x384xf32>
    %15 = vector.broadcast %14 : vector<1x384xf32> to vector<64x384xf32>
    %16 = arith.addf %12, %15 : vector<64x384xf32>
    %17 = vector.shape_cast %16 : vector<64x384xf32> to vector<8x8x384xf32>
    %c0_11 = arith.constant 0 : index
    %c0_12 = arith.constant 0 : index
    %c0_13 = arith.constant 0 : index
    %18 = vector.load %arg11[%c0_11, %c0_12, %c0_13] : memref<8x8x384xf32, #tpu.memory_space<vmem>>, vector<8x8x384xf32>
    tpu.vector_store %arg11[%c0_11, %c0_12, %c0_13], %17 {strides = array<i32>} : memref<8x8x384xf32, #tpu.memory_space<vmem>>, vector<8x8x384xf32>,
    %c0_14 = arith.constant 0 : index
    %c0_15 = arith.constant 0 : index
    %c0_16 = arith.constant 0 : index
    %19 = vector.load %arg6[%c0_14, %c0_15, %c0_16] : memref<2x1x128xf32, #tpu.memory_space<vmem>>, vector<1x1x128xf32>
    %20 = vector.shape_cast %19 : vector<1x1x128xf32> to vector<1x128xf32>
    %21 = vector.shape_cast %20 : vector<1x128xf32> to vector<1x128xf32>
    %22 = vector.broadcast %21 : vector<1x128xf32> to vector<8x128xf32>
    %c0_i32_17 = arith.constant 0 : i32
    %c0_18 = arith.constant 0 : index
    %c0_19 = arith.constant 0 : index
    %c0_20 = arith.constant 0 : index
    %23 = vector.load %arg10[%c0_18, %c0_19, %c0_20] : memref<2x8x128xf32, #tpu.memory_space<vmem>>, vector<1x8x128xf32>
    %24 = vector.shape_cast %23 : vector<1x8x128xf32> to vector<8x128xf32>
    %c0_21 = arith.constant 0 : index
    %c0_22 = arith.constant 0 : index
    %c0_23 = arith.constant 0 : index
    %25 = vector.load %arg4[%c0_21, %c0_22, %c0_23] : memref<2x128x384xf32, #tpu.memory_space<vmem>>, vector<1x128x384xf32>
    %26 = vector.shape_cast %25 : vector<1x128x384xf32> to vector<128x384xf32>
    %cst_24 = arith.constant dense<0.000000e+00> : vector<8x384xf32>
    %27 = tpu.matmul %24, %26, %cst_24 {dimension_numbers = #tpu.dot_dimension_numbers<[1], [0], [0], [1], [0, 0, 1, 1], [], []>} : vector<8x128xf32>, vector<128x384xf32>, vector<8x384xf32> -> vector<8x384xf32>
    %28 = arith.index_cast %c0_i32_17 : i32 to index
    %c0_25 = arith.constant 0 : index
    %c0_26 = arith.constant 0 : index
    %29 = vector.load %arg11[%28, %c0_25, %c0_26] : memref<8x8x384xf32, #tpu.memory_space<vmem>>, vector<1x8x384xf32>
    %30 = vector.shape_cast %29 : vector<1x8x384xf32> to vector<8x384xf32>
    %31 = vector.extract_strided_slice %30 {offsets = [0, 0], sizes = [8, 128], strides = [1, 1]} : vector<8x384xf32> to vector<8x128xf32>
    %32 = vector.extract_strided_slice %30 {offsets = [0, 128], sizes = [8, 128], strides = [1, 1]} : vector<8x384xf32> to vector<8x128xf32>
    %33 = vector.extract_strided_slice %30 {offsets = [0, 256], sizes = [8, 128], strides = [1, 1]} : vector<8x384xf32> to vector<8x128xf32>
    %34 = vector.extract_strided_slice %27 {offsets = [0, 0], sizes = [8, 128], strides = [1, 1]} : vector<8x384xf32> to vector<8x128xf32>
    %35 = vector.extract_strided_slice %27 {offsets = [0, 128], sizes = [8, 128], strides = [1, 1]} : vector<8x384xf32> to vector<8x128xf32>
    %36 = vector.extract_strided_slice %27 {offsets = [0, 256], sizes = [8, 128], strides = [1, 1]} : vector<8x384xf32> to vector<8x128xf32>
    %37 = arith.addf %36, %22 : vector<8x128xf32>
    %38 = arith.addf %31, %34 : vector<8x128xf32>
    %39 = arith.negf %38 : vector<8x128xf32>
    %40 = math.exp %39 : vector<8x128xf32>
    %cst_27 = arith.constant 1.000000e+00 : f32
    %41 = vector.broadcast %cst_27 : f32 to vector<8x128xf32>
    %42 = arith.addf %41, %40 : vector<8x128xf32>
    %43 = arith.divf %41, %42 : vector<8x128xf32>
    %44 = arith.addf %32, %35 : vector<8x128xf32>
    %45 = arith.negf %44 : vector<8x128xf32>
    %46 = math.exp %45 : vector<8x128xf32>
    %cst_28 = arith.constant 1.000000e+00 : f32
    %47 = vector.broadcast %cst_28 : f32 to vector<8x128xf32>
    %48 = arith.addf %47, %46 : vector<8x128xf32>
    %49 = arith.divf %47, %48 : vector<8x128xf32>
    %50 = arith.mulf %43, %37 : vector<8x128xf32>
    %51 = arith.addf %33, %50 : vector<8x128xf32>
    %52 = math.tanh %51 : vector<8x128xf32>
    %cst_29 = arith.constant 1.000000e+00 : f32
    %53 = vector.broadcast %cst_29 : f32 to vector<8x128xf32>
    %54 = arith.subf %53, %49 : vector<8x128xf32>
    %55 = arith.mulf %54, %52 : vector<8x128xf32>
    %56 = arith.mulf %49, %24 : vector<8x128xf32>
    %57 = arith.addf %55, %56 : vector<8x128xf32>
    %58 = arith.addi %7, %c0_i32_17 : i32
    %59 = vector.broadcast %58 : i32 to vector<8x128xi32>
    %60 = arith.cmpi slt, %59, %6 : vector<8x128xi32>
    %61 = arith.select %60, %57, %24 : vector<8x128xi1>, vector<8x128xf32>
    %c0_30 = arith.constant 0 : index
    %c0_31 = arith.constant 0 : index
    %c0_32 = arith.constant 0 : index
    %62 = vector.load %arg10[%c0_30, %c0_31, %c0_32] : memref<2x8x128xf32, #tpu.memory_space<vmem>>, vector<1x8x128xf32>
    %63 = vector.shape_cast %62 : vector<1x8x128xf32> to vector<8x128xf32>
    %64 = vector.shape_cast %61 : vector<8x128xf32> to vector<1x8x128xf32>
    tpu.vector_store %arg10[%c0_30, %c0_31, %c0_32], %64 {strides = array<i32>} : memref<2x8x128xf32, #tpu.memory_space<vmem>>, vector<1x8x128xf32>,
    %cst_33 = arith.constant 0.000000e+00 : f32
    %65 = vector.broadcast %cst_33 : f32 to vector<8x128xf32>
    %66 = arith.select %60, %57, %65 : vector<8x128xi1>, vector<8x128xf32>
    %67 = arith.index_cast %c0_i32_17 : i32 to index
    %c0_34 = arith.constant 0 : index
    %c0_35 = arith.constant 0 : index
    %68 = vector.load %arg8[%67, %c0_34, %c0_35] : memref<8x8x128xf32, #tpu.memory_space<vmem>>, vector<1x8x128xf32>
    %69 = vector.shape_cast %68 : vector<1x8x128xf32> to vector<8x128xf32>
    %70 = vector.shape_cast %66 : vector<8x128xf32> to vector<1x8x128xf32>
    tpu.vector_store %arg8[%67, %c0_34, %c0_35], %70 {strides = array<i32>} : memref<8x8x128xf32, #tpu.memory_space<vmem>>, vector<1x8x128xf32>,
    %c1_i32 = arith.constant 1 : i32
    %c0_36 = arith.constant 0 : index
    %c0_37 = arith.constant 0 : index
    %c0_38 = arith.constant 0 : index
    %71 = vector.load %arg10[%c0_36, %c0_37, %c0_38] : memref<2x8x128xf32, #tpu.memory_space<vmem>>, vector<1x8x128xf32>
    %72 = vector.shape_cast %71 : vector<1x8x128xf32> to vector<8x128xf32>
    %c0_39 = arith.constant 0 : index
    %c0_40 = arith.constant 0 : index
    %c0_41 = arith.constant 0 : index
    %73 = vector.load %arg4[%c0_39, %c0_40, %c0_41] : memref<2x128x384xf32, #tpu.memory_space<vmem>>, vector<1x128x384xf32>
    %74 = vector.shape_cast %73 : vector<1x128x384xf32> to vector<128x384xf32>
    %cst_42 = arith.constant dense<0.000000e+00> : vector<8x384xf32>
    %75 = tpu.matmul %72, %74, %cst_42 {dimension_numbers = #tpu.dot_dimension_numbers<[1], [0], [0], [1], [0, 0, 1, 1], [], []>} : vector<8x128xf32>, vector<128x384xf32>, vector<8x384xf32> -> vector<8x384xf32>
    %76 = arith.index_cast %c1_i32 : i32 to index
    %c0_43 = arith.constant 0 : index
    %c0_44 = arith.constant 0 : index
    %77 = vector.load %arg11[%76, %c0_43, %c0_44] : memref<8x8x384xf32, #tpu.memory_space<vmem>>, vector<1x8x384xf32>
    %78 = vector.shape_cast %77 : vector<1x8x384xf32> to vector<8x384xf32>
    %79 = vector.extract_strided_slice %78 {offsets = [0, 0], sizes = [8, 128], strides = [1, 1]} : vector<8x384xf32> to vector<8x128xf32>
    %80 = vector.extract_strided_slice %78 {offsets = [0, 128], sizes = [8, 128], strides = [1, 1]} : vector<8x384xf32> to vector<8x128xf32>
    %81 = vector.extract_strided_slice %78 {offsets = [0, 256], sizes = [8, 128], strides = [1, 1]} : vector<8x384xf32> to vector<8x128xf32>
    %82 = vector.extract_strided_slice %75 {offsets = [0, 0], sizes = [8, 128], strides = [1, 1]} : vector<8x384xf32> to vector<8x128xf32>
    %83 = vector.extract_strided_slice %75 {offsets = [0, 128], sizes = [8, 128], strides = [1, 1]} : vector<8x384xf32> to vector<8x128xf32>
    %84 = vector.extract_strided_slice %75 {offsets = [0, 256], sizes = [8, 128], strides = [1, 1]} : vector<8x384xf32> to vector<8x128xf32>
    %85 = arith.addf %84, %22 : vector<8x128xf32>
    %86 = arith.addf %79, %82 : vector<8x128xf32>
    %87 = arith.negf %86 : vector<8x128xf32>
    %88 = math.exp %87 : vector<8x128xf32>
    %cst_45 = arith.constant 1.000000e+00 : f32
    %89 = vector.broadcast %cst_45 : f32 to vector<8x128xf32>
    %90 = arith.addf %89, %88 : vector<8x128xf32>
    %91 = arith.divf %89, %90 : vector<8x128xf32>
    %92 = arith.addf %80, %83 : vector<8x128xf32>
    %93 = arith.negf %92 : vector<8x128xf32>
    %94 = math.exp %93 : vector<8x128xf32>
    %cst_46 = arith.constant 1.000000e+00 : f32
    %95 = vector.broadcast %cst_46 : f32 to vector<8x128xf32>
    %96 = arith.addf %95, %94 : vector<8x128xf32>
    %97 = arith.divf %95, %96 : vector<8x128xf32>
    %98 = arith.mulf %91, %85 : vector<8x128xf32>
    %99 = arith.addf %81, %98 : vector<8x128xf32>
    %100 = math.tanh %99 : vector<8x128xf32>
    %cst_47 = arith.constant 1.000000e+00 : f32
    %101 = vector.broadcast %cst_47 : f32 to vector<8x128xf32>
    %102 = arith.subf %101, %97 : vector<8x128xf32>
    %103 = arith.mulf %102, %100 : vector<8x128xf32>
    %104 = arith.mulf %97, %72 : vector<8x128xf32>
    %105 = arith.addf %103, %104 : vector<8x128xf32>
    %106 = arith.addi %7, %c1_i32 : i32
    %107 = vector.broadcast %106 : i32 to vector<8x128xi32>
    %108 = arith.cmpi slt, %107, %6 : vector<8x128xi32>
    %109 = arith.select %108, %105, %72 : vector<8x128xi1>, vector<8x128xf32>
    %c0_48 = arith.constant 0 : index
    %c0_49 = arith.constant 0 : index
    %c0_50 = arith.constant 0 : index
    %110 = vector.load %arg10[%c0_48, %c0_49, %c0_50] : memref<2x8x128xf32, #tpu.memory_space<vmem>>, vector<1x8x128xf32>
    %111 = vector.shape_cast %110 : vector<1x8x128xf32> to vector<8x128xf32>
    %112 = vector.shape_cast %109 : vector<8x128xf32> to vector<1x8x128xf32>
    tpu.vector_store %arg10[%c0_48, %c0_49, %c0_50], %112 {strides = array<i32>} : memref<2x8x128xf32, #tpu.memory_space<vmem>>, vector<1x8x128xf32>,
    %cst_51 = arith.constant 0.000000e+00 : f32
    %113 = vector.broadcast %cst_51 : f32 to vector<8x128xf32>
    %114 = arith.select %108, %105, %113 : vector<8x128xi1>, vector<8x128xf32>
    %115 = arith.index_cast %c1_i32 : i32 to index
    %c0_52 = arith.constant 0 : index
    %c0_53 = arith.constant 0 : index
    %116 = vector.load %arg8[%115, %c0_52, %c0_53] : memref<8x8x128xf32, #tpu.memory_space<vmem>>, vector<1x8x128xf32>
    %117 = vector.shape_cast %116 : vector<1x8x128xf32> to vector<8x128xf32>
    %118 = vector.shape_cast %114 : vector<8x128xf32> to vector<1x8x128xf32>
    tpu.vector_store %arg8[%115, %c0_52, %c0_53], %118 {strides = array<i32>} : memref<8x8x128xf32, #tpu.memory_space<vmem>>, vector<1x8x128xf32>,
    %c2_i32 = arith.constant 2 : i32
    %c0_54 = arith.constant 0 : index
    %c0_55 = arith.constant 0 : index
    %c0_56 = arith.constant 0 : index
    %119 = vector.load %arg10[%c0_54, %c0_55, %c0_56] : memref<2x8x128xf32, #tpu.memory_space<vmem>>, vector<1x8x128xf32>
    %120 = vector.shape_cast %119 : vector<1x8x128xf32> to vector<8x128xf32>
    %c0_57 = arith.constant 0 : index
    %c0_58 = arith.constant 0 : index
    %c0_59 = arith.constant 0 : index
    %121 = vector.load %arg4[%c0_57, %c0_58, %c0_59] : memref<2x128x384xf32, #tpu.memory_space<vmem>>, vector<1x128x384xf32>
    %122 = vector.shape_cast %121 : vector<1x128x384xf32> to vector<128x384xf32>
    %cst_60 = arith.constant dense<0.000000e+00> : vector<8x384xf32>
    %123 = tpu.matmul %120, %122, %cst_60 {dimension_numbers = #tpu.dot_dimension_numbers<[1], [0], [0], [1], [0, 0, 1, 1], [], []>} : vector<8x128xf32>, vector<128x384xf32>, vector<8x384xf32> -> vector<8x384xf32>
    %124 = arith.index_cast %c2_i32 : i32 to index
    %c0_61 = arith.constant 0 : index
    %c0_62 = arith.constant 0 : index
    %125 = vector.load %arg11[%124, %c0_61, %c0_62] : memref<8x8x384xf32, #tpu.memory_space<vmem>>, vector<1x8x384xf32>
    %126 = vector.shape_cast %125 : vector<1x8x384xf32> to vector<8x384xf32>
    %127 = vector.extract_strided_slice %126 {offsets = [0, 0], sizes = [8, 128], strides = [1, 1]} : vector<8x384xf32> to vector<8x128xf32>
    %128 = vector.extract_strided_slice %126 {offsets = [0, 128], sizes = [8, 128], strides = [1, 1]} : vector<8x384xf32> to vector<8x128xf32>
    %129 = vector.extract_strided_slice %126 {offsets = [0, 256], sizes = [8, 128], strides = [1, 1]} : vector<8x384xf32> to vector<8x128xf32>
    %130 = vector.extract_strided_slice %123 {offsets = [0, 0], sizes = [8, 128], strides = [1, 1]} : vector<8x384xf32> to vector<8x128xf32>
    %131 = vector.extract_strided_slice %123 {offsets = [0, 128], sizes = [8, 128], strides = [1, 1]} : vector<8x384xf32> to vector<8x128xf32>
    %132 = vector.extract_strided_slice %123 {offsets = [0, 256], sizes = [8, 128], strides = [1, 1]} : vector<8x384xf32> to vector<8x128xf32>
    %133 = arith.addf %132, %22 : vector<8x128xf32>
    %134 = arith.addf %127, %130 : vector<8x128xf32>
    %135 = arith.negf %134 : vector<8x128xf32>
    %136 = math.exp %135 : vector<8x128xf32>
    %cst_63 = arith.constant 1.000000e+00 : f32
    %137 = vector.broadcast %cst_63 : f32 to vector<8x128xf32>
    %138 = arith.addf %137, %136 : vector<8x128xf32>
    %139 = arith.divf %137, %138 : vector<8x128xf32>
    %140 = arith.addf %128, %131 : vector<8x128xf32>
    %141 = arith.negf %140 : vector<8x128xf32>
    %142 = math.exp %141 : vector<8x128xf32>
    %cst_64 = arith.constant 1.000000e+00 : f32
    %143 = vector.broadcast %cst_64 : f32 to vector<8x128xf32>
    %144 = arith.addf %143, %142 : vector<8x128xf32>
    %145 = arith.divf %143, %144 : vector<8x128xf32>
    %146 = arith.mulf %139, %133 : vector<8x128xf32>
    %147 = arith.addf %129, %146 : vector<8x128xf32>
    %148 = math.tanh %147 : vector<8x128xf32>
    %cst_65 = arith.constant 1.000000e+00 : f32
    %149 = vector.broadcast %cst_65 : f32 to vector<8x128xf32>
    %150 = arith.subf %149, %145 : vector<8x128xf32>
    %151 = arith.mulf %150, %148 : vector<8x128xf32>
    %152 = arith.mulf %145, %120 : vector<8x128xf32>
    %153 = arith.addf %151, %152 : vector<8x128xf32>
    %154 = arith.addi %7, %c2_i32 : i32
    %155 = vector.broadcast %154 : i32 to vector<8x128xi32>
    %156 = arith.cmpi slt, %155, %6 : vector<8x128xi32>
    %157 = arith.select %156, %153, %120 : vector<8x128xi1>, vector<8x128xf32>
    %c0_66 = arith.constant 0 : index
    %c0_67 = arith.constant 0 : index
    %c0_68 = arith.constant 0 : index
    %158 = vector.load %arg10[%c0_66, %c0_67, %c0_68] : memref<2x8x128xf32, #tpu.memory_space<vmem>>, vector<1x8x128xf32>
    %159 = vector.shape_cast %158 : vector<1x8x128xf32> to vector<8x128xf32>
    %160 = vector.shape_cast %157 : vector<8x128xf32> to vector<1x8x128xf32>
    tpu.vector_store %arg10[%c0_66, %c0_67, %c0_68], %160 {strides = array<i32>} : memref<2x8x128xf32, #tpu.memory_space<vmem>>, vector<1x8x128xf32>,
    %cst_69 = arith.constant 0.000000e+00 : f32
    %161 = vector.broadcast %cst_69 : f32 to vector<8x128xf32>
    %162 = arith.select %156, %153, %161 : vector<8x128xi1>, vector<8x128xf32>
    %163 = arith.index_cast %c2_i32 : i32 to index
    %c0_70 = arith.constant 0 : index
    %c0_71 = arith.constant 0 : index
    %164 = vector.load %arg8[%163, %c0_70, %c0_71] : memref<8x8x128xf32, #tpu.memory_space<vmem>>, vector<1x8x128xf32>
    %165 = vector.shape_cast %164 : vector<1x8x128xf32> to vector<8x128xf32>
    %166 = vector.shape_cast %162 : vector<8x128xf32> to vector<1x8x128xf32>
    tpu.vector_store %arg8[%163, %c0_70, %c0_71], %166 {strides = array<i32>} : memref<8x8x128xf32, #tpu.memory_space<vmem>>, vector<1x8x128xf32>,
    %c3_i32 = arith.constant 3 : i32
    %c0_72 = arith.constant 0 : index
    %c0_73 = arith.constant 0 : index
    %c0_74 = arith.constant 0 : index
    %167 = vector.load %arg10[%c0_72, %c0_73, %c0_74] : memref<2x8x128xf32, #tpu.memory_space<vmem>>, vector<1x8x128xf32>
    %168 = vector.shape_cast %167 : vector<1x8x128xf32> to vector<8x128xf32>
    %c0_75 = arith.constant 0 : index
    %c0_76 = arith.constant 0 : index
    %c0_77 = arith.constant 0 : index
    %169 = vector.load %arg4[%c0_75, %c0_76, %c0_77] : memref<2x128x384xf32, #tpu.memory_space<vmem>>, vector<1x128x384xf32>
    %170 = vector.shape_cast %169 : vector<1x128x384xf32> to vector<128x384xf32>
    %cst_78 = arith.constant dense<0.000000e+00> : vector<8x384xf32>
    %171 = tpu.matmul %168, %170, %cst_78 {dimension_numbers = #tpu.dot_dimension_numbers<[1], [0], [0], [1], [0, 0, 1, 1], [], []>} : vector<8x128xf32>, vector<128x384xf32>, vector<8x384xf32> -> vector<8x384xf32>
    %172 = arith.index_cast %c3_i32 : i32 to index
    %c0_79 = arith.constant 0 : index
    %c0_80 = arith.constant 0 : index
    %173 = vector.load %arg11[%172, %c0_79, %c0_80] : memref<8x8x384xf32, #tpu.memory_space<vmem>>, vector<1x8x384xf32>
    %174 = vector.shape_cast %173 : vector<1x8x384xf32> to vector<8x384xf32>
    %175 = vector.extract_strided_slice %174 {offsets = [0, 0], sizes = [8, 128], strides = [1, 1]} : vector<8x384xf32> to vector<8x128xf32>
    %176 = vector.extract_strided_slice %174 {offsets = [0, 128], sizes = [8, 128], strides = [1, 1]} : vector<8x384xf32> to vector<8x128xf32>
    %177 = vector.extract_strided_slice %174 {offsets = [0, 256], sizes = [8, 128], strides = [1, 1]} : vector<8x384xf32> to vector<8x128xf32>
    %178 = vector.extract_strided_slice %171 {offsets = [0, 0], sizes = [8, 128], strides = [1, 1]} : vector<8x384xf32> to vector<8x128xf32>
    %179 = vector.extract_strided_slice %171 {offsets = [0, 128], sizes = [8, 128], strides = [1, 1]} : vector<8x384xf32> to vector<8x128xf32>
    %180 = vector.extract_strided_slice %171 {offsets = [0, 256], sizes = [8, 128], strides = [1, 1]} : vector<8x384xf32> to vector<8x128xf32>
    %181 = arith.addf %180, %22 : vector<8x128xf32>
    %182 = arith.addf %175, %178 : vector<8x128xf32>
    %183 = arith.negf %182 : vector<8x128xf32>
    %184 = math.exp %183 : vector<8x128xf32>
    %cst_81 = arith.constant 1.000000e+00 : f32
    %185 = vector.broadcast %cst_81 : f32 to vector<8x128xf32>
    %186 = arith.addf %185, %184 : vector<8x128xf32>
    %187 = arith.divf %185, %186 : vector<8x128xf32>
    %188 = arith.addf %176, %179 : vector<8x128xf32>
    %189 = arith.negf %188 : vector<8x128xf32>
    %190 = math.exp %189 : vector<8x128xf32>
    %cst_82 = arith.constant 1.000000e+00 : f32
    %191 = vector.broadcast %cst_82 : f32 to vector<8x128xf32>
    %192 = arith.addf %191, %190 : vector<8x128xf32>
    %193 = arith.divf %191, %192 : vector<8x128xf32>
    %194 = arith.mulf %187, %181 : vector<8x128xf32>
    %195 = arith.addf %177, %194 : vector<8x128xf32>
    %196 = math.tanh %195 : vector<8x128xf32>
    %cst_83 = arith.constant 1.000000e+00 : f32
    %197 = vector.broadcast %cst_83 : f32 to vector<8x128xf32>
    %198 = arith.subf %197, %193 : vector<8x128xf32>
    %199 = arith.mulf %198, %196 : vector<8x128xf32>
    %200 = arith.mulf %193, %168 : vector<8x128xf32>
    %201 = arith.addf %199, %200 : vector<8x128xf32>
    %202 = arith.addi %7, %c3_i32 : i32
    %203 = vector.broadcast %202 : i32 to vector<8x128xi32>
    %204 = arith.cmpi slt, %203, %6 : vector<8x128xi32>
    %205 = arith.select %204, %201, %168 : vector<8x128xi1>, vector<8x128xf32>
    %c0_84 = arith.constant 0 : index
    %c0_85 = arith.constant 0 : index
    %c0_86 = arith.constant 0 : index
    %206 = vector.load %arg10[%c0_84, %c0_85, %c0_86] : memref<2x8x128xf32, #tpu.memory_space<vmem>>, vector<1x8x128xf32>
    %207 = vector.shape_cast %206 : vector<1x8x128xf32> to vector<8x128xf32>
    %208 = vector.shape_cast %205 : vector<8x128xf32> to vector<1x8x128xf32>
    tpu.vector_store %arg10[%c0_84, %c0_85, %c0_86], %208 {strides = array<i32>} : memref<2x8x128xf32, #tpu.memory_space<vmem>>, vector<1x8x128xf32>,
    %cst_87 = arith.constant 0.000000e+00 : f32
    %209 = vector.broadcast %cst_87 : f32 to vector<8x128xf32>
    %210 = arith.select %204, %201, %209 : vector<8x128xi1>, vector<8x128xf32>
    %211 = arith.index_cast %c3_i32 : i32 to index
    %c0_88 = arith.constant 0 : index
    %c0_89 = arith.constant 0 : index
    %212 = vector.load %arg8[%211, %c0_88, %c0_89] : memref<8x8x128xf32, #tpu.memory_space<vmem>>, vector<1x8x128xf32>
    %213 = vector.shape_cast %212 : vector<1x8x128xf32> to vector<8x128xf32>
    %214 = vector.shape_cast %210 : vector<8x128xf32> to vector<1x8x128xf32>
    tpu.vector_store %arg8[%211, %c0_88, %c0_89], %214 {strides = array<i32>} : memref<8x8x128xf32, #tpu.memory_space<vmem>>, vector<1x8x128xf32>,
    %c4_i32 = arith.constant 4 : i32
    %c0_90 = arith.constant 0 : index
    %c0_91 = arith.constant 0 : index
    %c0_92 = arith.constant 0 : index
    %215 = vector.load %arg10[%c0_90, %c0_91, %c0_92] : memref<2x8x128xf32, #tpu.memory_space<vmem>>, vector<1x8x128xf32>
    %216 = vector.shape_cast %215 : vector<1x8x128xf32> to vector<8x128xf32>
    %c0_93 = arith.constant 0 : index
    %c0_94 = arith.constant 0 : index
    %c0_95 = arith.constant 0 : index
    %217 = vector.load %arg4[%c0_93, %c0_94, %c0_95] : memref<2x128x384xf32, #tpu.memory_space<vmem>>, vector<1x128x384xf32>
    %218 = vector.shape_cast %217 : vector<1x128x384xf32> to vector<128x384xf32>
    %cst_96 = arith.constant dense<0.000000e+00> : vector<8x384xf32>
    %219 = tpu.matmul %216, %218, %cst_96 {dimension_numbers = #tpu.dot_dimension_numbers<[1], [0], [0], [1], [0, 0, 1, 1], [], []>} : vector<8x128xf32>, vector<128x384xf32>, vector<8x384xf32> -> vector<8x384xf32>
    %220 = arith.index_cast %c4_i32 : i32 to index
    %c0_97 = arith.constant 0 : index
    %c0_98 = arith.constant 0 : index
    %221 = vector.load %arg11[%220, %c0_97, %c0_98] : memref<8x8x384xf32, #tpu.memory_space<vmem>>, vector<1x8x384xf32>
    %222 = vector.shape_cast %221 : vector<1x8x384xf32> to vector<8x384xf32>
    %223 = vector.extract_strided_slice %222 {offsets = [0, 0], sizes = [8, 128], strides = [1, 1]} : vector<8x384xf32> to vector<8x128xf32>
    %224 = vector.extract_strided_slice %222 {offsets = [0, 128], sizes = [8, 128], strides = [1, 1]} : vector<8x384xf32> to vector<8x128xf32>
    %225 = vector.extract_strided_slice %222 {offsets = [0, 256], sizes = [8, 128], strides = [1, 1]} : vector<8x384xf32> to vector<8x128xf32>
    %226 = vector.extract_strided_slice %219 {offsets = [0, 0], sizes = [8, 128], strides = [1, 1]} : vector<8x384xf32> to vector<8x128xf32>
    %227 = vector.extract_strided_slice %219 {offsets = [0, 128], sizes = [8, 128], strides = [1, 1]} : vector<8x384xf32> to vector<8x128xf32>
    %228 = vector.extract_strided_slice %219 {offsets = [0, 256], sizes = [8, 128], strides = [1, 1]} : vector<8x384xf32> to vector<8x128xf32>
    %229 = arith.addf %228, %22 : vector<8x128xf32>
    %230 = arith.addf %223, %226 : vector<8x128xf32>
    %231 = arith.negf %230 : vector<8x128xf32>
    %232 = math.exp %231 : vector<8x128xf32>
    %cst_99 = arith.constant 1.000000e+00 : f32
    %233 = vector.broadcast %cst_99 : f32 to vector<8x128xf32>
    %234 = arith.addf %233, %232 : vector<8x128xf32>
    %235 = arith.divf %233, %234 : vector<8x128xf32>
    %236 = arith.addf %224, %227 : vector<8x128xf32>
    %237 = arith.negf %236 : vector<8x128xf32>
    %238 = math.exp %237 : vector<8x128xf32>
    %cst_100 = arith.constant 1.000000e+00 : f32
    %239 = vector.broadcast %cst_100 : f32 to vector<8x128xf32>
    %240 = arith.addf %239, %238 : vector<8x128xf32>
    %241 = arith.divf %239, %240 : vector<8x128xf32>
    %242 = arith.mulf %235, %229 : vector<8x128xf32>
    %243 = arith.addf %225, %242 : vector<8x128xf32>
    %244 = math.tanh %243 : vector<8x128xf32>
    %cst_101 = arith.constant 1.000000e+00 : f32
    %245 = vector.broadcast %cst_101 : f32 to vector<8x128xf32>
    %246 = arith.subf %245, %241 : vector<8x128xf32>
    %247 = arith.mulf %246, %244 : vector<8x128xf32>
    %248 = arith.mulf %241, %216 : vector<8x128xf32>
    %249 = arith.addf %247, %248 : vector<8x128xf32>
    %250 = arith.addi %7, %c4_i32 : i32
    %251 = vector.broadcast %250 : i32 to vector<8x128xi32>
    %252 = arith.cmpi slt, %251, %6 : vector<8x128xi32>
    %253 = arith.select %252, %249, %216 : vector<8x128xi1>, vector<8x128xf32>
    %c0_102 = arith.constant 0 : index
    %c0_103 = arith.constant 0 : index
    %c0_104 = arith.constant 0 : index
    %254 = vector.load %arg10[%c0_102, %c0_103, %c0_104] : memref<2x8x128xf32, #tpu.memory_space<vmem>>, vector<1x8x128xf32>
    %255 = vector.shape_cast %254 : vector<1x8x128xf32> to vector<8x128xf32>
    %256 = vector.shape_cast %253 : vector<8x128xf32> to vector<1x8x128xf32>
    tpu.vector_store %arg10[%c0_102, %c0_103, %c0_104], %256 {strides = array<i32>} : memref<2x8x128xf32, #tpu.memory_space<vmem>>, vector<1x8x128xf32>,
    %cst_105 = arith.constant 0.000000e+00 : f32
    %257 = vector.broadcast %cst_105 : f32 to vector<8x128xf32>
    %258 = arith.select %252, %249, %257 : vector<8x128xi1>, vector<8x128xf32>
    %259 = arith.index_cast %c4_i32 : i32 to index
    %c0_106 = arith.constant 0 : index
    %c0_107 = arith.constant 0 : index
    %260 = vector.load %arg8[%259, %c0_106, %c0_107] : memref<8x8x128xf32, #tpu.memory_space<vmem>>, vector<1x8x128xf32>
    %261 = vector.shape_cast %260 : vector<1x8x128xf32> to vector<8x128xf32>
    %262 = vector.shape_cast %258 : vector<8x128xf32> to vector<1x8x128xf32>
    tpu.vector_store %arg8[%259, %c0_106, %c0_107], %262 {strides = array<i32>} : memref<8x8x128xf32, #tpu.memory_space<vmem>>, vector<1x8x128xf32>,
    %c5_i32 = arith.constant 5 : i32
    %c0_108 = arith.constant 0 : index
    %c0_109 = arith.constant 0 : index
    %c0_110 = arith.constant 0 : index
    %263 = vector.load %arg10[%c0_108, %c0_109, %c0_110] : memref<2x8x128xf32, #tpu.memory_space<vmem>>, vector<1x8x128xf32>
    %264 = vector.shape_cast %263 : vector<1x8x128xf32> to vector<8x128xf32>
    %c0_111 = arith.constant 0 : index
    %c0_112 = arith.constant 0 : index
    %c0_113 = arith.constant 0 : index
    %265 = vector.load %arg4[%c0_111, %c0_112, %c0_113] : memref<2x128x384xf32, #tpu.memory_space<vmem>>, vector<1x128x384xf32>
    %266 = vector.shape_cast %265 : vector<1x128x384xf32> to vector<128x384xf32>
    %cst_114 = arith.constant dense<0.000000e+00> : vector<8x384xf32>
    %267 = tpu.matmul %264, %266, %cst_114 {dimension_numbers = #tpu.dot_dimension_numbers<[1], [0], [0], [1], [0, 0, 1, 1], [], []>} : vector<8x128xf32>, vector<128x384xf32>, vector<8x384xf32> -> vector<8x384xf32>
    %268 = arith.index_cast %c5_i32 : i32 to index
    %c0_115 = arith.constant 0 : index
    %c0_116 = arith.constant 0 : index
    %269 = vector.load %arg11[%268, %c0_115, %c0_116] : memref<8x8x384xf32, #tpu.memory_space<vmem>>, vector<1x8x384xf32>
    %270 = vector.shape_cast %269 : vector<1x8x384xf32> to vector<8x384xf32>
    %271 = vector.extract_strided_slice %270 {offsets = [0, 0], sizes = [8, 128], strides = [1, 1]} : vector<8x384xf32> to vector<8x128xf32>
    %272 = vector.extract_strided_slice %270 {offsets = [0, 128], sizes = [8, 128], strides = [1, 1]} : vector<8x384xf32> to vector<8x128xf32>
    %273 = vector.extract_strided_slice %270 {offsets = [0, 256], sizes = [8, 128], strides = [1, 1]} : vector<8x384xf32> to vector<8x128xf32>
    %274 = vector.extract_strided_slice %267 {offsets = [0, 0], sizes = [8, 128], strides = [1, 1]} : vector<8x384xf32> to vector<8x128xf32>
    %275 = vector.extract_strided_slice %267 {offsets = [0, 128], sizes = [8, 128], strides = [1, 1]} : vector<8x384xf32> to vector<8x128xf32>
    %276 = vector.extract_strided_slice %267 {offsets = [0, 256], sizes = [8, 128], strides = [1, 1]} : vector<8x384xf32> to vector<8x128xf32>
    %277 = arith.addf %276, %22 : vector<8x128xf32>
    %278 = arith.addf %271, %274 : vector<8x128xf32>
    %279 = arith.negf %278 : vector<8x128xf32>
    %280 = math.exp %279 : vector<8x128xf32>
    %cst_117 = arith.constant 1.000000e+00 : f32
    %281 = vector.broadcast %cst_117 : f32 to vector<8x128xf32>
    %282 = arith.addf %281, %280 : vector<8x128xf32>
    %283 = arith.divf %281, %282 : vector<8x128xf32>
    %284 = arith.addf %272, %275 : vector<8x128xf32>
    %285 = arith.negf %284 : vector<8x128xf32>
    %286 = math.exp %285 : vector<8x128xf32>
    %cst_118 = arith.constant 1.000000e+00 : f32
    %287 = vector.broadcast %cst_118 : f32 to vector<8x128xf32>
    %288 = arith.addf %287, %286 : vector<8x128xf32>
    %289 = arith.divf %287, %288 : vector<8x128xf32>
    %290 = arith.mulf %283, %277 : vector<8x128xf32>
    %291 = arith.addf %273, %290 : vector<8x128xf32>
    %292 = math.tanh %291 : vector<8x128xf32>
    %cst_119 = arith.constant 1.000000e+00 : f32
    %293 = vector.broadcast %cst_119 : f32 to vector<8x128xf32>
    %294 = arith.subf %293, %289 : vector<8x128xf32>
    %295 = arith.mulf %294, %292 : vector<8x128xf32>
    %296 = arith.mulf %289, %264 : vector<8x128xf32>
    %297 = arith.addf %295, %296 : vector<8x128xf32>
    %298 = arith.addi %7, %c5_i32 : i32
    %299 = vector.broadcast %298 : i32 to vector<8x128xi32>
    %300 = arith.cmpi slt, %299, %6 : vector<8x128xi32>
    %301 = arith.select %300, %297, %264 : vector<8x128xi1>, vector<8x128xf32>
    %c0_120 = arith.constant 0 : index
    %c0_121 = arith.constant 0 : index
    %c0_122 = arith.constant 0 : index
    %302 = vector.load %arg10[%c0_120, %c0_121, %c0_122] : memref<2x8x128xf32, #tpu.memory_space<vmem>>, vector<1x8x128xf32>
    %303 = vector.shape_cast %302 : vector<1x8x128xf32> to vector<8x128xf32>
    %304 = vector.shape_cast %301 : vector<8x128xf32> to vector<1x8x128xf32>
    tpu.vector_store %arg10[%c0_120, %c0_121, %c0_122], %304 {strides = array<i32>} : memref<2x8x128xf32, #tpu.memory_space<vmem>>, vector<1x8x128xf32>,
    %cst_123 = arith.constant 0.000000e+00 : f32
    %305 = vector.broadcast %cst_123 : f32 to vector<8x128xf32>
    %306 = arith.select %300, %297, %305 : vector<8x128xi1>, vector<8x128xf32>
    %307 = arith.index_cast %c5_i32 : i32 to index
    %c0_124 = arith.constant 0 : index
    %c0_125 = arith.constant 0 : index
    %308 = vector.load %arg8[%307, %c0_124, %c0_125] : memref<8x8x128xf32, #tpu.memory_space<vmem>>, vector<1x8x128xf32>
    %309 = vector.shape_cast %308 : vector<1x8x128xf32> to vector<8x128xf32>
    %310 = vector.shape_cast %306 : vector<8x128xf32> to vector<1x8x128xf32>
    tpu.vector_store %arg8[%307, %c0_124, %c0_125], %310 {strides = array<i32>} : memref<8x8x128xf32, #tpu.memory_space<vmem>>, vector<1x8x128xf32>,
    %c6_i32 = arith.constant 6 : i32
    %c0_126 = arith.constant 0 : index
    %c0_127 = arith.constant 0 : index
    %c0_128 = arith.constant 0 : index
    %311 = vector.load %arg10[%c0_126, %c0_127, %c0_128] : memref<2x8x128xf32, #tpu.memory_space<vmem>>, vector<1x8x128xf32>
    %312 = vector.shape_cast %311 : vector<1x8x128xf32> to vector<8x128xf32>
    %c0_129 = arith.constant 0 : index
    %c0_130 = arith.constant 0 : index
    %c0_131 = arith.constant 0 : index
    %313 = vector.load %arg4[%c0_129, %c0_130, %c0_131] : memref<2x128x384xf32, #tpu.memory_space<vmem>>, vector<1x128x384xf32>
    %314 = vector.shape_cast %313 : vector<1x128x384xf32> to vector<128x384xf32>
    %cst_132 = arith.constant dense<0.000000e+00> : vector<8x384xf32>
    %315 = tpu.matmul %312, %314, %cst_132 {dimension_numbers = #tpu.dot_dimension_numbers<[1], [0], [0], [1], [0, 0, 1, 1], [], []>} : vector<8x128xf32>, vector<128x384xf32>, vector<8x384xf32> -> vector<8x384xf32>
    %316 = arith.index_cast %c6_i32 : i32 to index
    %c0_133 = arith.constant 0 : index
    %c0_134 = arith.constant 0 : index
    %317 = vector.load %arg11[%316, %c0_133, %c0_134] : memref<8x8x384xf32, #tpu.memory_space<vmem>>, vector<1x8x384xf32>
    %318 = vector.shape_cast %317 : vector<1x8x384xf32> to vector<8x384xf32>
    %319 = vector.extract_strided_slice %318 {offsets = [0, 0], sizes = [8, 128], strides = [1, 1]} : vector<8x384xf32> to vector<8x128xf32>
    %320 = vector.extract_strided_slice %318 {offsets = [0, 128], sizes = [8, 128], strides = [1, 1]} : vector<8x384xf32> to vector<8x128xf32>
    %321 = vector.extract_strided_slice %318 {offsets = [0, 256], sizes = [8, 128], strides = [1, 1]} : vector<8x384xf32> to vector<8x128xf32>
    %322 = vector.extract_strided_slice %315 {offsets = [0, 0], sizes = [8, 128], strides = [1, 1]} : vector<8x384xf32> to vector<8x128xf32>
    %323 = vector.extract_strided_slice %315 {offsets = [0, 128], sizes = [8, 128], strides = [1, 1]} : vector<8x384xf32> to vector<8x128xf32>
    %324 = vector.extract_strided_slice %315 {offsets = [0, 256], sizes = [8, 128], strides = [1, 1]} : vector<8x384xf32> to vector<8x128xf32>
    %325 = arith.addf %324, %22 : vector<8x128xf32>
    %326 = arith.addf %319, %322 : vector<8x128xf32>
    %327 = arith.negf %326 : vector<8x128xf32>
    %328 = math.exp %327 : vector<8x128xf32>
    %cst_135 = arith.constant 1.000000e+00 : f32
    %329 = vector.broadcast %cst_135 : f32 to vector<8x128xf32>
    %330 = arith.addf %329, %328 : vector<8x128xf32>
    %331 = arith.divf %329, %330 : vector<8x128xf32>
    %332 = arith.addf %320, %323 : vector<8x128xf32>
    %333 = arith.negf %332 : vector<8x128xf32>
    %334 = math.exp %333 : vector<8x128xf32>
    %cst_136 = arith.constant 1.000000e+00 : f32
    %335 = vector.broadcast %cst_136 : f32 to vector<8x128xf32>
    %336 = arith.addf %335, %334 : vector<8x128xf32>
    %337 = arith.divf %335, %336 : vector<8x128xf32>
    %338 = arith.mulf %331, %325 : vector<8x128xf32>
    %339 = arith.addf %321, %338 : vector<8x128xf32>
    %340 = math.tanh %339 : vector<8x128xf32>
    %cst_137 = arith.constant 1.000000e+00 : f32
    %341 = vector.broadcast %cst_137 : f32 to vector<8x128xf32>
    %342 = arith.subf %341, %337 : vector<8x128xf32>
    %343 = arith.mulf %342, %340 : vector<8x128xf32>
    %344 = arith.mulf %337, %312 : vector<8x128xf32>
    %345 = arith.addf %343, %344 : vector<8x128xf32>
    %346 = arith.addi %7, %c6_i32 : i32
    %347 = vector.broadcast %346 : i32 to vector<8x128xi32>
    %348 = arith.cmpi slt, %347, %6 : vector<8x128xi32>
    %349 = arith.select %348, %345, %312 : vector<8x128xi1>, vector<8x128xf32>
    %c0_138 = arith.constant 0 : index
    %c0_139 = arith.constant 0 : index
    %c0_140 = arith.constant 0 : index
    %350 = vector.load %arg10[%c0_138, %c0_139, %c0_140] : memref<2x8x128xf32, #tpu.memory_space<vmem>>, vector<1x8x128xf32>
    %351 = vector.shape_cast %350 : vector<1x8x128xf32> to vector<8x128xf32>
    %352 = vector.shape_cast %349 : vector<8x128xf32> to vector<1x8x128xf32>
    tpu.vector_store %arg10[%c0_138, %c0_139, %c0_140], %352 {strides = array<i32>} : memref<2x8x128xf32, #tpu.memory_space<vmem>>, vector<1x8x128xf32>,
    %cst_141 = arith.constant 0.000000e+00 : f32
    %353 = vector.broadcast %cst_141 : f32 to vector<8x128xf32>
    %354 = arith.select %348, %345, %353 : vector<8x128xi1>, vector<8x128xf32>
    %355 = arith.index_cast %c6_i32 : i32 to index
    %c0_142 = arith.constant 0 : index
    %c0_143 = arith.constant 0 : index
    %356 = vector.load %arg8[%355, %c0_142, %c0_143] : memref<8x8x128xf32, #tpu.memory_space<vmem>>, vector<1x8x128xf32>
    %357 = vector.shape_cast %356 : vector<1x8x128xf32> to vector<8x128xf32>
    %358 = vector.shape_cast %354 : vector<8x128xf32> to vector<1x8x128xf32>
    tpu.vector_store %arg8[%355, %c0_142, %c0_143], %358 {strides = array<i32>} : memref<8x8x128xf32, #tpu.memory_space<vmem>>, vector<1x8x128xf32>,
    %c7_i32 = arith.constant 7 : i32
    %c0_144 = arith.constant 0 : index
    %c0_145 = arith.constant 0 : index
    %c0_146 = arith.constant 0 : index
    %359 = vector.load %arg10[%c0_144, %c0_145, %c0_146] : memref<2x8x128xf32, #tpu.memory_space<vmem>>, vector<1x8x128xf32>
    %360 = vector.shape_cast %359 : vector<1x8x128xf32> to vector<8x128xf32>
    %c0_147 = arith.constant 0 : index
    %c0_148 = arith.constant 0 : index
    %c0_149 = arith.constant 0 : index
    %361 = vector.load %arg4[%c0_147, %c0_148, %c0_149] : memref<2x128x384xf32, #tpu.memory_space<vmem>>, vector<1x128x384xf32>
    %362 = vector.shape_cast %361 : vector<1x128x384xf32> to vector<128x384xf32>
    %cst_150 = arith.constant dense<0.000000e+00> : vector<8x384xf32>
    %363 = tpu.matmul %360, %362, %cst_150 {dimension_numbers = #tpu.dot_dimension_numbers<[1], [0], [0], [1], [0, 0, 1, 1], [], []>} : vector<8x128xf32>, vector<128x384xf32>, vector<8x384xf32> -> vector<8x384xf32>
    %364 = arith.index_cast %c7_i32 : i32 to index
    %c0_151 = arith.constant 0 : index
    %c0_152 = arith.constant 0 : index
    %365 = vector.load %arg11[%364, %c0_151, %c0_152] : memref<8x8x384xf32, #tpu.memory_space<vmem>>, vector<1x8x384xf32>
    %366 = vector.shape_cast %365 : vector<1x8x384xf32> to vector<8x384xf32>
    %367 = vector.extract_strided_slice %366 {offsets = [0, 0], sizes = [8, 128], strides = [1, 1]} : vector<8x384xf32> to vector<8x128xf32>
    %368 = vector.extract_strided_slice %366 {offsets = [0, 128], sizes = [8, 128], strides = [1, 1]} : vector<8x384xf32> to vector<8x128xf32>
    %369 = vector.extract_strided_slice %366 {offsets = [0, 256], sizes = [8, 128], strides = [1, 1]} : vector<8x384xf32> to vector<8x128xf32>
    %370 = vector.extract_strided_slice %363 {offsets = [0, 0], sizes = [8, 128], strides = [1, 1]} : vector<8x384xf32> to vector<8x128xf32>
    %371 = vector.extract_strided_slice %363 {offsets = [0, 128], sizes = [8, 128], strides = [1, 1]} : vector<8x384xf32> to vector<8x128xf32>
    %372 = vector.extract_strided_slice %363 {offsets = [0, 256], sizes = [8, 128], strides = [1, 1]} : vector<8x384xf32> to vector<8x128xf32>
    %373 = arith.addf %372, %22 : vector<8x128xf32>
    %374 = arith.addf %367, %370 : vector<8x128xf32>
    %375 = arith.negf %374 : vector<8x128xf32>
    %376 = math.exp %375 : vector<8x128xf32>
    %cst_153 = arith.constant 1.000000e+00 : f32
    %377 = vector.broadcast %cst_153 : f32 to vector<8x128xf32>
    %378 = arith.addf %377, %376 : vector<8x128xf32>
    %379 = arith.divf %377, %378 : vector<8x128xf32>
    %380 = arith.addf %368, %371 : vector<8x128xf32>
    %381 = arith.negf %380 : vector<8x128xf32>
    %382 = math.exp %381 : vector<8x128xf32>
    %cst_154 = arith.constant 1.000000e+00 : f32
    %383 = vector.broadcast %cst_154 : f32 to vector<8x128xf32>
    %384 = arith.addf %383, %382 : vector<8x128xf32>
    %385 = arith.divf %383, %384 : vector<8x128xf32>
    %386 = arith.mulf %379, %373 : vector<8x128xf32>
    %387 = arith.addf %369, %386 : vector<8x128xf32>
    %388 = math.tanh %387 : vector<8x128xf32>
    %cst_155 = arith.constant 1.000000e+00 : f32
    %389 = vector.broadcast %cst_155 : f32 to vector<8x128xf32>
    %390 = arith.subf %389, %385 : vector<8x128xf32>
    %391 = arith.mulf %390, %388 : vector<8x128xf32>
    %392 = arith.mulf %385, %360 : vector<8x128xf32>
    %393 = arith.addf %391, %392 : vector<8x128xf32>
    %394 = arith.addi %7, %c7_i32 : i32
    %395 = vector.broadcast %394 : i32 to vector<8x128xi32>
    %396 = arith.cmpi slt, %395, %6 : vector<8x128xi32>
    %397 = arith.select %396, %393, %360 : vector<8x128xi1>, vector<8x128xf32>
    %c0_156 = arith.constant 0 : index
    %c0_157 = arith.constant 0 : index
    %c0_158 = arith.constant 0 : index
    %398 = vector.load %arg10[%c0_156, %c0_157, %c0_158] : memref<2x8x128xf32, #tpu.memory_space<vmem>>, vector<1x8x128xf32>
    %399 = vector.shape_cast %398 : vector<1x8x128xf32> to vector<8x128xf32>
    %400 = vector.shape_cast %397 : vector<8x128xf32> to vector<1x8x128xf32>
    tpu.vector_store %arg10[%c0_156, %c0_157, %c0_158], %400 {strides = array<i32>} : memref<2x8x128xf32, #tpu.memory_space<vmem>>, vector<1x8x128xf32>,
    %cst_159 = arith.constant 0.000000e+00 : f32
    %401 = vector.broadcast %cst_159 : f32 to vector<8x128xf32>
    %402 = arith.select %396, %393, %401 : vector<8x128xi1>, vector<8x128xf32>
    %403 = arith.index_cast %c7_i32 : i32 to index
    %c0_160 = arith.constant 0 : index
    %c0_161 = arith.constant 0 : index
    %404 = vector.load %arg8[%403, %c0_160, %c0_161] : memref<8x8x128xf32, #tpu.memory_space<vmem>>, vector<1x8x128xf32>
    %405 = vector.shape_cast %404 : vector<1x8x128xf32> to vector<8x128xf32>
    %406 = vector.shape_cast %402 : vector<8x128xf32> to vector<1x8x128xf32>
    tpu.vector_store %arg8[%403, %c0_160, %c0_161], %406 {strides = array<i32>} : memref<8x8x128xf32, #tpu.memory_space<vmem>>, vector<1x8x128xf32>,
    %c8_i32_162 = arith.constant 8 : i32
    %c0_163 = arith.constant 0 : index
    %c0_164 = arith.constant 0 : index
    %c0_165 = arith.constant 0 : index
    %407 = vector.load %arg8[%c0_163, %c0_164, %c0_165] : memref<8x8x128xf32, #tpu.memory_space<vmem>>, vector<8x8x128xf32>
    %408 = vector.shape_cast %407 : vector<8x8x128xf32> to vector<64x128xf32>
    %c1 = arith.constant 1 : index
    %c0_166 = arith.constant 0 : index
    %c0_167 = arith.constant 0 : index
    %409 = vector.load %arg3[%c1, %c0_166, %c0_167] : memref<2x128x384xf32, #tpu.memory_space<vmem>>, vector<1x128x384xf32>
    %410 = vector.shape_cast %409 : vector<1x128x384xf32> to vector<128x384xf32>
    %cst_168 = arith.constant dense<0.000000e+00> : vector<64x384xf32>
    %411 = tpu.matmul %408, %410, %cst_168 {dimension_numbers = #tpu.dot_dimension_numbers<[1], [0], [0], [1], [0, 0, 1, 1], [], []>} : vector<64x128xf32>, vector<128x384xf32>, vector<64x384xf32> -> vector<64x384xf32>
    %c1_169 = arith.constant 1 : index
    %c0_170 = arith.constant 0 : index
    %c0_171 = arith.constant 0 : index
    %412 = vector.load %arg5[%c1_169, %c0_170, %c0_171] : memref<2x1x384xf32, #tpu.memory_space<vmem>>, vector<1x1x384xf32>
    %413 = vector.shape_cast %412 : vector<1x1x384xf32> to vector<1x384xf32>
    %414 = vector.broadcast %413 : vector<1x384xf32> to vector<64x384xf32>
    %415 = arith.addf %411, %414 : vector<64x384xf32>
    %416 = vector.shape_cast %415 : vector<64x384xf32> to vector<8x8x384xf32>
    %c0_172 = arith.constant 0 : index
    %c0_173 = arith.constant 0 : index
    %c0_174 = arith.constant 0 : index
    %417 = vector.load %arg11[%c0_172, %c0_173, %c0_174] : memref<8x8x384xf32, #tpu.memory_space<vmem>>, vector<8x8x384xf32>
    tpu.vector_store %arg11[%c0_172, %c0_173, %c0_174], %416 {strides = array<i32>} : memref<8x8x384xf32, #tpu.memory_space<vmem>>, vector<8x8x384xf32>,
    %c1_175 = arith.constant 1 : index
    %c0_176 = arith.constant 0 : index
    %c0_177 = arith.constant 0 : index
    %418 = vector.load %arg6[%c1_175, %c0_176, %c0_177] : memref<2x1x128xf32, #tpu.memory_space<vmem>>, vector<1x1x128xf32>
    %419 = vector.shape_cast %418 : vector<1x1x128xf32> to vector<1x128xf32>
    %420 = vector.shape_cast %419 : vector<1x128xf32> to vector<1x128xf32>
    %421 = vector.broadcast %420 : vector<1x128xf32> to vector<8x128xf32>
    %c0_i32_178 = arith.constant 0 : i32
    %c1_179 = arith.constant 1 : index
    %c0_180 = arith.constant 0 : index
    %c0_181 = arith.constant 0 : index
    %422 = vector.load %arg10[%c1_179, %c0_180, %c0_181] : memref<2x8x128xf32, #tpu.memory_space<vmem>>, vector<1x8x128xf32>
    %423 = vector.shape_cast %422 : vector<1x8x128xf32> to vector<8x128xf32>
    %c1_182 = arith.constant 1 : index
    %c0_183 = arith.constant 0 : index
    %c0_184 = arith.constant 0 : index
    %424 = vector.load %arg4[%c1_182, %c0_183, %c0_184] : memref<2x128x384xf32, #tpu.memory_space<vmem>>, vector<1x128x384xf32>
    %425 = vector.shape_cast %424 : vector<1x128x384xf32> to vector<128x384xf32>
    %cst_185 = arith.constant dense<0.000000e+00> : vector<8x384xf32>
    %426 = tpu.matmul %423, %425, %cst_185 {dimension_numbers = #tpu.dot_dimension_numbers<[1], [0], [0], [1], [0, 0, 1, 1], [], []>} : vector<8x128xf32>, vector<128x384xf32>, vector<8x384xf32> -> vector<8x384xf32>
    %427 = arith.index_cast %c0_i32_178 : i32 to index
    %c0_186 = arith.constant 0 : index
    %c0_187 = arith.constant 0 : index
    %428 = vector.load %arg11[%427, %c0_186, %c0_187] : memref<8x8x384xf32, #tpu.memory_space<vmem>>, vector<1x8x384xf32>
    %429 = vector.shape_cast %428 : vector<1x8x384xf32> to vector<8x384xf32>
    %430 = vector.extract_strided_slice %429 {offsets = [0, 0], sizes = [8, 128], strides = [1, 1]} : vector<8x384xf32> to vector<8x128xf32>
    %431 = vector.extract_strided_slice %429 {offsets = [0, 128], sizes = [8, 128], strides = [1, 1]} : vector<8x384xf32> to vector<8x128xf32>
    %432 = vector.extract_strided_slice %429 {offsets = [0, 256], sizes = [8, 128], strides = [1, 1]} : vector<8x384xf32> to vector<8x128xf32>
    %433 = vector.extract_strided_slice %426 {offsets = [0, 0], sizes = [8, 128], strides = [1, 1]} : vector<8x384xf32> to vector<8x128xf32>
    %434 = vector.extract_strided_slice %426 {offsets = [0, 128], sizes = [8, 128], strides = [1, 1]} : vector<8x384xf32> to vector<8x128xf32>
    %435 = vector.extract_strided_slice %426 {offsets = [0, 256], sizes = [8, 128], strides = [1, 1]} : vector<8x384xf32> to vector<8x128xf32>
    %436 = arith.addf %435, %421 : vector<8x128xf32>
    %437 = arith.addf %430, %433 : vector<8x128xf32>
    %438 = arith.negf %437 : vector<8x128xf32>
    %439 = math.exp %438 : vector<8x128xf32>
    %cst_188 = arith.constant 1.000000e+00 : f32
    %440 = vector.broadcast %cst_188 : f32 to vector<8x128xf32>
    %441 = arith.addf %440, %439 : vector<8x128xf32>
    %442 = arith.divf %440, %441 : vector<8x128xf32>
    %443 = arith.addf %431, %434 : vector<8x128xf32>
    %444 = arith.negf %443 : vector<8x128xf32>
    %445 = math.exp %444 : vector<8x128xf32>
    %cst_189 = arith.constant 1.000000e+00 : f32
    %446 = vector.broadcast %cst_189 : f32 to vector<8x128xf32>
    %447 = arith.addf %446, %445 : vector<8x128xf32>
    %448 = arith.divf %446, %447 : vector<8x128xf32>
    %449 = arith.mulf %442, %436 : vector<8x128xf32>
    %450 = arith.addf %432, %449 : vector<8x128xf32>
    %451 = math.tanh %450 : vector<8x128xf32>
    %cst_190 = arith.constant 1.000000e+00 : f32
    %452 = vector.broadcast %cst_190 : f32 to vector<8x128xf32>
    %453 = arith.subf %452, %448 : vector<8x128xf32>
    %454 = arith.mulf %453, %451 : vector<8x128xf32>
    %455 = arith.mulf %448, %423 : vector<8x128xf32>
    %456 = arith.addf %454, %455 : vector<8x128xf32>
    %457 = arith.addi %7, %c0_i32_178 : i32
    %458 = vector.broadcast %457 : i32 to vector<8x128xi32>
    %459 = arith.cmpi slt, %458, %6 : vector<8x128xi32>
    %460 = arith.select %459, %456, %423 : vector<8x128xi1>, vector<8x128xf32>
    %c1_191 = arith.constant 1 : index
    %c0_192 = arith.constant 0 : index
    %c0_193 = arith.constant 0 : index
    %461 = vector.load %arg10[%c1_191, %c0_192, %c0_193] : memref<2x8x128xf32, #tpu.memory_space<vmem>>, vector<1x8x128xf32>
    %462 = vector.shape_cast %461 : vector<1x8x128xf32> to vector<8x128xf32>
    %463 = vector.shape_cast %460 : vector<8x128xf32> to vector<1x8x128xf32>
    tpu.vector_store %arg10[%c1_191, %c0_192, %c0_193], %463 {strides = array<i32>} : memref<2x8x128xf32, #tpu.memory_space<vmem>>, vector<1x8x128xf32>,
    %cst_194 = arith.constant 0.000000e+00 : f32
    %464 = vector.broadcast %cst_194 : f32 to vector<8x128xf32>
    %465 = arith.select %459, %456, %464 : vector<8x128xi1>, vector<8x128xf32>
    %466 = arith.index_cast %c0_i32_178 : i32 to index
    %c0_195 = arith.constant 0 : index
    %c0_196 = arith.constant 0 : index
    %467 = vector.load %arg8[%466, %c0_195, %c0_196] : memref<8x8x128xf32, #tpu.memory_space<vmem>>, vector<1x8x128xf32>
    %468 = vector.shape_cast %467 : vector<1x8x128xf32> to vector<8x128xf32>
    %469 = vector.shape_cast %465 : vector<8x128xf32> to vector<1x8x128xf32>
    tpu.vector_store %arg8[%466, %c0_195, %c0_196], %469 {strides = array<i32>} : memref<8x8x128xf32, #tpu.memory_space<vmem>>, vector<1x8x128xf32>,
    %c1_i32_197 = arith.constant 1 : i32
    %c1_198 = arith.constant 1 : index
    %c0_199 = arith.constant 0 : index
    %c0_200 = arith.constant 0 : index
    %470 = vector.load %arg10[%c1_198, %c0_199, %c0_200] : memref<2x8x128xf32, #tpu.memory_space<vmem>>, vector<1x8x128xf32>
    %471 = vector.shape_cast %470 : vector<1x8x128xf32> to vector<8x128xf32>
    %c1_201 = arith.constant 1 : index
    %c0_202 = arith.constant 0 : index
    %c0_203 = arith.constant 0 : index
    %472 = vector.load %arg4[%c1_201, %c0_202, %c0_203] : memref<2x128x384xf32, #tpu.memory_space<vmem>>, vector<1x128x384xf32>
    %473 = vector.shape_cast %472 : vector<1x128x384xf32> to vector<128x384xf32>
    %cst_204 = arith.constant dense<0.000000e+00> : vector<8x384xf32>
    %474 = tpu.matmul %471, %473, %cst_204 {dimension_numbers = #tpu.dot_dimension_numbers<[1], [0], [0], [1], [0, 0, 1, 1], [], []>} : vector<8x128xf32>, vector<128x384xf32>, vector<8x384xf32> -> vector<8x384xf32>
    %475 = arith.index_cast %c1_i32_197 : i32 to index
    %c0_205 = arith.constant 0 : index
    %c0_206 = arith.constant 0 : index
    %476 = vector.load %arg11[%475, %c0_205, %c0_206] : memref<8x8x384xf32, #tpu.memory_space<vmem>>, vector<1x8x384xf32>
    %477 = vector.shape_cast %476 : vector<1x8x384xf32> to vector<8x384xf32>
    %478 = vector.extract_strided_slice %477 {offsets = [0, 0], sizes = [8, 128], strides = [1, 1]} : vector<8x384xf32> to vector<8x128xf32>
    %479 = vector.extract_strided_slice %477 {offsets = [0, 128], sizes = [8, 128], strides = [1, 1]} : vector<8x384xf32> to vector<8x128xf32>
    %480 = vector.extract_strided_slice %477 {offsets = [0, 256], sizes = [8, 128], strides = [1, 1]} : vector<8x384xf32> to vector<8x128xf32>
    %481 = vector.extract_strided_slice %474 {offsets = [0, 0], sizes = [8, 128], strides = [1, 1]} : vector<8x384xf32> to vector<8x128xf32>
    %482 = vector.extract_strided_slice %474 {offsets = [0, 128], sizes = [8, 128], strides = [1, 1]} : vector<8x384xf32> to vector<8x128xf32>
    %483 = vector.extract_strided_slice %474 {offsets = [0, 256], sizes = [8, 128], strides = [1, 1]} : vector<8x384xf32> to vector<8x128xf32>
    %484 = arith.addf %483, %421 : vector<8x128xf32>
    %485 = arith.addf %478, %481 : vector<8x128xf32>
    %486 = arith.negf %485 : vector<8x128xf32>
    %487 = math.exp %486 : vector<8x128xf32>
    %cst_207 = arith.constant 1.000000e+00 : f32
    %488 = vector.broadcast %cst_207 : f32 to vector<8x128xf32>
    %489 = arith.addf %488, %487 : vector<8x128xf32>
    %490 = arith.divf %488, %489 : vector<8x128xf32>
    %491 = arith.addf %479, %482 : vector<8x128xf32>
    %492 = arith.negf %491 : vector<8x128xf32>
    %493 = math.exp %492 : vector<8x128xf32>
    %cst_208 = arith.constant 1.000000e+00 : f32
    %494 = vector.broadcast %cst_208 : f32 to vector<8x128xf32>
    %495 = arith.addf %494, %493 : vector<8x128xf32>
    %496 = arith.divf %494, %495 : vector<8x128xf32>
    %497 = arith.mulf %490, %484 : vector<8x128xf32>
    %498 = arith.addf %480, %497 : vector<8x128xf32>
    %499 = math.tanh %498 : vector<8x128xf32>
    %cst_209 = arith.constant 1.000000e+00 : f32
    %500 = vector.broadcast %cst_209 : f32 to vector<8x128xf32>
    %501 = arith.subf %500, %496 : vector<8x128xf32>
    %502 = arith.mulf %501, %499 : vector<8x128xf32>
    %503 = arith.mulf %496, %471 : vector<8x128xf32>
    %504 = arith.addf %502, %503 : vector<8x128xf32>
    %505 = arith.addi %7, %c1_i32_197 : i32
    %506 = vector.broadcast %505 : i32 to vector<8x128xi32>
    %507 = arith.cmpi slt, %506, %6 : vector<8x128xi32>
    %508 = arith.select %507, %504, %471 : vector<8x128xi1>, vector<8x128xf32>
    %c1_210 = arith.constant 1 : index
    %c0_211 = arith.constant 0 : index
    %c0_212 = arith.constant 0 : index
    %509 = vector.load %arg10[%c1_210, %c0_211, %c0_212] : memref<2x8x128xf32, #tpu.memory_space<vmem>>, vector<1x8x128xf32>
    %510 = vector.shape_cast %509 : vector<1x8x128xf32> to vector<8x128xf32>
    %511 = vector.shape_cast %508 : vector<8x128xf32> to vector<1x8x128xf32>
    tpu.vector_store %arg10[%c1_210, %c0_211, %c0_212], %511 {strides = array<i32>} : memref<2x8x128xf32, #tpu.memory_space<vmem>>, vector<1x8x128xf32>,
    %cst_213 = arith.constant 0.000000e+00 : f32
    %512 = vector.broadcast %cst_213 : f32 to vector<8x128xf32>
    %513 = arith.select %507, %504, %512 : vector<8x128xi1>, vector<8x128xf32>
    %514 = arith.index_cast %c1_i32_197 : i32 to index
    %c0_214 = arith.constant 0 : index
    %c0_215 = arith.constant 0 : index
    %515 = vector.load %arg8[%514, %c0_214, %c0_215] : memref<8x8x128xf32, #tpu.memory_space<vmem>>, vector<1x8x128xf32>
    %516 = vector.shape_cast %515 : vector<1x8x128xf32> to vector<8x128xf32>
    %517 = vector.shape_cast %513 : vector<8x128xf32> to vector<1x8x128xf32>
    tpu.vector_store %arg8[%514, %c0_214, %c0_215], %517 {strides = array<i32>} : memref<8x8x128xf32, #tpu.memory_space<vmem>>, vector<1x8x128xf32>,
    %c2_i32_216 = arith.constant 2 : i32
    %c1_217 = arith.constant 1 : index
    %c0_218 = arith.constant 0 : index
    %c0_219 = arith.constant 0 : index
    %518 = vector.load %arg10[%c1_217, %c0_218, %c0_219] : memref<2x8x128xf32, #tpu.memory_space<vmem>>, vector<1x8x128xf32>
    %519 = vector.shape_cast %518 : vector<1x8x128xf32> to vector<8x128xf32>
    %c1_220 = arith.constant 1 : index
    %c0_221 = arith.constant 0 : index
    %c0_222 = arith.constant 0 : index
    %520 = vector.load %arg4[%c1_220, %c0_221, %c0_222] : memref<2x128x384xf32, #tpu.memory_space<vmem>>, vector<1x128x384xf32>
    %521 = vector.shape_cast %520 : vector<1x128x384xf32> to vector<128x384xf32>
    %cst_223 = arith.constant dense<0.000000e+00> : vector<8x384xf32>
    %522 = tpu.matmul %519, %521, %cst_223 {dimension_numbers = #tpu.dot_dimension_numbers<[1], [0], [0], [1], [0, 0, 1, 1], [], []>} : vector<8x128xf32>, vector<128x384xf32>, vector<8x384xf32> -> vector<8x384xf32>
    %523 = arith.index_cast %c2_i32_216 : i32 to index
    %c0_224 = arith.constant 0 : index
    %c0_225 = arith.constant 0 : index
    %524 = vector.load %arg11[%523, %c0_224, %c0_225] : memref<8x8x384xf32, #tpu.memory_space<vmem>>, vector<1x8x384xf32>
    %525 = vector.shape_cast %524 : vector<1x8x384xf32> to vector<8x384xf32>
    %526 = vector.extract_strided_slice %525 {offsets = [0, 0], sizes = [8, 128], strides = [1, 1]} : vector<8x384xf32> to vector<8x128xf32>
    %527 = vector.extract_strided_slice %525 {offsets = [0, 128], sizes = [8, 128], strides = [1, 1]} : vector<8x384xf32> to vector<8x128xf32>
    %528 = vector.extract_strided_slice %525 {offsets = [0, 256], sizes = [8, 128], strides = [1, 1]} : vector<8x384xf32> to vector<8x128xf32>
    %529 = vector.extract_strided_slice %522 {offsets = [0, 0], sizes = [8, 128], strides = [1, 1]} : vector<8x384xf32> to vector<8x128xf32>
    %530 = vector.extract_strided_slice %522 {offsets = [0, 128], sizes = [8, 128], strides = [1, 1]} : vector<8x384xf32> to vector<8x128xf32>
    %531 = vector.extract_strided_slice %522 {offsets = [0, 256], sizes = [8, 128], strides = [1, 1]} : vector<8x384xf32> to vector<8x128xf32>
    %532 = arith.addf %531, %421 : vector<8x128xf32>
    %533 = arith.addf %526, %529 : vector<8x128xf32>
    %534 = arith.negf %533 : vector<8x128xf32>
    %535 = math.exp %534 : vector<8x128xf32>
    %cst_226 = arith.constant 1.000000e+00 : f32
    %536 = vector.broadcast %cst_226 : f32 to vector<8x128xf32>
    %537 = arith.addf %536, %535 : vector<8x128xf32>
    %538 = arith.divf %536, %537 : vector<8x128xf32>
    %539 = arith.addf %527, %530 : vector<8x128xf32>
    %540 = arith.negf %539 : vector<8x128xf32>
    %541 = math.exp %540 : vector<8x128xf32>
    %cst_227 = arith.constant 1.000000e+00 : f32
    %542 = vector.broadcast %cst_227 : f32 to vector<8x128xf32>
    %543 = arith.addf %542, %541 : vector<8x128xf32>
    %544 = arith.divf %542, %543 : vector<8x128xf32>
    %545 = arith.mulf %538, %532 : vector<8x128xf32>
    %546 = arith.addf %528, %545 : vector<8x128xf32>
    %547 = math.tanh %546 : vector<8x128xf32>
    %cst_228 = arith.constant 1.000000e+00 : f32
    %548 = vector.broadcast %cst_228 : f32 to vector<8x128xf32>
    %549 = arith.subf %548, %544 : vector<8x128xf32>
    %550 = arith.mulf %549, %547 : vector<8x128xf32>
    %551 = arith.mulf %544, %519 : vector<8x128xf32>
    %552 = arith.addf %550, %551 : vector<8x128xf32>
    %553 = arith.addi %7, %c2_i32_216 : i32
    %554 = vector.broadcast %553 : i32 to vector<8x128xi32>
    %555 = arith.cmpi slt, %554, %6 : vector<8x128xi32>
    %556 = arith.select %555, %552, %519 : vector<8x128xi1>, vector<8x128xf32>
    %c1_229 = arith.constant 1 : index
    %c0_230 = arith.constant 0 : index
    %c0_231 = arith.constant 0 : index
    %557 = vector.load %arg10[%c1_229, %c0_230, %c0_231] : memref<2x8x128xf32, #tpu.memory_space<vmem>>, vector<1x8x128xf32>
    %558 = vector.shape_cast %557 : vector<1x8x128xf32> to vector<8x128xf32>
    %559 = vector.shape_cast %556 : vector<8x128xf32> to vector<1x8x128xf32>
    tpu.vector_store %arg10[%c1_229, %c0_230, %c0_231], %559 {strides = array<i32>} : memref<2x8x128xf32, #tpu.memory_space<vmem>>, vector<1x8x128xf32>,
    %cst_232 = arith.constant 0.000000e+00 : f32
    %560 = vector.broadcast %cst_232 : f32 to vector<8x128xf32>
    %561 = arith.select %555, %552, %560 : vector<8x128xi1>, vector<8x128xf32>
    %562 = arith.index_cast %c2_i32_216 : i32 to index
    %c0_233 = arith.constant 0 : index
    %c0_234 = arith.constant 0 : index
    %563 = vector.load %arg8[%562, %c0_233, %c0_234] : memref<8x8x128xf32, #tpu.memory_space<vmem>>, vector<1x8x128xf32>
    %564 = vector.shape_cast %563 : vector<1x8x128xf32> to vector<8x128xf32>
    %565 = vector.shape_cast %561 : vector<8x128xf32> to vector<1x8x128xf32>
    tpu.vector_store %arg8[%562, %c0_233, %c0_234], %565 {strides = array<i32>} : memref<8x8x128xf32, #tpu.memory_space<vmem>>, vector<1x8x128xf32>,
    %c3_i32_235 = arith.constant 3 : i32
    %c1_236 = arith.constant 1 : index
    %c0_237 = arith.constant 0 : index
    %c0_238 = arith.constant 0 : index
    %566 = vector.load %arg10[%c1_236, %c0_237, %c0_238] : memref<2x8x128xf32, #tpu.memory_space<vmem>>, vector<1x8x128xf32>
    %567 = vector.shape_cast %566 : vector<1x8x128xf32> to vector<8x128xf32>
    %c1_239 = arith.constant 1 : index
    %c0_240 = arith.constant 0 : index
    %c0_241 = arith.constant 0 : index
    %568 = vector.load %arg4[%c1_239, %c0_240, %c0_241] : memref<2x128x384xf32, #tpu.memory_space<vmem>>, vector<1x128x384xf32>
    %569 = vector.shape_cast %568 : vector<1x128x384xf32> to vector<128x384xf32>
    %cst_242 = arith.constant dense<0.000000e+00> : vector<8x384xf32>
    %570 = tpu.matmul %567, %569, %cst_242 {dimension_numbers = #tpu.dot_dimension_numbers<[1], [0], [0], [1], [0, 0, 1, 1], [], []>} : vector<8x128xf32>, vector<128x384xf32>, vector<8x384xf32> -> vector<8x384xf32>
    %571 = arith.index_cast %c3_i32_235 : i32 to index
    %c0_243 = arith.constant 0 : index
    %c0_244 = arith.constant 0 : index
    %572 = vector.load %arg11[%571, %c0_243, %c0_244] : memref<8x8x384xf32, #tpu.memory_space<vmem>>, vector<1x8x384xf32>
    %573 = vector.shape_cast %572 : vector<1x8x384xf32> to vector<8x384xf32>
    %574 = vector.extract_strided_slice %573 {offsets = [0, 0], sizes = [8, 128], strides = [1, 1]} : vector<8x384xf32> to vector<8x128xf32>
    %575 = vector.extract_strided_slice %573 {offsets = [0, 128], sizes = [8, 128], strides = [1, 1]} : vector<8x384xf32> to vector<8x128xf32>
    %576 = vector.extract_strided_slice %573 {offsets = [0, 256], sizes = [8, 128], strides = [1, 1]} : vector<8x384xf32> to vector<8x128xf32>
    %577 = vector.extract_strided_slice %570 {offsets = [0, 0], sizes = [8, 128], strides = [1, 1]} : vector<8x384xf32> to vector<8x128xf32>
    %578 = vector.extract_strided_slice %570 {offsets = [0, 128], sizes = [8, 128], strides = [1, 1]} : vector<8x384xf32> to vector<8x128xf32>
    %579 = vector.extract_strided_slice %570 {offsets = [0, 256], sizes = [8, 128], strides = [1, 1]} : vector<8x384xf32> to vector<8x128xf32>
    %580 = arith.addf %579, %421 : vector<8x128xf32>
    %581 = arith.addf %574, %577 : vector<8x128xf32>
    %582 = arith.negf %581 : vector<8x128xf32>
    %583 = math.exp %582 : vector<8x128xf32>
    %cst_245 = arith.constant 1.000000e+00 : f32
    %584 = vector.broadcast %cst_245 : f32 to vector<8x128xf32>
    %585 = arith.addf %584, %583 : vector<8x128xf32>
    %586 = arith.divf %584, %585 : vector<8x128xf32>
    %587 = arith.addf %575, %578 : vector<8x128xf32>
    %588 = arith.negf %587 : vector<8x128xf32>
    %589 = math.exp %588 : vector<8x128xf32>
    %cst_246 = arith.constant 1.000000e+00 : f32
    %590 = vector.broadcast %cst_246 : f32 to vector<8x128xf32>
    %591 = arith.addf %590, %589 : vector<8x128xf32>
    %592 = arith.divf %590, %591 : vector<8x128xf32>
    %593 = arith.mulf %586, %580 : vector<8x128xf32>
    %594 = arith.addf %576, %593 : vector<8x128xf32>
    %595 = math.tanh %594 : vector<8x128xf32>
    %cst_247 = arith.constant 1.000000e+00 : f32
    %596 = vector.broadcast %cst_247 : f32 to vector<8x128xf32>
    %597 = arith.subf %596, %592 : vector<8x128xf32>
    %598 = arith.mulf %597, %595 : vector<8x128xf32>
    %599 = arith.mulf %592, %567 : vector<8x128xf32>
    %600 = arith.addf %598, %599 : vector<8x128xf32>
    %601 = arith.addi %7, %c3_i32_235 : i32
    %602 = vector.broadcast %601 : i32 to vector<8x128xi32>
    %603 = arith.cmpi slt, %602, %6 : vector<8x128xi32>
    %604 = arith.select %603, %600, %567 : vector<8x128xi1>, vector<8x128xf32>
    %c1_248 = arith.constant 1 : index
    %c0_249 = arith.constant 0 : index
    %c0_250 = arith.constant 0 : index
    %605 = vector.load %arg10[%c1_248, %c0_249, %c0_250] : memref<2x8x128xf32, #tpu.memory_space<vmem>>, vector<1x8x128xf32>
    %606 = vector.shape_cast %605 : vector<1x8x128xf32> to vector<8x128xf32>
    %607 = vector.shape_cast %604 : vector<8x128xf32> to vector<1x8x128xf32>
    tpu.vector_store %arg10[%c1_248, %c0_249, %c0_250], %607 {strides = array<i32>} : memref<2x8x128xf32, #tpu.memory_space<vmem>>, vector<1x8x128xf32>,
    %cst_251 = arith.constant 0.000000e+00 : f32
    %608 = vector.broadcast %cst_251 : f32 to vector<8x128xf32>
    %609 = arith.select %603, %600, %608 : vector<8x128xi1>, vector<8x128xf32>
    %610 = arith.index_cast %c3_i32_235 : i32 to index
    %c0_252 = arith.constant 0 : index
    %c0_253 = arith.constant 0 : index
    %611 = vector.load %arg8[%610, %c0_252, %c0_253] : memref<8x8x128xf32, #tpu.memory_space<vmem>>, vector<1x8x128xf32>
    %612 = vector.shape_cast %611 : vector<1x8x128xf32> to vector<8x128xf32>
    %613 = vector.shape_cast %609 : vector<8x128xf32> to vector<1x8x128xf32>
    tpu.vector_store %arg8[%610, %c0_252, %c0_253], %613 {strides = array<i32>} : memref<8x8x128xf32, #tpu.memory_space<vmem>>, vector<1x8x128xf32>,
    %c4_i32_254 = arith.constant 4 : i32
    %c1_255 = arith.constant 1 : index
    %c0_256 = arith.constant 0 : index
    %c0_257 = arith.constant 0 : index
    %614 = vector.load %arg10[%c1_255, %c0_256, %c0_257] : memref<2x8x128xf32, #tpu.memory_space<vmem>>, vector<1x8x128xf32>
    %615 = vector.shape_cast %614 : vector<1x8x128xf32> to vector<8x128xf32>
    %c1_258 = arith.constant 1 : index
    %c0_259 = arith.constant 0 : index
    %c0_260 = arith.constant 0 : index
    %616 = vector.load %arg4[%c1_258, %c0_259, %c0_260] : memref<2x128x384xf32, #tpu.memory_space<vmem>>, vector<1x128x384xf32>
    %617 = vector.shape_cast %616 : vector<1x128x384xf32> to vector<128x384xf32>
    %cst_261 = arith.constant dense<0.000000e+00> : vector<8x384xf32>
    %618 = tpu.matmul %615, %617, %cst_261 {dimension_numbers = #tpu.dot_dimension_numbers<[1], [0], [0], [1], [0, 0, 1, 1], [], []>} : vector<8x128xf32>, vector<128x384xf32>, vector<8x384xf32> -> vector<8x384xf32>
    %619 = arith.index_cast %c4_i32_254 : i32 to index
    %c0_262 = arith.constant 0 : index
    %c0_263 = arith.constant 0 : index
    %620 = vector.load %arg11[%619, %c0_262, %c0_263] : memref<8x8x384xf32, #tpu.memory_space<vmem>>, vector<1x8x384xf32>
    %621 = vector.shape_cast %620 : vector<1x8x384xf32> to vector<8x384xf32>
    %622 = vector.extract_strided_slice %621 {offsets = [0, 0], sizes = [8, 128], strides = [1, 1]} : vector<8x384xf32> to vector<8x128xf32>
    %623 = vector.extract_strided_slice %621 {offsets = [0, 128], sizes = [8, 128], strides = [1, 1]} : vector<8x384xf32> to vector<8x128xf32>
    %624 = vector.extract_strided_slice %621 {offsets = [0, 256], sizes = [8, 128], strides = [1, 1]} : vector<8x384xf32> to vector<8x128xf32>
    %625 = vector.extract_strided_slice %618 {offsets = [0, 0], sizes = [8, 128], strides = [1, 1]} : vector<8x384xf32> to vector<8x128xf32>
    %626 = vector.extract_strided_slice %618 {offsets = [0, 128], sizes = [8, 128], strides = [1, 1]} : vector<8x384xf32> to vector<8x128xf32>
    %627 = vector.extract_strided_slice %618 {offsets = [0, 256], sizes = [8, 128], strides = [1, 1]} : vector<8x384xf32> to vector<8x128xf32>
    %628 = arith.addf %627, %421 : vector<8x128xf32>
    %629 = arith.addf %622, %625 : vector<8x128xf32>
    %630 = arith.negf %629 : vector<8x128xf32>
    %631 = math.exp %630 : vector<8x128xf32>
    %cst_264 = arith.constant 1.000000e+00 : f32
    %632 = vector.broadcast %cst_264 : f32 to vector<8x128xf32>
    %633 = arith.addf %632, %631 : vector<8x128xf32>
    %634 = arith.divf %632, %633 : vector<8x128xf32>
    %635 = arith.addf %623, %626 : vector<8x128xf32>
    %636 = arith.negf %635 : vector<8x128xf32>
    %637 = math.exp %636 : vector<8x128xf32>
    %cst_265 = arith.constant 1.000000e+00 : f32
    %638 = vector.broadcast %cst_265 : f32 to vector<8x128xf32>
    %639 = arith.addf %638, %637 : vector<8x128xf32>
    %640 = arith.divf %638, %639 : vector<8x128xf32>
    %641 = arith.mulf %634, %628 : vector<8x128xf32>
    %642 = arith.addf %624, %641 : vector<8x128xf32>
    %643 = math.tanh %642 : vector<8x128xf32>
    %cst_266 = arith.constant 1.000000e+00 : f32
    %644 = vector.broadcast %cst_266 : f32 to vector<8x128xf32>
    %645 = arith.subf %644, %640 : vector<8x128xf32>
    %646 = arith.mulf %645, %643 : vector<8x128xf32>
    %647 = arith.mulf %640, %615 : vector<8x128xf32>
    %648 = arith.addf %646, %647 : vector<8x128xf32>
    %649 = arith.addi %7, %c4_i32_254 : i32
    %650 = vector.broadcast %649 : i32 to vector<8x128xi32>
    %651 = arith.cmpi slt, %650, %6 : vector<8x128xi32>
    %652 = arith.select %651, %648, %615 : vector<8x128xi1>, vector<8x128xf32>
    %c1_267 = arith.constant 1 : index
    %c0_268 = arith.constant 0 : index
    %c0_269 = arith.constant 0 : index
    %653 = vector.load %arg10[%c1_267, %c0_268, %c0_269] : memref<2x8x128xf32, #tpu.memory_space<vmem>>, vector<1x8x128xf32>
    %654 = vector.shape_cast %653 : vector<1x8x128xf32> to vector<8x128xf32>
    %655 = vector.shape_cast %652 : vector<8x128xf32> to vector<1x8x128xf32>
    tpu.vector_store %arg10[%c1_267, %c0_268, %c0_269], %655 {strides = array<i32>} : memref<2x8x128xf32, #tpu.memory_space<vmem>>, vector<1x8x128xf32>,
    %cst_270 = arith.constant 0.000000e+00 : f32
    %656 = vector.broadcast %cst_270 : f32 to vector<8x128xf32>
    %657 = arith.select %651, %648, %656 : vector<8x128xi1>, vector<8x128xf32>
    %658 = arith.index_cast %c4_i32_254 : i32 to index
    %c0_271 = arith.constant 0 : index
    %c0_272 = arith.constant 0 : index
    %659 = vector.load %arg8[%658, %c0_271, %c0_272] : memref<8x8x128xf32, #tpu.memory_space<vmem>>, vector<1x8x128xf32>
    %660 = vector.shape_cast %659 : vector<1x8x128xf32> to vector<8x128xf32>
    %661 = vector.shape_cast %657 : vector<8x128xf32> to vector<1x8x128xf32>
    tpu.vector_store %arg8[%658, %c0_271, %c0_272], %661 {strides = array<i32>} : memref<8x8x128xf32, #tpu.memory_space<vmem>>, vector<1x8x128xf32>,
    %c5_i32_273 = arith.constant 5 : i32
    %c1_274 = arith.constant 1 : index
    %c0_275 = arith.constant 0 : index
    %c0_276 = arith.constant 0 : index
    %662 = vector.load %arg10[%c1_274, %c0_275, %c0_276] : memref<2x8x128xf32, #tpu.memory_space<vmem>>, vector<1x8x128xf32>
    %663 = vector.shape_cast %662 : vector<1x8x128xf32> to vector<8x128xf32>
    %c1_277 = arith.constant 1 : index
    %c0_278 = arith.constant 0 : index
    %c0_279 = arith.constant 0 : index
    %664 = vector.load %arg4[%c1_277, %c0_278, %c0_279] : memref<2x128x384xf32, #tpu.memory_space<vmem>>, vector<1x128x384xf32>
    %665 = vector.shape_cast %664 : vector<1x128x384xf32> to vector<128x384xf32>
    %cst_280 = arith.constant dense<0.000000e+00> : vector<8x384xf32>
    %666 = tpu.matmul %663, %665, %cst_280 {dimension_numbers = #tpu.dot_dimension_numbers<[1], [0], [0], [1], [0, 0, 1, 1], [], []>} : vector<8x128xf32>, vector<128x384xf32>, vector<8x384xf32> -> vector<8x384xf32>
    %667 = arith.index_cast %c5_i32_273 : i32 to index
    %c0_281 = arith.constant 0 : index
    %c0_282 = arith.constant 0 : index
    %668 = vector.load %arg11[%667, %c0_281, %c0_282] : memref<8x8x384xf32, #tpu.memory_space<vmem>>, vector<1x8x384xf32>
    %669 = vector.shape_cast %668 : vector<1x8x384xf32> to vector<8x384xf32>
    %670 = vector.extract_strided_slice %669 {offsets = [0, 0], sizes = [8, 128], strides = [1, 1]} : vector<8x384xf32> to vector<8x128xf32>
    %671 = vector.extract_strided_slice %669 {offsets = [0, 128], sizes = [8, 128], strides = [1, 1]} : vector<8x384xf32> to vector<8x128xf32>
    %672 = vector.extract_strided_slice %669 {offsets = [0, 256], sizes = [8, 128], strides = [1, 1]} : vector<8x384xf32> to vector<8x128xf32>
    %673 = vector.extract_strided_slice %666 {offsets = [0, 0], sizes = [8, 128], strides = [1, 1]} : vector<8x384xf32> to vector<8x128xf32>
    %674 = vector.extract_strided_slice %666 {offsets = [0, 128], sizes = [8, 128], strides = [1, 1]} : vector<8x384xf32> to vector<8x128xf32>
    %675 = vector.extract_strided_slice %666 {offsets = [0, 256], sizes = [8, 128], strides = [1, 1]} : vector<8x384xf32> to vector<8x128xf32>
    %676 = arith.addf %675, %421 : vector<8x128xf32>
    %677 = arith.addf %670, %673 : vector<8x128xf32>
    %678 = arith.negf %677 : vector<8x128xf32>
    %679 = math.exp %678 : vector<8x128xf32>
    %cst_283 = arith.constant 1.000000e+00 : f32
    %680 = vector.broadcast %cst_283 : f32 to vector<8x128xf32>
    %681 = arith.addf %680, %679 : vector<8x128xf32>
    %682 = arith.divf %680, %681 : vector<8x128xf32>
    %683 = arith.addf %671, %674 : vector<8x128xf32>
    %684 = arith.negf %683 : vector<8x128xf32>
    %685 = math.exp %684 : vector<8x128xf32>
    %cst_284 = arith.constant 1.000000e+00 : f32
    %686 = vector.broadcast %cst_284 : f32 to vector<8x128xf32>
    %687 = arith.addf %686, %685 : vector<8x128xf32>
    %688 = arith.divf %686, %687 : vector<8x128xf32>
    %689 = arith.mulf %682, %676 : vector<8x128xf32>
    %690 = arith.addf %672, %689 : vector<8x128xf32>
    %691 = math.tanh %690 : vector<8x128xf32>
    %cst_285 = arith.constant 1.000000e+00 : f32
    %692 = vector.broadcast %cst_285 : f32 to vector<8x128xf32>
    %693 = arith.subf %692, %688 : vector<8x128xf32>
    %694 = arith.mulf %693, %691 : vector<8x128xf32>
    %695 = arith.mulf %688, %663 : vector<8x128xf32>
    %696 = arith.addf %694, %695 : vector<8x128xf32>
    %697 = arith.addi %7, %c5_i32_273 : i32
    %698 = vector.broadcast %697 : i32 to vector<8x128xi32>
    %699 = arith.cmpi slt, %698, %6 : vector<8x128xi32>
    %700 = arith.select %699, %696, %663 : vector<8x128xi1>, vector<8x128xf32>
    %c1_286 = arith.constant 1 : index
    %c0_287 = arith.constant 0 : index
    %c0_288 = arith.constant 0 : index
    %701 = vector.load %arg10[%c1_286, %c0_287, %c0_288] : memref<2x8x128xf32, #tpu.memory_space<vmem>>, vector<1x8x128xf32>
    %702 = vector.shape_cast %701 : vector<1x8x128xf32> to vector<8x128xf32>
    %703 = vector.shape_cast %700 : vector<8x128xf32> to vector<1x8x128xf32>
    tpu.vector_store %arg10[%c1_286, %c0_287, %c0_288], %703 {strides = array<i32>} : memref<2x8x128xf32, #tpu.memory_space<vmem>>, vector<1x8x128xf32>,
    %cst_289 = arith.constant 0.000000e+00 : f32
    %704 = vector.broadcast %cst_289 : f32 to vector<8x128xf32>
    %705 = arith.select %699, %696, %704 : vector<8x128xi1>, vector<8x128xf32>
    %706 = arith.index_cast %c5_i32_273 : i32 to index
    %c0_290 = arith.constant 0 : index
    %c0_291 = arith.constant 0 : index
    %707 = vector.load %arg8[%706, %c0_290, %c0_291] : memref<8x8x128xf32, #tpu.memory_space<vmem>>, vector<1x8x128xf32>
    %708 = vector.shape_cast %707 : vector<1x8x128xf32> to vector<8x128xf32>
    %709 = vector.shape_cast %705 : vector<8x128xf32> to vector<1x8x128xf32>
    tpu.vector_store %arg8[%706, %c0_290, %c0_291], %709 {strides = array<i32>} : memref<8x8x128xf32, #tpu.memory_space<vmem>>, vector<1x8x128xf32>,
    %c6_i32_292 = arith.constant 6 : i32
    %c1_293 = arith.constant 1 : index
    %c0_294 = arith.constant 0 : index
    %c0_295 = arith.constant 0 : index
    %710 = vector.load %arg10[%c1_293, %c0_294, %c0_295] : memref<2x8x128xf32, #tpu.memory_space<vmem>>, vector<1x8x128xf32>
    %711 = vector.shape_cast %710 : vector<1x8x128xf32> to vector<8x128xf32>
    %c1_296 = arith.constant 1 : index
    %c0_297 = arith.constant 0 : index
    %c0_298 = arith.constant 0 : index
    %712 = vector.load %arg4[%c1_296, %c0_297, %c0_298] : memref<2x128x384xf32, #tpu.memory_space<vmem>>, vector<1x128x384xf32>
    %713 = vector.shape_cast %712 : vector<1x128x384xf32> to vector<128x384xf32>
    %cst_299 = arith.constant dense<0.000000e+00> : vector<8x384xf32>
    %714 = tpu.matmul %711, %713, %cst_299 {dimension_numbers = #tpu.dot_dimension_numbers<[1], [0], [0], [1], [0, 0, 1, 1], [], []>} : vector<8x128xf32>, vector<128x384xf32>, vector<8x384xf32> -> vector<8x384xf32>
    %715 = arith.index_cast %c6_i32_292 : i32 to index
    %c0_300 = arith.constant 0 : index
    %c0_301 = arith.constant 0 : index
    %716 = vector.load %arg11[%715, %c0_300, %c0_301] : memref<8x8x384xf32, #tpu.memory_space<vmem>>, vector<1x8x384xf32>
    %717 = vector.shape_cast %716 : vector<1x8x384xf32> to vector<8x384xf32>
    %718 = vector.extract_strided_slice %717 {offsets = [0, 0], sizes = [8, 128], strides = [1, 1]} : vector<8x384xf32> to vector<8x128xf32>
    %719 = vector.extract_strided_slice %717 {offsets = [0, 128], sizes = [8, 128], strides = [1, 1]} : vector<8x384xf32> to vector<8x128xf32>
    %720 = vector.extract_strided_slice %717 {offsets = [0, 256], sizes = [8, 128], strides = [1, 1]} : vector<8x384xf32> to vector<8x128xf32>
    %721 = vector.extract_strided_slice %714 {offsets = [0, 0], sizes = [8, 128], strides = [1, 1]} : vector<8x384xf32> to vector<8x128xf32>
    %722 = vector.extract_strided_slice %714 {offsets = [0, 128], sizes = [8, 128], strides = [1, 1]} : vector<8x384xf32> to vector<8x128xf32>
    %723 = vector.extract_strided_slice %714 {offsets = [0, 256], sizes = [8, 128], strides = [1, 1]} : vector<8x384xf32> to vector<8x128xf32>
    %724 = arith.addf %723, %421 : vector<8x128xf32>
    %725 = arith.addf %718, %721 : vector<8x128xf32>
    %726 = arith.negf %725 : vector<8x128xf32>
    %727 = math.exp %726 : vector<8x128xf32>
    %cst_302 = arith.constant 1.000000e+00 : f32
    %728 = vector.broadcast %cst_302 : f32 to vector<8x128xf32>
    %729 = arith.addf %728, %727 : vector<8x128xf32>
    %730 = arith.divf %728, %729 : vector<8x128xf32>
    %731 = arith.addf %719, %722 : vector<8x128xf32>
    %732 = arith.negf %731 : vector<8x128xf32>
    %733 = math.exp %732 : vector<8x128xf32>
    %cst_303 = arith.constant 1.000000e+00 : f32
    %734 = vector.broadcast %cst_303 : f32 to vector<8x128xf32>
    %735 = arith.addf %734, %733 : vector<8x128xf32>
    %736 = arith.divf %734, %735 : vector<8x128xf32>
    %737 = arith.mulf %730, %724 : vector<8x128xf32>
    %738 = arith.addf %720, %737 : vector<8x128xf32>
    %739 = math.tanh %738 : vector<8x128xf32>
    %cst_304 = arith.constant 1.000000e+00 : f32
    %740 = vector.broadcast %cst_304 : f32 to vector<8x128xf32>
    %741 = arith.subf %740, %736 : vector<8x128xf32>
    %742 = arith.mulf %741, %739 : vector<8x128xf32>
    %743 = arith.mulf %736, %711 : vector<8x128xf32>
    %744 = arith.addf %742, %743 : vector<8x128xf32>
    %745 = arith.addi %7, %c6_i32_292 : i32
    %746 = vector.broadcast %745 : i32 to vector<8x128xi32>
    %747 = arith.cmpi slt, %746, %6 : vector<8x128xi32>
    %748 = arith.select %747, %744, %711 : vector<8x128xi1>, vector<8x128xf32>
    %c1_305 = arith.constant 1 : index
    %c0_306 = arith.constant 0 : index
    %c0_307 = arith.constant 0 : index
    %749 = vector.load %arg10[%c1_305, %c0_306, %c0_307] : memref<2x8x128xf32, #tpu.memory_space<vmem>>, vector<1x8x128xf32>
    %750 = vector.shape_cast %749 : vector<1x8x128xf32> to vector<8x128xf32>
    %751 = vector.shape_cast %748 : vector<8x128xf32> to vector<1x8x128xf32>
    tpu.vector_store %arg10[%c1_305, %c0_306, %c0_307], %751 {strides = array<i32>} : memref<2x8x128xf32, #tpu.memory_space<vmem>>, vector<1x8x128xf32>,
    %cst_308 = arith.constant 0.000000e+00 : f32
    %752 = vector.broadcast %cst_308 : f32 to vector<8x128xf32>
    %753 = arith.select %747, %744, %752 : vector<8x128xi1>, vector<8x128xf32>
    %754 = arith.index_cast %c6_i32_292 : i32 to index
    %c0_309 = arith.constant 0 : index
    %c0_310 = arith.constant 0 : index
    %755 = vector.load %arg8[%754, %c0_309, %c0_310] : memref<8x8x128xf32, #tpu.memory_space<vmem>>, vector<1x8x128xf32>
    %756 = vector.shape_cast %755 : vector<1x8x128xf32> to vector<8x128xf32>
    %757 = vector.shape_cast %753 : vector<8x128xf32> to vector<1x8x128xf32>
    tpu.vector_store %arg8[%754, %c0_309, %c0_310], %757 {strides = array<i32>} : memref<8x8x128xf32, #tpu.memory_space<vmem>>, vector<1x8x128xf32>,
    %c7_i32_311 = arith.constant 7 : i32
    %c1_312 = arith.constant 1 : index
    %c0_313 = arith.constant 0 : index
    %c0_314 = arith.constant 0 : index
    %758 = vector.load %arg10[%c1_312, %c0_313, %c0_314] : memref<2x8x128xf32, #tpu.memory_space<vmem>>, vector<1x8x128xf32>
    %759 = vector.shape_cast %758 : vector<1x8x128xf32> to vector<8x128xf32>
    %c1_315 = arith.constant 1 : index
    %c0_316 = arith.constant 0 : index
    %c0_317 = arith.constant 0 : index
    %760 = vector.load %arg4[%c1_315, %c0_316, %c0_317] : memref<2x128x384xf32, #tpu.memory_space<vmem>>, vector<1x128x384xf32>
    %761 = vector.shape_cast %760 : vector<1x128x384xf32> to vector<128x384xf32>
    %cst_318 = arith.constant dense<0.000000e+00> : vector<8x384xf32>
    %762 = tpu.matmul %759, %761, %cst_318 {dimension_numbers = #tpu.dot_dimension_numbers<[1], [0], [0], [1], [0, 0, 1, 1], [], []>} : vector<8x128xf32>, vector<128x384xf32>, vector<8x384xf32> -> vector<8x384xf32>
    %763 = arith.index_cast %c7_i32_311 : i32 to index
    %c0_319 = arith.constant 0 : index
    %c0_320 = arith.constant 0 : index
    %764 = vector.load %arg11[%763, %c0_319, %c0_320] : memref<8x8x384xf32, #tpu.memory_space<vmem>>, vector<1x8x384xf32>
    %765 = vector.shape_cast %764 : vector<1x8x384xf32> to vector<8x384xf32>
    %766 = vector.extract_strided_slice %765 {offsets = [0, 0], sizes = [8, 128], strides = [1, 1]} : vector<8x384xf32> to vector<8x128xf32>
    %767 = vector.extract_strided_slice %765 {offsets = [0, 128], sizes = [8, 128], strides = [1, 1]} : vector<8x384xf32> to vector<8x128xf32>
    %768 = vector.extract_strided_slice %765 {offsets = [0, 256], sizes = [8, 128], strides = [1, 1]} : vector<8x384xf32> to vector<8x128xf32>
    %769 = vector.extract_strided_slice %762 {offsets = [0, 0], sizes = [8, 128], strides = [1, 1]} : vector<8x384xf32> to vector<8x128xf32>
    %770 = vector.extract_strided_slice %762 {offsets = [0, 128], sizes = [8, 128], strides = [1, 1]} : vector<8x384xf32> to vector<8x128xf32>
    %771 = vector.extract_strided_slice %762 {offsets = [0, 256], sizes = [8, 128], strides = [1, 1]} : vector<8x384xf32> to vector<8x128xf32>
    %772 = arith.addf %771, %421 : vector<8x128xf32>
    %773 = arith.addf %766, %769 : vector<8x128xf32>
    %774 = arith.negf %773 : vector<8x128xf32>
    %775 = math.exp %774 : vector<8x128xf32>
    %cst_321 = arith.constant 1.000000e+00 : f32
    %776 = vector.broadcast %cst_321 : f32 to vector<8x128xf32>
    %777 = arith.addf %776, %775 : vector<8x128xf32>
    %778 = arith.divf %776, %777 : vector<8x128xf32>
    %779 = arith.addf %767, %770 : vector<8x128xf32>
    %780 = arith.negf %779 : vector<8x128xf32>
    %781 = math.exp %780 : vector<8x128xf32>
    %cst_322 = arith.constant 1.000000e+00 : f32
    %782 = vector.broadcast %cst_322 : f32 to vector<8x128xf32>
    %783 = arith.addf %782, %781 : vector<8x128xf32>
    %784 = arith.divf %782, %783 : vector<8x128xf32>
    %785 = arith.mulf %778, %772 : vector<8x128xf32>
    %786 = arith.addf %768, %785 : vector<8x128xf32>
    %787 = math.tanh %786 : vector<8x128xf32>
    %cst_323 = arith.constant 1.000000e+00 : f32
    %788 = vector.broadcast %cst_323 : f32 to vector<8x128xf32>
    %789 = arith.subf %788, %784 : vector<8x128xf32>
    %790 = arith.mulf %789, %787 : vector<8x128xf32>
    %791 = arith.mulf %784, %759 : vector<8x128xf32>
    %792 = arith.addf %790, %791 : vector<8x128xf32>
    %793 = arith.addi %7, %c7_i32_311 : i32
    %794 = vector.broadcast %793 : i32 to vector<8x128xi32>
    %795 = arith.cmpi slt, %794, %6 : vector<8x128xi32>
    %796 = arith.select %795, %792, %759 : vector<8x128xi1>, vector<8x128xf32>
    %c1_324 = arith.constant 1 : index
    %c0_325 = arith.constant 0 : index
    %c0_326 = arith.constant 0 : index
    %797 = vector.load %arg10[%c1_324, %c0_325, %c0_326] : memref<2x8x128xf32, #tpu.memory_space<vmem>>, vector<1x8x128xf32>
    %798 = vector.shape_cast %797 : vector<1x8x128xf32> to vector<8x128xf32>
    %799 = vector.shape_cast %796 : vector<8x128xf32> to vector<1x8x128xf32>
    tpu.vector_store %arg10[%c1_324, %c0_325, %c0_326], %799 {strides = array<i32>} : memref<2x8x128xf32, #tpu.memory_space<vmem>>, vector<1x8x128xf32>,
    %cst_327 = arith.constant 0.000000e+00 : f32
    %800 = vector.broadcast %cst_327 : f32 to vector<8x128xf32>
    %801 = arith.select %795, %792, %800 : vector<8x128xi1>, vector<8x128xf32>
    %802 = arith.index_cast %c7_i32_311 : i32 to index
    %c0_328 = arith.constant 0 : index
    %c0_329 = arith.constant 0 : index
    %803 = vector.load %arg8[%802, %c0_328, %c0_329] : memref<8x8x128xf32, #tpu.memory_space<vmem>>, vector<1x8x128xf32>
    %804 = vector.shape_cast %803 : vector<1x8x128xf32> to vector<8x128xf32>
    %805 = vector.shape_cast %801 : vector<8x128xf32> to vector<1x8x128xf32>
    tpu.vector_store %arg8[%802, %c0_328, %c0_329], %805 {strides = array<i32>} : memref<8x8x128xf32, #tpu.memory_space<vmem>>, vector<1x8x128xf32>,
    %c8_i32_330 = arith.constant 8 : i32
    %c0_i32_331 = arith.constant 0 : i32
    %806 = arith.cmpi eq, %arg1, %c0_i32_331 : i32
    %807 = arith.extui %806 : i1 to i32
    %c0_i32_332 = arith.constant 0 : i32
    %808 = arith.cmpi ne, %807, %c0_i32_332 : i32
    scf.if %808 {
      %c0_333 = arith.constant 0 : index
      %c0_334 = arith.constant 0 : index
      %c0_335 = arith.constant 0 : index
      %809 = vector.load %arg10[%c0_333, %c0_334, %c0_335] : memref<2x8x128xf32, #tpu.memory_space<vmem>>, vector<2x8x128xf32>
      %c0_336 = arith.constant 0 : index
      %c0_337 = arith.constant 0 : index
      %c0_338 = arith.constant 0 : index
      %810 = vector.load %arg9[%c0_336, %c0_337, %c0_338] : memref<2x8x128xf32, #tpu.memory_space<vmem>>, vector<2x8x128xf32>
      tpu.vector_store %arg9[%c0_336, %c0_337, %c0_338], %809 {strides = array<i32>} : memref<2x8x128xf32, #tpu.memory_space<vmem>>, vector<2x8x128xf32>,
    } else {
    }
    return
  }
  func.func @transform_0(%arg0: i32, %arg1: i32) -> (i32, i32, i32) {
    %c0_i32 = arith.constant 0 : i32
    %c0_i32_0 = arith.constant 0 : i32
    return %arg1, %arg0, %c0_i32 : i32, i32, i32
  }
  func.func @transform_1(%arg0: i32, %arg1: i32) -> (i32, i32, i32) {
    %c0_i32 = arith.constant 0 : i32
    %c0_i32_0 = arith.constant 0 : i32
    %c0_i32_1 = arith.constant 0 : i32
    %c0_i32_2 = arith.constant 0 : i32
    return %c0_i32, %c0_i32_0, %c0_i32_1 : i32, i32, i32
  }
  func.func @transform_2(%arg0: i32, %arg1: i32) -> (i32, i32, i32) {
    %c0_i32 = arith.constant 0 : i32
    %c0_i32_0 = arith.constant 0 : i32
    %c0_i32_1 = arith.constant 0 : i32
    %c0_i32_2 = arith.constant 0 : i32
    return %c0_i32, %c0_i32_0, %c0_i32_1 : i32, i32, i32
  }
  func.func @transform_3(%arg0: i32, %arg1: i32) -> (i32, i32, i32) {
    %c0_i32 = arith.constant 0 : i32
    %c0_i32_0 = arith.constant 0 : i32
    %c0_i32_1 = arith.constant 0 : i32
    %c0_i32_2 = arith.constant 0 : i32
    return %c0_i32, %c0_i32_0, %c0_i32_1 : i32, i32, i32
  }
  func.func @transform_4(%arg0: i32, %arg1: i32) -> (i32, i32, i32) {
    %c0_i32 = arith.constant 0 : i32
    %c0_i32_0 = arith.constant 0 : i32
    %c0_i32_1 = arith.constant 0 : i32
    %c0_i32_2 = arith.constant 0 : i32
    return %c0_i32, %c0_i32_0, %c0_i32_1 : i32, i32, i32
  }
  func.func @transform_5(%arg0: i32, %arg1: i32) -> (i32, i32) {
    %c0_i32 = arith.constant 0 : i32
    %c0_i32_0 = arith.constant 0 : i32
    return %arg0, %c0_i32 : i32, i32
  }
  func.func @transform_6(%arg0: i32, %arg1: i32) -> (i32, i32, i32) {
    %c0_i32 = arith.constant 0 : i32
    %c0_i32_0 = arith.constant 0 : i32
    return %arg1, %arg0, %c0_i32 : i32, i32, i32
  }
  func.func @transform_7(%arg0: i32, %arg1: i32) -> (i32, i32, i32) {
    %c0_i32 = arith.constant 0 : i32
    %c0_i32_0 = arith.constant 0 : i32
    %c0_i32_1 = arith.constant 0 : i32
    return %c0_i32, %arg0, %c0_i32_0 : i32, i32, i32
  }
}

</mosaic_0001>

<bundles_post_ra>
// kernel: tpu_custom_call.1
= control target key start
LH: loop header
LB: loop body
LE: loop exit
PB: predicated region body
PF: predicated region fallthrough
CT: control target
= control target key end

     0   :  { %13 = vsyncpa [#allocation5], 0  ;;  %s7634_s0 = inlined_call_operand.hbm [shape: f32[8,8,128], index: 0, kind: input, shape index: {}]   ;;  %s7635_s1 = inlined_call_operand.hbm [shape: f32[2,128,384], index: 1, kind: input, shape index: {}]   ;;  %s7636_s2 = inlined_call_operand.hbm [shape: f32[2,128,384], index: 2, kind: input, shape index: {}]   ;;  %s7637_s3 = inlined_call_operand.hbm [shape: f32[2,1,384], index: 3, kind: input, shape index: {}]   ;;  %s7638_s4 = inlined_call_operand.hbm [shape: f32[2,1,128], index: 4, kind: input, shape index: {}]   ;;  %s7639_s5 = inlined_call_operand.vmem [shape: s32[8,128], index: 5, kind: input, shape index: {}]   ;;  %s7640_s6 = inlined_call_operand.hbm [shape: f32[8,8,128], index: 6, kind: output, shape index: {0}]   ;;  %s7641_s7 = inlined_call_operand.hbm [shape: f32[2,8,128], index: 7, kind: output, shape index: {1}]  }
   0x1   :  { %14 = vsyncpa [#allocation8], 0 }
   0x2   :  { %15 = vsyncpa [#allocation11], 0 }
   0x3   :  { %16 = vsyncpa [#allocation6], 0 }
   0x4   :  { %17 = vsyncpa [#allocation15], 0  ;;  %s5691_s24 = smov [#allocation7]  }
   0x5   :  { %s35_s25 = sshll.u32 %s5691_s24, 4  ;;  %s36_s25 = int_to_ptr.vmem [resolvable:$true] %s35_s25 }
   0x6   :  { %s5549_s26 = scalar_lea.vmem %s36_s25, 12288  ;;  %p5554_p1 = scmp.lt.s32.totalorder %s36_s25, %s36_s25 }
   0x7   :  { %p5550_p0 = scmp.ne.s32.totalorder %s36_s25, %s5549_s26  ;;  %p5555_p2 = scmp.lt.s32.totalorder %s5549_s26, %s5549_s26 }
   0x9   :  { %p5556_p3 = por %p5555_p2, %p5554_p1 }
   0xb   :  { %p5557_p4 = pnand %p5556_p3, %p5550_p0 }
   0xd   :  { %5560 = shalt.err (!%p5557_p4)
}
   0xe   :  { %s5692_s27 = smov 384   ;;  %s5693_s28 = smov 24  }
   0xf   :  { %41 = dma.hbm_to_vmem [thread:$0]  %s7635_s1, 12288, %s36_s25, [#allocation8], %s5692_s27, %s5692_s27, %s5693_s28  }
  0x10   :  { %s5694_s8 = smov [#allocation10]  }
  0x11   :  { %s59_s9 = sshll.u32 %s5694_s8, 4  ;;  %s60_s9 = int_to_ptr.vmem [resolvable:$true] %s59_s9 }
  0x12   :  { %s5569_s10 = scalar_lea.vmem %s60_s9, 96  ;;  %p5574_p6 = scmp.lt.s32.totalorder %s60_s9, %s60_s9 }
  0x13   :  { %p5570_p5 = scmp.ne.s32.totalorder %s60_s9, %s5569_s10  ;;  %p5575_p7 = scmp.lt.s32.totalorder %s5569_s10, %s5569_s10 }
  0x15   :  { %p5576_p8 = por %p5575_p7, %p5574_p6 }
  0x17   :  { %p5577_p9 = pnand %p5576_p8, %p5570_p5 }
  0x19   :  { %5580 = shalt.err (!%p5577_p9)
}
  0x1a   :  { %s5695_s11 = smov 48   ;;  %s5696_s12 = smov 3  }
  0x1b   :  { %65 = dma.hbm_to_vmem [thread:$0]  %s7637_s3, 96, %s60_s9, [#allocation11], %s5695_s11, %s5695_s11, %s5696_s12  }
  0x1c   :  { %s5697_s15 = smov [#allocation4]  }
  0x1d   :  { %s23_s16 = sshll.u32 %s5697_s15, 4  ;;  %s24_s16 = int_to_ptr.vmem [resolvable:$true] %s23_s16 }
  0x1e   :  { %s5589_s1 = scalar_lea.vmem %s24_s16, 1024  ;;  %p5594_p11 = scmp.lt.s32.totalorder %s24_s16, %s24_s16 }
  0x1f   :  { %p5590_p10 = scmp.ne.s32.totalorder %s24_s16, %s5589_s1  ;;  %p5595_p12 = scmp.lt.s32.totalorder %s5589_s1, %s5589_s1 }
  0x21   :  { %p5596_p13 = por %p5595_p12, %p5594_p11 }
  0x23   :  { %p5597_p0 = pnand %p5596_p13, %p5590_p10 }
  0x25   :  { %5600 = shalt.err (!%p5597_p0)
}
  0x26   :  { %s5698_s17 = smov 128   ;;  %s5699_s18 = smov 8  }
  0x27   :  { %29 = dma.hbm_to_vmem [thread:$0]  %s7634_s0, 1024, %s24_s16, [#allocation5], %s5698_s17, %s5698_s17, %s5699_s18  }
  0x28   :  { %s5700_s3 = smov [#allocation9]   ;;  %s5701_s22 = smov [#allocation12]  }
  0x29   :  { %s47_s21 = sshll.u32 %s5700_s3, 4  ;;  %s71_s23 = sshll.u32 %s5701_s22, 4  ;;  %s48_s21 = int_to_ptr.vmem [resolvable:$true] %s47_s21  ;;  %s72_s23 = int_to_ptr.vmem [resolvable:$true] %s71_s23 }
  0x2a   :  { %s5609_s24 = scalar_lea.vmem %s48_s21, 12288  ;;  %p5614_p2 = scmp.lt.s32.totalorder %s48_s21, %s48_s21 }
  0x2b   :  { %p5610_p1 = scmp.ne.s32.totalorder %s48_s21, %s5609_s24  ;;  %p5615_p3 = scmp.lt.s32.totalorder %s5609_s24, %s5609_s24 }
  0x2d   :  { %p5616_p4 = por %p5615_p3, %p5614_p2 }
  0x2f   :  { %p5617_p5 = pnand %p5616_p4, %p5610_p1 }
  0x31   :  { %5620 = shalt.err (!%p5617_p5)
}
  0x32   :  { %53 = dma.hbm_to_vmem [thread:$0]  %s7636_s2, 12288, %s48_s21, [#allocation8], %s5692_s27, %s5692_s27, %s5693_s28  }
  0x33   :  { %s5629_s0 = scalar_lea.vmem %s72_s23, 32  ;;  %p5634_p7 = scmp.lt.s32.totalorder %s72_s23, %s72_s23 }
  0x34   :  { %p5630_p6 = scmp.ne.s32.totalorder %s72_s23, %s5629_s0  ;;  %p5635_p8 = scmp.lt.s32.totalorder %s5629_s0, %s5629_s0 }
  0x36   :  { %p5636_p9 = por %p5635_p8, %p5634_p7 }
  0x38   :  { %p5637_p10 = pnand %p5636_p9, %p5630_p6 }
  0x3a   :  { %5640 = shalt.err (!%p5637_p10)
}
  0x3b   :  { %s5702_s29 = smov 16   ;;  %s5703_s30 = smov 1  }
  0x3c   :  { %77 = dma.hbm_to_vmem [thread:$0]  %s7638_s4, 32, %s72_s23, [#allocation11], %s5702_s29, %s5702_s29, %s5703_s30  }
  0x3d   :  { %5681 = dma.done.wait [#allocation5], 1024  }
  0x3e   :  { %5682 = vsyncadd [#allocation5], 4294966272 }
  0x3f   :  { %5683 = dma.done.wait [#allocation8], 24576  }
  0x40   :  { %5684 = vsyncadd [#allocation8], 4294942720 }
  0x41   :  { %5685 = dma.done.wait [#allocation11], 128  }
  0x42   :  { %5686 = vsyncadd [#allocation11], 4294967168  ;;  %v7642_v0 = vmov 0.0   ;;  %v5705_v1 = vmov 0   ;;  %v160_v2 = vld [vmem:[#allocation7 + $0x170] sm:$0xff]  ;;  %v159_v3 = vld [vmem:[#allocation7 + $0x168] sm:$0xff] }
  0x43   :  { %243 = vmatprep.mubr.f32.mxu0 %v7642_v0  ;;  %5370 = vset.pattern.permute.xlu0 %v5705_v1  ;;  %v157_v4 = vld [vmem:[#allocation7 + $0x158] sm:$0xff]  ;;  %v156_v5 = vld [vmem:[#allocation7 + $0x150] sm:$0xff]  ;;  %v154_v6 = vld [vmem:[#allocation7 + $0x140] sm:$0xff]  ;;  %vm5706_vm0 = vmmov 0   ;;  %s5708_s28 = smov [#allocation14]  }
  0x44   :  { %179 = vmatprep.subr.mxu0 %v160_v2  ;;  %v153_v7 = vld [vmem:[#allocation7 + $0x138] sm:$0xff]  ;;  %v151_v8 = vld [vmem:[#allocation7 + $0x128] sm:$0xff]  ;;  %v150_v9 = vld [vmem:[#allocation7 + $0x120] sm:$0xff]  ;;  %s4320_s10 = sshll.u32 %s5708_s28, 4  ;;  %s4321_s10 = int_to_ptr.vmem [resolvable:$true] %s4320_s10 }
  0x45   :  { %180 = vmatpush1.msra.mxu0 %v159_v3  ;;  %v148_v10 = vld [vmem:[#allocation7 + $0x110] sm:$0xff]  ;;  %v147_v11 = vld [vmem:[#allocation7 + $0x108] sm:$0xff]  ;;  %v145_v12 = vld [vmem:[#allocation7 + $0xf8] sm:$0xff] }
  0x46   :  { %181 = vmatprep.subr.mxu0 %v157_v4  ;;  %v144_v13 = vld [vmem:[#allocation7 + $0xf0] sm:$0xff]  ;;  %v142_v14 = vld [vmem:[#allocation7 + $0xe0] sm:$0xff]  ;;  %v161_v15 = vld [vmem:[#allocation7 + $0x178] sm:$0xff] }
  0x47   :  { %182 = vmatpush1.msra.mxu0 %v156_v5  ;;  %v141_v16 = vld [vmem:[#allocation7 + $0xd8] sm:$0xff]  ;;  %4704 = vmatprep.subr.mxu1 %v161_v15  ;;  %v158_v17 = vld [vmem:[#allocation7 + $0x160] sm:$0xff]  ;;  %v139_v18 = vld [vmem:[#allocation7 + $0xc8] sm:$0xff] }
  0x48   :  { %183 = vmatprep.subr.mxu0 %v154_v6  ;;  %4705 = vmatpush3.msra.mxu1 %v161_v15  ;;  %v155_v19 = vld [vmem:[#allocation7 + $0x148] sm:$0xff]  ;;  %v138_v20 = vld [vmem:[#allocation7 + $0xc0] sm:$0xff]  ;;  %v136_v21 = vld [vmem:[#allocation7 + $0xb0] sm:$0xff] }
  0x49   :  { %184 = vmatpush1.msra.mxu0 %v153_v7  ;;  %4706 = vmatprep.subr.mxu1 %v158_v17  ;;  %v152_v22 = vld [vmem:[#allocation7 + $0x130] sm:$0xff]  ;;  %v135_v23 = vld [vmem:[#allocation7 + $0xa8] sm:$0xff]  ;;  %v133_v24 = vld [vmem:[#allocation7 + $0x98] sm:$0xff] }
  0x4a   :  { %185 = vmatprep.subr.mxu0 %v151_v8  ;;  %4707 = vmatpush3.msra.mxu1 %v158_v17  ;;  %v149_v25 = vld [vmem:[#allocation7 + $0x118] sm:$0xff]  ;;  %v132_v26 = vld [vmem:[#allocation7 + $0x90] sm:$0xff]  ;;  %v130_v27 = vld [vmem:[#allocation7 + $0x80] sm:$0xff] }
  0x4b   :  { %186 = vmatpush1.msra.mxu0 %v150_v9  ;;  %4708 = vmatprep.subr.mxu1 %v155_v19  ;;  %v146_v28 = vld [vmem:[#allocation7 + $0x100] sm:$0xff]  ;;  %v129_v29 = vld [vmem:[#allocation7 + $0x78] sm:$0xff]  ;;  %v127_v30 = vld [vmem:[#allocation7 + $0x68] sm:$0xff] }
  0x4c   :  { %187 = vmatprep.subr.mxu0 %v148_v10  ;;  %4709 = vmatpush3.msra.mxu1 %v155_v19  ;;  %v143_v31 = vld [vmem:[#allocation7 + $0xe8] sm:$0xff]  ;;  %v126_v32 = vld [vmem:[#allocation7 + $0x60] sm:$0xff]  ;;  %v124_v33 = vld [vmem:[#allocation7 + $0x50] sm:$0xff] }
  0x4d   :  { %188 = vmatpush1.msra.mxu0 %v147_v11  ;;  %4710 = vmatprep.subr.mxu1 %v152_v22  ;;  %v140_v34 = vld [vmem:[#allocation7 + $0xd0] sm:$0xff]  ;;  %v123_v35 = vld [vmem:[#allocation7 + $0x48] sm:$0xff]  ;;  %v121_v36 = vld [vmem:[#allocation7 + $0x38] sm:$0xff] }
  0x4e   :  { %189 = vmatprep.subr.mxu0 %v145_v12  ;;  %4711 = vmatpush3.msra.mxu1 %v152_v22  ;;  %v137_v37 = vld [vmem:[#allocation7 + $0xb8] sm:$0xff]  ;;  %v120_v38 = vld [vmem:[#allocation7 + $0x30] sm:$0xff]  ;;  %v118_v39 = vld [vmem:[#allocation7 + $0x20] sm:$0xff] }
  0x4f   :  { %190 = vmatpush1.msra.mxu0 %v144_v13  ;;  %4712 = vmatprep.subr.mxu1 %v149_v25  ;;  %v134_v40 = vld [vmem:[#allocation7 + $0xa0] sm:$0xff]  ;;  %v117_v41 = vld [vmem:[#allocation7 + $0x18] sm:$0xff]  ;;  %v115_v42 = vld [vmem:[#allocation7 + $0x8] sm:$0xff] }
  0x50   :  { %191 = vmatprep.subr.mxu0 %v142_v14  ;;  %4713 = vmatpush3.msra.mxu1 %v149_v25  ;;  %v131_v43 = vld [vmem:[#allocation7 + $0x88] sm:$0xff]  ;;  %v114_v44 = vld [vmem:[#allocation7] sm:$0xff]  ;;  %v5776_v46 = vld [vmem:[#allocation9 + $0x170] sm:$0xff] }
  0x51   :  { %192 = vmatpush1.msra.mxu0 %v141_v16  ;;  %4714 = vmatprep.subr.mxu1 %v146_v28  ;;  %v5774_v45 = vld [vmem:[#allocation4] sm:$0xff]  ;;  %v5778_v47 = vld [vmem:[#allocation9 + $0x168] sm:$0xff]  ;;  %v5780_v48 = vld [vmem:[#allocation9 + $0x158] sm:$0xff] }
  0x52   :  { %193 = vmatprep.subr.mxu0 %v139_v18  ;;  %4715 = vmatpush3.msra.mxu1 %v146_v28  ;;  %v128_v49 = vld [vmem:[#allocation7 + $0x70] sm:$0xff]  ;;  %v5788_v51 = vld [vmem:[#allocation4 + $0x8] sm:$0xff]  ;;  %v5790_v52 = vld [vmem:[#allocation9 + $0x140] sm:$0xff] }
  0x53   :  { %194 = vmatpush1.msra.mxu0 %v138_v20  ;;  %4716 = vmatprep.subr.mxu1 %v143_v31  ;;  %v5784_v50 = vld [vmem:[#allocation9 + $0x150] sm:$0xff]  ;;  %v5793_v53 = vld [vmem:[#allocation9 + $0x138] sm:$0xff]  ;;  %v5796_v54 = vld [vmem:[#allocation9 + $0x128] sm:$0xff] }
  0x54   :  { %195 = vmatprep.subr.mxu0 %v136_v21  ;;  %4717 = vmatpush3.msra.mxu1 %v143_v31  ;;  %v125_v55 = vld [vmem:[#allocation7 + $0x58] sm:$0xff]  ;;  %v5800_v56 = vld [vmem:[#allocation9 + $0x120] sm:$0xff]  ;;  %v5804_v57 = vld [vmem:[#allocation4 + $0x10] sm:$0xff] }
  0x55   :  { %196 = vmatpush1.msra.mxu0 %v135_v23  ;;  %4718 = vmatprep.subr.mxu1 %v140_v34  ;;  %v5806_v58 = vld [vmem:[#allocation9 + $0x110] sm:$0xff]  ;;  %v5809_v59 = vld [vmem:[#allocation9 + $0x108] sm:$0xff]  ;;  %v5812_v60 = vld [vmem:[#allocation9 + $0xf8] sm:$0xff] }
  0x56   :  { %197 = vmatprep.subr.mxu0 %v133_v24  ;;  %4719 = vmatpush3.msra.mxu1 %v140_v34  ;;  %v122_v61 = vld [vmem:[#allocation7 + $0x40] sm:$0xff]  ;;  %v5816_v62 = vld [vmem:[#allocation9 + $0xf0] sm:$0xff]  ;;  %v5820_v63 = vld [vmem:[#allocation4 + $0x18] sm:$0xff] }
  0x57   :  { %198 = vmatpush1.msra.mxu0 %v132_v26  ;;  %4720 = vmatprep.subr.mxu1 %v137_v37  ;;  %v5822_v1 = vld [vmem:[#allocation9 + $0xe0] sm:$0xff]  ;;  %v5825_v2 = vld [vmem:[#allocation9 + $0xd8] sm:$0xff]  ;;  %v5828_v3 = vld [vmem:[#allocation9 + $0xc8] sm:$0xff] }
  0x58   :  { %199 = vmatprep.subr.mxu0 %v130_v27  ;;  %4721 = vmatpush3.msra.mxu1 %v137_v37  ;;  %v119_v4 = vld [vmem:[#allocation7 + $0x28] sm:$0xff]  ;;  %v5832_v5 = vld [vmem:[#allocation9 + $0xc0] sm:$0xff]  ;;  %v5838_v7 = vld [vmem:[#allocation9 + $0xb0] sm:$0xff] }
  0x59   :  { %200 = vmatpush1.msra.mxu0 %v129_v29  ;;  %4722 = vmatprep.subr.mxu1 %v134_v40  ;;  %v5836_v6 = vld [vmem:[#allocation4 + $0x20] sm:$0xff]  ;;  %v5841_v8 = vld [vmem:[#allocation9 + $0xa8] sm:$0xff]  ;;  %v5844_v9 = vld [vmem:[#allocation9 + $0x98] sm:$0xff] }
  0x5a   :  { %201 = vmatprep.subr.mxu0 %v127_v30  ;;  %4723 = vmatpush3.msra.mxu1 %v134_v40  ;;  %v116_v10 = vld [vmem:[#allocation7 + $0x10] sm:$0xff]  ;;  %v5852_v12 = vld [vmem:[#allocation4 + $0x28] sm:$0xff]  ;;  %v5854_v13 = vld [vmem:[#allocation9 + $0x80] sm:$0xff] }
  0x5b   :  { %202 = vmatpush1.msra.mxu0 %v126_v32  ;;  %4724 = vmatprep.subr.mxu1 %v131_v43  ;;  %v5848_v11 = vld [vmem:[#allocation9 + $0x90] sm:$0xff]  ;;  %v5857_v14 = vld [vmem:[#allocation9 + $0x78] sm:$0xff]  ;;  %v5860_v15 = vld [vmem:[#allocation9 + $0x68] sm:$0xff] }
  0x5c   :  { %203 = vmatprep.subr.mxu0 %v124_v33  ;;  %4725 = vmatpush3.msra.mxu1 %v131_v43  ;;  %v5864_v16 = vld [vmem:[#allocation9 + $0x60] sm:$0xff]  ;;  %v112_v17 = vld [vmem:[#allocation4 + $0x30] sm:$0xff]  ;;  %v5871_v19 = vld [vmem:[#allocation9 + $0x48] sm:$0xff] }
  0x5d   :  { %204 = vmatpush1.msra.mxu0 %v123_v35  ;;  %4726 = vmatprep.subr.mxu1 %v128_v49  ;;  %v5868_v18 = vld [vmem:[#allocation9 + $0x50] sm:$0xff]  ;;  %v5875_v20 = vld [vmem:[#allocation9 + $0x38] sm:$0xff]  ;;  %v5885_v24 = vld [vmem:[#allocation9 + $0x20] sm:$0xff] }
  0x5e   :  { %205 = vmatprep.subr.mxu0 %v121_v36  ;;  %4727 = vmatpush3.msra.mxu1 %v128_v49  ;;  %v5879_v21 = vld [vmem:[#allocation9 + $0x30] sm:$0xff]  ;;  %v5881_v22 = vld [vmem:[#allocation9 + $0x178] sm:$0xff]  ;;  %v5892_v26 = vld [vmem:[#allocation9 + $0x8] sm:$0xff] }
  0x5f   :  { %206 = vmatpush1.msra.mxu0 %v120_v38  ;;  %4728 = vmatprep.subr.mxu1 %v125_v55  ;;  %v113_v23 = vld [vmem:[#allocation4 + $0x38] sm:$0xff]  ;;  %7702 = vst [vmem:[#allocation22_spill] sm:$0xff] %v5892_v26  ;;  %v5896_v27 = vld [vmem:[#allocation9] sm:$0xff]  ;;  %v5904_v29 = vld [vmem:[#allocation9 + $0x148] sm:$0xff] }
  0x60   :  { %207 = vmatprep.subr.mxu0 %v118_v39  ;;  %4729 = vmatpush3.msra.mxu1 %v125_v55  ;;  %v5888_v25 = vld [vmem:[#allocation9 + $0x18] sm:$0xff]  ;;  %7703 = vst [vmem:[#allocation23_spill] sm:$0xff] %v5896_v27  ;;  %v5898_v28 = vld [vmem:[#allocation9 + $0x160] sm:$0xff]  ;;  %v5910_v30 = vld [vmem:[#allocation9 + $0x130] sm:$0xff] }
  0x61   :  { %208 = vmatpush1.msra.mxu0 %v117_v41  ;;  %4730 = vmatprep.subr.mxu1 %v122_v61  ;;  %7701 = vst [vmem:[#allocation21_spill] sm:$0xff] %v5888_v25  ;;  %v101_v31 = vld [vmem:[%s7639_s5] sm:$0xff]  ;;  %v5918_v32 = vld [vmem:[#allocation9 + $0x118] sm:$0xff]  ;;  %v5929_v34 = vld [vmem:[#allocation9 + $0xe8] sm:$0xff]  ;;  %s5707_s5 = smov [#allocation13]  }
  0x62   :  { %209 = vmatprep.subr.mxu0 %v115_v42  ;;  %4731 = vmatpush3.msra.mxu1 %v122_v61  ;;  %v5924_v33 = vld [vmem:[#allocation9 + $0x100] sm:$0xff]  ;;  %v5934_v35 = vld [vmem:[#allocation9 + $0xd0] sm:$0xff]  ;;  %v5940_v36 = vld [vmem:[#allocation9 + $0xb8] sm:$0xff]  ;;  %s4308_s27 = sshll.u32 %s5707_s5, 4  ;;  %s4309_s27 = int_to_ptr.vmem [resolvable:$true] %s4308_s27 }
  0x63   :  { %210 = vmatpush1.msra.mxu0 %v114_v44  ;;  %4732 = vmatprep.subr.mxu1 %v119_v4  ;;  %v5946_v37 = vld [vmem:[#allocation9 + $0xa0] sm:$0xff]  ;;  %v5952_v38 = vld [vmem:[#allocation9 + $0x88] sm:$0xff]  ;;  %v5958_v39 = vld [vmem:[#allocation9 + $0x70] sm:$0xff]  ;;  %v164_v44 = vlaneseq  ;;  %s5641_s11 = scalar_lea.vmem %s4309_s27, 1024  ;;  %p5646_p12 = scmp.lt.s32.totalorder %s4309_s27, %s4309_s27 }
  0x64   :  { %244 = vmatmul.mubr.f32.vlgmr.msra.gmra.mxu0 %v5774_v45  ;;  %477 = vmatprep.subr.mxu0 %v5776_v46  ;;  %v5964_v40 = vld [vmem:[#allocation9 + $0x58] sm:$0xff]  ;;  %v5970_v41 = vld [vmem:[#allocation9 + $0x40] sm:$0xff]  ;;  %v5976_v42 = vld [vmem:[#allocation9 + $0x28] sm:$0xff]  ;;  %p5642_p11 = scmp.ne.s32.totalorder %s4309_s27, %s5641_s11  ;;  %p5647_p13 = scmp.lt.s32.totalorder %s5641_s11, %s5641_s11 }
  0x65   :  { %478 = vmatpush1.msra.mxu0 %v5778_v47  ;;  %249 = vmatprep.mubr.f32.mxu0 %v7642_v0  ;;  %7704 = vst [vmem:[#allocation24_spill] sm:$0xff] %v5976_v42  ;;  %v5982_v43 = vld [vmem:[#allocation9 + $0x10] sm:$0xff]  ;;  %v162_v49 = vld [vmem:[#allocation10] sm:$0x7] }
  0x66   :  { %479 = vmatprep.subr.mxu0 %v5780_v48  ;;  %4733 = vmatpush3.msra.mxu1 %v119_v4  ;;  %7705 = vst [vmem:[#allocation25_spill] sm:$0xff] %v5982_v43  ;;  %p5648_p0 = por %p5647_p13, %p5646_p12 }
  0x67   :  { %480 = vmatpush1.msra.mxu0 %v5784_v50  ;;  %4734 = vmatprep.subr.mxu1 %v116_v10 }
  0x68   :  { %250 = vmatmul.mubr.f32.gmra.mxu0 %v5788_v51  ;;  %481 = vmatprep.subr.mxu0 %v5790_v52  ;;  %p5649_p1 = pnand %p5648_p0, %p5642_p11 }
  0x69   :  { %482 = vmatpush1.msra.mxu0 %v5793_v53  ;;  %255 = vmatprep.mubr.f32.mxu0 %v7642_v0 }
  0x6a   :  { %483 = vmatprep.subr.mxu0 %v5796_v54  ;;  %4735 = vmatpush3.msra.mxu1 %v116_v10 }
  0x6b   :  { %484 = vmatpush1.msra.mxu0 %v5800_v56  ;;  %4736 = vmatprep.mubr.f32.mxu1 %v5774_v45  ;;  %v6042_v45 = vshrl.u32 %v164_v44, 7 }
  0x6c   :  { %256 = vmatmul.mubr.f32.gmra.mxu0 %v5804_v57  ;;  %485 = vmatprep.subr.mxu0 %v5806_v58 }
  0x6d   :  { %486 = vmatpush1.msra.mxu0 %v5809_v59  ;;  %261 = vmatprep.mubr.f32.mxu0 %v7642_v0  ;;  %7706 = vst [vmem:[#allocation26_spill] sm:$0xff] %v6042_v45  ;;  %v7651_v55 = vsub.s32 1, %v6042_v45 }
  0x6e   :  { %487 = vmatprep.subr.mxu0 %v5812_v60  ;;  %4748 = vmatprep.subr.mxu1 %v7642_v0 }
  0x6f   :  { %488 = vmatpush1.msra.mxu0 %v5816_v62  ;;  %4737 = vmatmul.mubr.f32.vlgmr.msra.gmra.mxu1 %v5788_v51  ;;  %v171_v4 = vrot.slane %v162_v49, %v7651_v55 }
  0x70   :  { %262 = vmatmul.mubr.f32.gmra.mxu0 %v5820_v63  ;;  %489 = vmatprep.subr.mxu0 %v5822_v1 }
  0x71   :  { %490 = vmatpush1.msra.mxu0 %v5825_v2  ;;  %267 = vmatprep.mubr.f32.mxu0 %v7642_v0 }
  0x72   :  { %491 = vmatprep.subr.mxu0 %v5828_v3  ;;  %4749 = vmatpush3.msra.mxu1 %v5881_v22 }
  0x73   :  { %492 = vmatpush1.msra.mxu0 %v5832_v5  ;;  %4750 = vmatprep.subr.mxu1 %v7642_v0 }
  0x74   :  { %268 = vmatmul.mubr.f32.gmra.mxu0 %v5836_v6  ;;  %493 = vmatprep.subr.mxu0 %v5838_v7 }
  0x75   :  { %494 = vmatpush1.msra.mxu0 %v5841_v8  ;;  %273 = vmatprep.mubr.f32.mxu0 %v7642_v0 }
  0x76   :  { %495 = vmatprep.subr.mxu0 %v5844_v9  ;;  %4751 = vmatpush3.msra.mxu1 %v5898_v28 }
  0x77   :  { %496 = vmatpush1.msra.mxu0 %v5848_v11  ;;  %4752 = vmatprep.subr.mxu1 %v7642_v0 }
  0x78   :  { %274 = vmatmul.mubr.f32.gmra.mxu0 %v5852_v12  ;;  %497 = vmatprep.subr.mxu0 %v5854_v13 }
  0x79   :  { %498 = vmatpush1.msra.mxu0 %v5857_v14  ;;  %279 = vmatprep.mubr.f32.mxu0 %v7642_v0 }
  0x7a   :  { %499 = vmatprep.subr.mxu0 %v5860_v15  ;;  %4753 = vmatpush3.msra.mxu1 %v5904_v29 }
  0x7b   :  { %500 = vmatpush1.msra.mxu0 %v5864_v16  ;;  %4739 = vmatprep.mubr.f32.mxu1 %v5804_v57 }
  0x7c   :  { %280 = vmatmul.mubr.f32.gmra.mxu0 %v112_v17  ;;  %501 = vmatprep.subr.mxu0 %v5868_v18 }
  0x7d   :  { %502 = vmatpush1.msra.mxu0 %v5871_v19  ;;  %285 = vmatprep.mubr.f32.mxu0 %v7642_v0 }
  0x7e   :  { %503 = vmatprep.subr.mxu0 %v5875_v20  ;;  %4754 = vmatprep.subr.mxu1 %v7642_v0 }
  0x7f   :  { %504 = vmatpush1.msra.mxu0 %v5879_v21  ;;  %4740 = vmatmul.mubr.f32.gmra.mxu1 %v5820_v63 }
  0x80   :  { %286 = vmatmul.mubr.f32.gmra.mxu0 %v113_v23  ;;  %505 = vmatprep.subr.mxu0 %v5885_v24 }
  0x81   :  { %506 = vmatpush1.msra.mxu0 %v5888_v25  ;;  %541 = vmatprep.mubr.f32.mxu0 %v7642_v0 }
  0x82   :  { %507 = vmatprep.subr.mxu0 %v5892_v26  ;;  %4755 = vmatpush3.msra.mxu1 %v5910_v30 }
  0x83   :  { %508 = vmatpush1.msra.mxu0 %v5896_v27  ;;  %4742 = vmatprep.mubr.f32.mxu1 %v5836_v6 }
  0x84   :  { %542 = vmatmul.mubr.f32.vlgmr.msra.gmra.mxu0 %v7642_v0  ;;  %4756 = vmatprep.subr.mxu1 %v7642_v0 }
  0x85   :  { %103 = vperm.xlu0 %5370, %v101_v31   ;;  %4757 = vmatpush3.msra.mxu1 %v5918_v32 }
  0x86   :  { %698 = vmatprep.subr.mxu0 %v5776_v46  ;;  %4758 = vmatprep.subr.mxu1 %v7642_v0 }
  0x87   :  { %4743 = vmatmul.mubr.f32.gmra.mxu1 %v5852_v12  ;;  %699 = vmatpush1.msra.mxu0 %v5778_v47 }
  0x88   :  { %4759 = vmatpush3.msra.mxu1 %v5924_v33  ;;  %4745 = vmatprep.mubr.f32.mxu1 %v112_v17 }
  0x89   :  { %4760 = vmatprep.subr.mxu1 %v7642_v0  ;;  %700 = vmatprep.subr.mxu0 %v5780_v48 }
  0x8a   :  { %4761 = vmatpush3.msra.mxu1 %v5929_v34  ;;  %701 = vmatpush1.msra.mxu0 %v5784_v50 }
  0x8b   :  { %4762 = vmatprep.subr.mxu1 %v7642_v0  ;;  %4746 = vmatmul.mubr.f32.gmra.mxu1 %v113_v23 }
  0x8c   :  { %4763 = vmatpush3.msra.mxu1 %v5934_v35  ;;  %4780 = vmatprep.mubr.msk.f32.mxu1 %vm5706_vm0, %v7642_v0 }
  0x8d   :  { %4764 = vmatprep.subr.mxu1 %v7642_v0  ;;  %702 = vmatprep.subr.mxu0 %v5790_v52 }
  0x8e   :  { %4765 = vmatpush3.msra.mxu1 %v5940_v36  ;;  %703 = vmatpush1.msra.mxu0 %v5793_v53 }
  0x8f   :  { %4766 = vmatprep.subr.mxu1 %v7642_v0  ;;  %704 = vmatprep.subr.mxu0 %v5796_v54 }
  0x90   :  { %4767 = vmatpush3.msra.mxu1 %v5946_v37  ;;  %705 = vmatpush1.msra.mxu0 %v5800_v56 }
  0x91   :  { %4768 = vmatprep.subr.mxu1 %v7642_v0  ;;  %706 = vmatprep.subr.mxu0 %v5806_v58 }
  0x92   :  { %4769 = vmatpush3.msra.mxu1 %v5952_v38  ;;  %707 = vmatpush1.msra.mxu0 %v5809_v59 }
  0x93   :  { %4770 = vmatprep.subr.mxu1 %v7642_v0  ;;  %708 = vmatprep.subr.mxu0 %v5812_v60 }
  0x94   :  { %4771 = vmatpush3.msra.mxu1 %v5958_v39  ;;  %709 = vmatpush1.msra.mxu0 %v5816_v62 }
  0x95   :  { %4772 = vmatprep.subr.mxu1 %v7642_v0  ;;  %710 = vmatprep.subr.mxu0 %v5822_v1 }
  0x96   :  { %4773 = vmatpush3.msra.mxu1 %v5964_v40  ;;  %711 = vmatpush1.msra.mxu0 %v5825_v2 }
  0x97   :  { %4774 = vmatprep.subr.mxu1 %v7642_v0  ;;  %712 = vmatprep.subr.mxu0 %v5828_v3 }
  0x98   :  { %4775 = vmatpush3.msra.mxu1 %v5970_v41  ;;  %713 = vmatpush1.msra.mxu0 %v5832_v5 }
  0x99   :  { %4776 = vmatprep.subr.mxu1 %v7642_v0  ;;  %714 = vmatprep.subr.mxu0 %v5838_v7 }
  0x9a   :  { %4777 = vmatpush3.msra.mxu1 %v5976_v42  ;;  %715 = vmatpush1.msra.mxu0 %v5841_v8 }
  0x9b   :  { %4778 = vmatprep.subr.mxu1 %v7642_v0  ;;  %716 = vmatprep.subr.mxu0 %v5844_v9 }
  0x9c   :  { %4779 = vmatpush3.msra.mxu1 %v5982_v43  ;;  %717 = vmatpush1.msra.mxu0 %v5848_v11 }
  0x9d   :  { %4781 = vmatmul.mubr.f32.vlgmr.msra.gmra.mxu1 %v7642_v0  ;;  %4783 = vmatprep.subr.mxu1 %v7642_v0 }
  0x9e   :  { %4784 = vmatpush3.msra.mxu1 %v5881_v22  ;;  %718 = vmatprep.subr.mxu0 %v5854_v13 }
  0x9f   :  { %4785 = vmatprep.subr.mxu1 %v7642_v0  ;;  %719 = vmatpush1.msra.mxu0 %v5857_v14 }
  0xa0   :  { %4786 = vmatpush3.msra.mxu1 %v5898_v28  ;;  %720 = vmatprep.subr.mxu0 %v5860_v15 }
  0xa1   :  { %4787 = vmatprep.subr.mxu1 %v7642_v0  ;;  %721 = vmatpush1.msra.mxu0 %v5864_v16 }
  0xa2   :  { %4788 = vmatpush3.msra.mxu1 %v5904_v29  ;;  %722 = vmatprep.subr.mxu0 %v5868_v18 }
  0xa3   :  { %4789 = vmatprep.subr.mxu1 %v7642_v0  ;;  %723 = vmatpush1.msra.mxu0 %v5871_v19 }
  0xa4   :  { %4790 = vmatpush3.msra.mxu1 %v5910_v30  ;;  %724 = vmatprep.subr.mxu0 %v5875_v20 }
  0xa5   :  { %4791 = vmatprep.subr.mxu1 %v7642_v0  ;;  %725 = vmatpush1.msra.mxu0 %v5879_v21 }
  0xa6   :  { %4792 = vmatpush3.msra.mxu1 %v5918_v32  ;;  %726 = vmatprep.subr.mxu0 %v5885_v24 }
  0xa7   :  { %4793 = vmatprep.subr.mxu1 %v7642_v0  ;;  %727 = vmatpush1.msra.mxu0 %v5888_v25 }
  0xa8   :  { %4794 = vmatpush3.msra.mxu1 %v5924_v33  ;;  %728 = vmatprep.subr.mxu0 %v5892_v26 }
  0xa9   :  { %4795 = vmatprep.subr.mxu1 %v7642_v0  ;;  %729 = vmatpush1.msra.mxu0 %v5896_v27 }
  0xaa   :  { %4796 = vmatpush3.msra.mxu1 %v5929_v34  ;;  %762 = vmatprep.mubr.f32.mxu0 %v7642_v0 }
  0xab   :  { %4797 = vmatprep.subr.mxu1 %v7642_v0  ;;  %4815 = vmatprep.mubr.msk.f32.mxu1 %vm5706_vm0, %v7642_v0 }
  0xac   :  { %4798 = vmatpush3.msra.mxu1 %v5934_v35  ;;  %922 = vmatprep.subr.mxu0 %v5776_v46  ;;  %v7647_v46 = vsub.s32 0, %v6042_v45 }
  0xad   :  { %4799 = vmatprep.subr.mxu1 %v7642_v0 }
  0xae   :  { %4800 = vmatpush3.msra.mxu1 %v5940_v36  ;;  %v167_v61 = vrot.slane %v162_v49, %v7647_v46 }
  0xaf   :  { %4801 = vmatprep.subr.mxu1 %v7642_v0 }
  0xb0   :  { %4802 = vmatpush3.msra.mxu1 %v5946_v37 }
  0xb1   :  { %4803 = vmatprep.subr.mxu1 %v7642_v0 }
  0xb2   :  { %4804 = vmatpush3.msra.mxu1 %v5952_v38 }
  0xb3   :  { %4805 = vmatprep.subr.mxu1 %v7642_v0 }
  0xb4   :  { %4806 = vmatpush3.msra.mxu1 %v5958_v39 }
  0xb5   :  { %4807 = vmatprep.subr.mxu1 %v7642_v0 }
  0xb6   :  { %4808 = vmatpush3.msra.mxu1 %v5964_v40 }
  0xb7   :  { %4809 = vmatprep.subr.mxu1 %v7642_v0 }
  0xb8   :  { %4810 = vmatpush3.msra.mxu1 %v5970_v41 }
  0xb9   :  { %4811 = vmatprep.subr.mxu1 %v7642_v0 }
  0xba   :  { %4812 = vmatpush3.msra.mxu1 %v5976_v42 }
  0xbb   :  { %4813 = vmatprep.subr.mxu1 %v7642_v0 }
  0xbc   :  { %4814 = vmatpush3.msra.mxu1 %v5982_v43 }
  0xbd   :  { %4818 = vmatprep.subr.mxu1 %v7642_v0 }
 0x124   :  { %v245_v51 = vpop.f32.mrf.mxu0 }
 0x126   :  { %v247_v57 = vpop.f32.mrf.mxu0 }
 0x128   :  { %v251_v63 = vpop.f32.mrf.mxu0 }
 0x129   :  { %v6050_v6 = vadd.f32 %v251_v63, %v167_v61 }
 0x12a   :  { %v253_v10 = vpop.f32.mrf.mxu0 }
 0x12b   :  { %7707 = vst [vmem:[#allocation27_spill] sm:$0xff] %v6050_v6  ;;  %v6052_v12 = vadd.f32 %v253_v10, %v171_v4  ;;  %v7654_v10 = vsub.s32 2, %v6042_v45 }
 0x12c   :  { %v257_v17 = vpop.f32.mrf.mxu0 }
 0x12d   :  { %7708 = vst [vmem:[#allocation28_spill] sm:$0xff] %v6052_v12  ;;  %v6054_v23 = vadd.f32 %v257_v17, %v167_v61 }
 0x12e   :  { %v259_v31 = vpop.f32.mrf.mxu0 }
 0x12f   :  { %7709 = vst [vmem:[#allocation29_spill] sm:$0xff] %v6054_v23  ;;  %v6056_v44 = vadd.f32 %v259_v31, %v171_v4 }
 0x130   :  { %v263_v0 = vpop.f32.mrf.mxu0 }
 0x131   :  { %7710 = vst [vmem:[#allocation30_spill] sm:$0xff] %v6056_v44  ;;  %v6058_v43 = vadd.f32 %v263_v0, %v167_v61  ;;  %v175_v0 = vrot.slane %v162_v49, %v7654_v10 }
 0x132   :  { %v265_v27 = vpop.f32.mrf.mxu0 }
 0x133   :  { %7711 = vst [vmem:[#allocation31_spill] sm:$0xff] %v6058_v43  ;;  %v6060_v46 = vadd.f32 %v265_v27, %v171_v4 }
 0x134   :  { %v269_v26 = vpop.f32.mrf.mxu0 }
 0x135   :  { %7712 = vst [vmem:[#allocation32_spill] sm:$0xff] %v6060_v46  ;;  %v6062_v42 = vadd.f32 %v269_v26, %v167_v61  ;;  %v4738_v26 = vpop.f32.mrf.mxu1 }
 0x136   :  { %v271_v63 = vpop.f32.mrf.mxu0 }
 0x137   :  { %7713 = vst [vmem:[#allocation33_spill] sm:$0xff] %v6062_v42  ;;  %v6064_v55 = vadd.f32 %v271_v63, %v171_v4  ;;  %v6077_v63 = vadd.f32 %v4738_v26, %v175_v0 }
 0x138   :  { %v275_v12 = vpop.f32.mrf.mxu0 }
 0x139   :  { %7714 = vst [vmem:[#allocation34_spill] sm:$0xff] %v6064_v55  ;;  %v6067_v17 = vadd.f32 %v275_v12, %v167_v61 }
 0x13a   :  { %v277_v23 = vpop.f32.mrf.mxu0 }
 0x13b   :  { %7715 = vst [vmem:[#allocation35_spill] sm:$0xff] %v6067_v17  ;;  %v6069_v31 = vadd.f32 %v277_v23, %v171_v4  ;;  %v246_v17 = vadd.f32 %v245_v51, %v167_v61 }
 0x13c   :  { %v281_v43 = vpop.f32.mrf.mxu0 }
 0x13d   :  { %7716 = vst [vmem:[#allocation36_spill] sm:$0xff] %v6069_v31  ;;  %v6073_v27 = vadd.f32 %v281_v43, %v167_v61  ;;  %v358_v31 = vpop.f32.mrf.mxu1 }
 0x13e   :  { %v283_v46 = vpop.f32.mrf.mxu0 }
 0x13f   :  { %7717 = vst [vmem:[#allocation37_spill] sm:$0xff] %v6073_v27  ;;  %v6075_v42 = vadd.f32 %v283_v46, %v171_v4  ;;  %v4741_v49 = vpop.f32.mrf.mxu1  ;;  %v248_v46 = vadd.f32 %v247_v57, %v171_v4 }
 0x140   :  { %v287_v55 = vpop.f32.mrf.mxu0  ;;  %v6083_v43 = vadd.f32 %v4741_v49, %v175_v0 }
 0x141   :  { %7718 = vst [vmem:[#allocation38_spill] sm:$0xff] %v6075_v42  ;;  %v6079_v44 = vadd.f32 %v287_v55, %v167_v61  ;;  %v368_v25 = vpop.f32.mrf.mxu1 }
 0x142   :  { %v289_v12 = vpop.f32.mrf.mxu0  ;;  %v6085_v26 = vadd.f32 %v368_v25, %v175_v0 }
 0x143   :  { %7719 = vst [vmem:[#allocation39_spill] sm:$0xff] %v6079_v44  ;;  %v6081_v6 = vadd.f32 %v289_v12, %v171_v4  ;;  %v6095_v4 = vld [vmem:[#allocation12] ss:$0 sm:$0xff] }
 0x144   :  { %v543_v23 = vpop.f32.mrf.mxu0 }
 0x145   :  { %7720 = vst [vmem:[#allocation40_spill] sm:$0xff] %v6081_v6  ;;  %v622_v45 = vadd.f32 %v543_v23, %v246_v17 }
 0x146   :  { %v545_v27 = vpop.f32.mrf.mxu0 }
 0x147   :  { %v4339_v10 = vmul.f32 -1.442695, %v622_v45  ;;  %v4744_v42 = vpop.f32.mrf.mxu1  ;;  %v629_v55 = vadd.f32 %v545_v27, %v248_v46 }
 0x148   :  { %v6087_v44 = vadd.f32 %v4744_v42, %v175_v0 }
 0x149   :  { %5371 = vpow2.f32 %v4339_v10  ;;  %v378_v51 = vpop.f32.mrf.mxu1  ;;  %v4340_v6 = vmul.f32 -1.442695, %v629_v55 }
 0x14a   :  { %7721 = vst [vmem:[#allocation41_spill] sm:$0xff] %v6087_v44  ;;  %v6089_v61 = vadd.f32 %v378_v51, %v175_v0  ;;  %v359_v44 = vadd.f32 %v358_v31, %v175_v0  ;;  %v7725_v31 = vmov 0.0  }
 0x14b   :  { %v4747_v12 = vpop.f32.mrf.mxu1  ;;  %5373 = vpow2.f32 %v4340_v6 }
 0x14c   :  { %7722 = vst [vmem:[#allocation42_spill] sm:$0xff] %v6089_v61  ;;  %v6091_v17 = vadd.f32 %v4747_v12, %v175_v0 }
 0x14d   :  { %v388_v45 = vpop.f32.mrf.mxu1 }
 0x14e   :  { %7723 = vst [vmem:[#allocation43_spill] sm:$0xff] %v6091_v17  ;;  %v6093_v23 = vadd.f32 %v388_v45, %v175_v0  ;;  %v6098_v17 = vpop.permute.xlu0 %103 }
 0x14f   :  { %vm4341_vm1 = vcmp.gt.s32.totalorder %v6098_v17, 0  ;;  %vm4344_vm2 = vcmp.gt.s32.totalorder %v6098_v17, 1  ;;  %vm4347_vm3 = vcmp.gt.s32.totalorder %v6098_v17, 2  ;;  %vm4350_vm4 = vcmp.gt.s32.totalorder %v6098_v17, 3 }
 0x150   :  { %7724 = vst [vmem:[#allocation44_spill] sm:$0xff] %v6093_v23  ;;  %vm4353_vm5 = vcmp.gt.s32.totalorder %v6098_v17, 4  ;;  %vm4356_vm6 = vcmp.gt.s32.totalorder %v6098_v17, 5  ;;  %vm4359_vm7 = vcmp.gt.s32.totalorder %v6098_v17, 6  ;;  %vm4362_vm8 = vcmp.gt.s32.totalorder %v6098_v17, 7 }
 0x156   :  { %v5372_v49 = vpop.eup %5371 }
 0x157   :  { %v626_v57 = vadd.f32 1.0, %v5372_v49 }
 0x158   :  { %v5374_v25 = vpop.eup %5373 }
 0x159   :  { %5375 = vrcp.f32 %v626_v57  ;;  %v633_v27 = vadd.f32 1.0, %v5374_v25  ;;  %v6270_v25 = vld [vmem:[#allocation9 + $0xc0] sm:$0xff] }
 0x15b   :  { %5377 = vrcp.f32 %v633_v27  ;;  %v6278_v27 = vld [vmem:[#allocation9 + $0x98] sm:$0xff] }
 0x15d   :  { %v614_v10 = vpop.f32.mrf.mxu1 }
 0x15e   :  { %v621_v46 = vadd.f32 %v6095_v4, %v614_v10  ;;  %v6272_v10 = vld [vmem:[#allocation9 + $0xb0] sm:$0xff] }
 0x15f   :  { %v4782_v42 = vpop.f32.mrf.mxu1 }
 0x160   :  { %v6275_v42 = vld [vmem:[#allocation9 + $0xa8] sm:$0xff] }
 0x166   :  { %v5376_v51 = vpop.eup %5375 }
 0x167   :  { %v636_v55 = vmul.f32 %v5376_v51, %v621_v46  ;;  %v6281_v46 = vld [vmem:[#allocation9 + $0x90] sm:$0xff]  ;;  %v6284_v51 = vld [vmem:[#allocation9 + $0x80] sm:$0xff] }
 0x168   :  { %v5378_v45 = vpop.eup %5377 }
 0x169   :  { %v637_v12 = vadd.f32 %v636_v55, %v359_v44  ;;  %v639_v6 = vsub.f32 1.0, %v5378_v45  ;;  %v641_v23 = vmul.f32 0.0, %v5378_v45  ;;  %v6287_v55 = vld [vmem:[#allocation9 + $0x78] sm:$0xff]  ;;  %v6293_v45 = vld [vmem:[#allocation9 + $0x60] sm:$0xff] }
 0x16b   :  { %5379 = vtanh.f32 %v637_v12  ;;  %v6290_v12 = vld [vmem:[#allocation9 + $0x68] sm:$0xff] }
 0x178   :  { %v5380_v49 = vpop.eup %5379 }
 0x179   :  { %v640_v57 = vmul.f32 %v5380_v49, %v639_v6  ;;  %v6296_v6 = vld [vmem:[#allocation9 + $0x50] sm:$0xff]  ;;  %v6299_v49 = vld [vmem:[#allocation9 + $0x48] sm:$0xff] }
 0x17b   :  { %v642_v61 = vadd.f32 %v641_v23, %v640_v57  ;;  %v6302_v57 = vld [vmem:[#allocation9 + $0x38] sm:$0xff] }
 0x17d   :  { %4380 = vmatmul.mubr.msk.f32.vlgmr.msra.gmra.mxu0 %vm4341_vm1, %v642_v61  ;;  %4816 = vmatmul.mubr.msk.f32.vlgmr.msra.gmra.mxu1 %vm4341_vm1, %v642_v61  ;;  %v6107_v44 = vsel %vm4341_vm1, %v642_v61, 0.0 }
 0x17e   :  { %923 = vmatpush1.msra.mxu0 %v5778_v47  ;;  %4819 = vmatpush3.msra.mxu1 %v5881_v22  ;;  %648 = vst [vmem:[#allocation13] sm:$0xff] %v6107_v44  ;;  %v7726_v47 = vld [vmem:[#allocation21_spill] sm:$0xff] }
 0x17f   :  { %924 = vmatprep.subr.mxu0 %v5780_v48  ;;  %4820 = vmatprep.subr.mxu1 %v7725_v31  ;;  %v7727_v48 = vld [vmem:[#allocation24_spill] sm:$0xff] }
 0x180   :  { %925 = vmatpush1.msra.mxu0 %v5784_v50  ;;  %4821 = vmatpush3.msra.mxu1 %v5898_v28  ;;  %v7728_v50 = vld [vmem:[#allocation22_spill] sm:$0xff] }
 0x181   :  { %926 = vmatprep.subr.mxu0 %v5790_v52  ;;  %4822 = vmatprep.subr.mxu1 %v7725_v31  ;;  %v7729_v52 = vld [vmem:[#allocation23_spill] sm:$0xff] }
 0x182   :  { %927 = vmatpush1.msra.mxu0 %v5793_v53  ;;  %4823 = vmatpush3.msra.mxu1 %v5904_v29  ;;  %v7730_v53 = vld [vmem:[#allocation25_spill] sm:$0xff] }
 0x183   :  { %928 = vmatprep.subr.mxu0 %v5796_v54  ;;  %4824 = vmatprep.subr.mxu1 %v7725_v31 }
 0x184   :  { %929 = vmatpush1.msra.mxu0 %v5800_v56  ;;  %4825 = vmatpush3.msra.mxu1 %v5910_v30 }
 0x185   :  { %930 = vmatprep.subr.mxu0 %v5806_v58  ;;  %4826 = vmatprep.subr.mxu1 %v7725_v31  ;;  %v7731_v58 = vld [vmem:[#allocation27_spill] sm:$0xff] }
 0x186   :  { %931 = vmatpush1.msra.mxu0 %v5809_v59  ;;  %4827 = vmatpush3.msra.mxu1 %v5918_v32 }
 0x187   :  { %932 = vmatprep.subr.mxu0 %v5812_v60  ;;  %4828 = vmatprep.subr.mxu1 %v7725_v31 }
 0x188   :  { %933 = vmatpush1.msra.mxu0 %v5816_v62  ;;  %4829 = vmatpush3.msra.mxu1 %v5924_v33 }
 0x189   :  { %934 = vmatprep.subr.mxu0 %v5822_v1  ;;  %4830 = vmatprep.subr.mxu1 %v7725_v31 }
 0x18a   :  { %935 = vmatpush1.msra.mxu0 %v5825_v2  ;;  %4831 = vmatpush3.msra.mxu1 %v5929_v34  ;;  %v7732_v2 = vld [vmem:[#allocation28_spill] sm:$0xff] }
 0x18b   :  { %936 = vmatprep.subr.mxu0 %v5828_v3  ;;  %4832 = vmatprep.subr.mxu1 %v7725_v31 }
 0x18c   :  { %937 = vmatpush1.msra.mxu0 %v5832_v5  ;;  %4833 = vmatpush3.msra.mxu1 %v5934_v35 }
 0x18d   :  { %938 = vmatprep.subr.mxu0 %v5838_v7  ;;  %4834 = vmatprep.subr.mxu1 %v7725_v31 }
 0x18e   :  { %939 = vmatpush1.msra.mxu0 %v5841_v8  ;;  %4835 = vmatpush3.msra.mxu1 %v5940_v36 }
 0x18f   :  { %940 = vmatprep.subr.mxu0 %v5844_v9  ;;  %4836 = vmatprep.subr.mxu1 %v7725_v31 }
 0x190   :  { %941 = vmatpush1.msra.mxu0 %v5848_v11  ;;  %4837 = vmatpush3.msra.mxu1 %v5946_v37 }
 0x191   :  { %942 = vmatprep.subr.mxu0 %v5854_v13  ;;  %4838 = vmatprep.subr.mxu1 %v7725_v31 }
 0x192   :  { %943 = vmatpush1.msra.mxu0 %v5857_v14  ;;  %4839 = vmatpush3.msra.mxu1 %v5952_v38 }
 0x193   :  { %944 = vmatprep.subr.mxu0 %v5860_v15  ;;  %4840 = vmatprep.subr.mxu1 %v7725_v31 }
 0x194   :  { %945 = vmatpush1.msra.mxu0 %v5864_v16  ;;  %4841 = vmatpush3.msra.mxu1 %v5958_v39 }
 0x195   :  { %946 = vmatprep.subr.mxu0 %v5868_v18  ;;  %4842 = vmatprep.subr.mxu1 %v7725_v31 }
 0x196   :  { %947 = vmatpush1.msra.mxu0 %v5871_v19  ;;  %4843 = vmatpush3.msra.mxu1 %v5964_v40 }
 0x197   :  { %948 = vmatprep.subr.mxu0 %v5875_v20  ;;  %4844 = vmatprep.subr.mxu1 %v7725_v31 }
 0x198   :  { %949 = vmatpush1.msra.mxu0 %v5879_v21  ;;  %4845 = vmatpush3.msra.mxu1 %v5970_v41 }
 0x199   :  { %950 = vmatprep.subr.mxu0 %v5885_v24  ;;  %4846 = vmatprep.subr.mxu1 %v7725_v31 }
 0x19a   :  { %951 = vmatpush1.msra.mxu0 %v7726_v47  ;;  %4847 = vmatpush3.msra.mxu1 %v7727_v48  ;;  %v6308_v47 = vld [vmem:[#allocation9 + $0x20] sm:$0xff] }
 0x19b   :  { %952 = vmatprep.subr.mxu0 %v7728_v50  ;;  %4848 = vmatprep.subr.mxu1 %v7725_v31  ;;  %v6314_v50 = vld [vmem:[#allocation9 + $0x8] sm:$0xff] }
 0x19c   :  { %953 = vmatpush1.msra.mxu0 %v7729_v52  ;;  %986 = vmatprep.mubr.f32.mxu0 %v7725_v31  ;;  %7735 = vst [vmem:[#allocation22_spill] sm:$0xff] %v6314_v50  ;;  %v6317_v52 = vld [vmem:[#allocation9] sm:$0xff] }
 0x19d   :  { %4849 = vmatpush3.msra.mxu1 %v7730_v53  ;;  %4850 = vmatprep.mubr.msk.f32.mxu1 %vm5706_vm0, %v7725_v31  ;;  %7736 = vst [vmem:[#allocation23_spill] sm:$0xff] %v6317_v52 }
 0x19e   :  { %4853 = vmatprep.subr.mxu1 %v7725_v31 }
 0x23d   :  { %v764_v54 = vpop.f32.mrf.mxu0  ;;  %v835_v56 = vpop.f32.mrf.mxu1 }
 0x23e   :  { %v844_v59 = vadd.f32 %v764_v54, %v7731_v58  ;;  %v843_v13 = vadd.f32 %v6095_v4, %v835_v56  ;;  %v7737_v56 = vld [vmem:[#allocation29_spill] sm:$0xff] }
 0x23f   :  { %v4817_v60 = vpop.f32.mrf.mxu1  ;;  %v766_v1 = vpop.f32.mrf.mxu0 }
 0x240   :  { %v4342_v62 = vmul.f32 -1.442695, %v844_v59  ;;  %v851_v3 = vadd.f32 %v766_v1, %v7732_v2  ;;  %v7738_v1 = vld [vmem:[#allocation30_spill] sm:$0xff] }
 0x242   :  { %5381 = vpow2.f32 %v4342_v62  ;;  %v4343_v5 = vmul.f32 -1.442695, %v851_v3 }
 0x244   :  { %5383 = vpow2.f32 %v4343_v5 }
 0x24f   :  { %v5382_v7 = vpop.eup %5381 }
 0x250   :  { %v848_v8 = vadd.f32 1.0, %v5382_v7 }
 0x251   :  { %v5384_v9 = vpop.eup %5383 }
 0x252   :  { %5385 = vrcp.f32 %v848_v8  ;;  %v855_v11 = vadd.f32 1.0, %v5384_v9 }
 0x254   :  { %5387 = vrcp.f32 %v855_v11 }
 0x25f   :  { %v5386_v14 = vpop.eup %5385 }
 0x260   :  { %v858_v15 = vmul.f32 %v5386_v14, %v843_v13 }
 0x261   :  { %v5388_v18 = vpop.eup %5387 }
 0x262   :  { %v859_v16 = vadd.f32 %v858_v15, %v6077_v63  ;;  %v861_v19 = vsub.f32 1.0, %v5388_v18  ;;  %v863_v24 = vmul.f32 %v5388_v18, %v6107_v44  ;;  %v6268_v63 = vld [vmem:[#allocation9 + $0xc8] sm:$0xff] }
 0x264   :  { %5389 = vtanh.f32 %v859_v16 }
 0x271   :  { %v5390_v20 = vpop.eup %5389 }
 0x272   :  { %v862_v21 = vmul.f32 %v5390_v20, %v861_v19 }
 0x274   :  { %v864_v0 = vadd.f32 %v863_v24, %v862_v21 }
 0x276   :  { %v6185_v61 = vsel %vm4344_vm2, %v864_v0, %v6107_v44  ;;  %v870_v23 = vsel %vm4344_vm2, %v864_v0, 0.0  ;;  %v6305_v44 = vld [vmem:[#allocation9 + $0x30] sm:$0xff] }
 0x277   :  { %872 = vst [vmem:[#allocation13 + $0x8] sm:$0xff] %v870_v23  ;;  %987 = vmatmul.mubr.f32.vlgmr.msra.gmra.mxu0 %v6185_v61  ;;  %4851 = vmatmul.mubr.f32.vlgmr.msra.gmra.mxu1 %v6185_v61 }
 0x278   :  { %4854 = vmatpush3.msra.mxu1 %v5881_v22  ;;  %1210 = vmatprep.mubr.f32.mxu0 %v7725_v31  ;;  %v6226_v22 = vld [vmem:[#allocation9 + $0x170] sm:$0xff] }
 0x279   :  { %4855 = vmatprep.subr.mxu1 %v7725_v31  ;;  %4885 = vmatprep.mubr.msk.f32.mxu1 %vm5706_vm0, %v7725_v31  ;;  %7733 = vst [vmem:[#allocation21_spill] sm:$0xff] %v6226_v22 }
 0x27a   :  { %4856 = vmatpush3.msra.mxu1 %v5898_v28  ;;  %1146 = vmatprep.subr.mxu0 %v6226_v22  ;;  %v6229_v28 = vld [vmem:[#allocation9 + $0x168] sm:$0xff] }
 0x27b   :  { %4857 = vmatprep.subr.mxu1 %v7725_v31  ;;  %1147 = vmatpush1.msra.mxu0 %v6229_v28 }
 0x27c   :  { %4858 = vmatpush3.msra.mxu1 %v5904_v29  ;;  %v6232_v29 = vld [vmem:[#allocation9 + $0x158] sm:$0xff] }
 0x27d   :  { %4859 = vmatprep.subr.mxu1 %v7725_v31  ;;  %1148 = vmatprep.subr.mxu0 %v6232_v29 }
 0x27e   :  { %4860 = vmatpush3.msra.mxu1 %v5910_v30  ;;  %v6235_v30 = vld [vmem:[#allocation9 + $0x150] sm:$0xff] }
 0x27f   :  { %4861 = vmatprep.subr.mxu1 %v7725_v31  ;;  %1149 = vmatpush1.msra.mxu0 %v6235_v30 }
 0x280   :  { %4862 = vmatpush3.msra.mxu1 %v5918_v32  ;;  %v6238_v32 = vld [vmem:[#allocation9 + $0x140] sm:$0xff] }
 0x281   :  { %4863 = vmatprep.subr.mxu1 %v7725_v31  ;;  %1150 = vmatprep.subr.mxu0 %v6238_v32 }
 0x282   :  { %4864 = vmatpush3.msra.mxu1 %v5924_v33  ;;  %v6241_v33 = vld [vmem:[#allocation9 + $0x138] sm:$0xff] }
 0x283   :  { %4865 = vmatprep.subr.mxu1 %v7725_v31  ;;  %1151 = vmatpush1.msra.mxu0 %v6241_v33 }
 0x284   :  { %4866 = vmatpush3.msra.mxu1 %v5929_v34  ;;  %v6244_v34 = vld [vmem:[#allocation9 + $0x128] sm:$0xff] }
 0x285   :  { %4867 = vmatprep.subr.mxu1 %v7725_v31  ;;  %1152 = vmatprep.subr.mxu0 %v6244_v34 }
 0x286   :  { %4868 = vmatpush3.msra.mxu1 %v5934_v35  ;;  %v6247_v35 = vld [vmem:[#allocation9 + $0x120] sm:$0xff] }
 0x287   :  { %4869 = vmatprep.subr.mxu1 %v7725_v31  ;;  %1153 = vmatpush1.msra.mxu0 %v6247_v35 }
 0x288   :  { %4870 = vmatpush3.msra.mxu1 %v5940_v36  ;;  %v6250_v36 = vld [vmem:[#allocation9 + $0x110] sm:$0xff] }
 0x289   :  { %4871 = vmatprep.subr.mxu1 %v7725_v31  ;;  %1154 = vmatprep.subr.mxu0 %v6250_v36 }
 0x28a   :  { %4872 = vmatpush3.msra.mxu1 %v5946_v37  ;;  %v6253_v37 = vld [vmem:[#allocation9 + $0x108] sm:$0xff] }
 0x28b   :  { %4873 = vmatprep.subr.mxu1 %v7725_v31  ;;  %1155 = vmatpush1.msra.mxu0 %v6253_v37 }
 0x28c   :  { %4874 = vmatpush3.msra.mxu1 %v5952_v38  ;;  %v6256_v38 = vld [vmem:[#allocation9 + $0xf8] sm:$0xff] }
 0x28d   :  { %4875 = vmatprep.subr.mxu1 %v7725_v31  ;;  %1156 = vmatprep.subr.mxu0 %v6256_v38 }
 0x28e   :  { %4876 = vmatpush3.msra.mxu1 %v5958_v39  ;;  %v6259_v39 = vld [vmem:[#allocation9 + $0xf0] sm:$0xff] }
 0x28f   :  { %4877 = vmatprep.subr.mxu1 %v7725_v31  ;;  %1157 = vmatpush1.msra.mxu0 %v6259_v39 }
 0x290   :  { %4878 = vmatpush3.msra.mxu1 %v5964_v40  ;;  %v6262_v40 = vld [vmem:[#allocation9 + $0xe0] sm:$0xff] }
 0x291   :  { %4879 = vmatprep.subr.mxu1 %v7725_v31  ;;  %1158 = vmatprep.subr.mxu0 %v6262_v40 }
 0x292   :  { %4880 = vmatpush3.msra.mxu1 %v5970_v41  ;;  %v6265_v41 = vld [vmem:[#allocation9 + $0xd8] sm:$0xff] }
 0x293   :  { %4881 = vmatprep.subr.mxu1 %v7725_v31  ;;  %1159 = vmatpush1.msra.mxu0 %v6265_v41 }
 0x294   :  { %4882 = vmatpush3.msra.mxu1 %v7727_v48  ;;  %1160 = vmatprep.subr.mxu0 %v6268_v63  ;;  %v6311_v48 = vld [vmem:[#allocation9 + $0x18] sm:$0xff] }
 0x295   :  { %4883 = vmatprep.subr.mxu1 %v7725_v31  ;;  %1161 = vmatpush1.msra.mxu0 %v6270_v25  ;;  %7734 = vst [vmem:[#allocation24_spill] sm:$0xff] %v6311_v48 }
 0x296   :  { %4884 = vmatpush3.msra.mxu1 %v7730_v53  ;;  %1162 = vmatprep.subr.mxu0 %v6272_v10 }
 0x297   :  { %4888 = vmatprep.subr.mxu1 %v7725_v31  ;;  %1163 = vmatpush1.msra.mxu0 %v6275_v42 }
 0x298   :  { %1164 = vmatprep.subr.mxu0 %v6278_v27 }
 0x299   :  { %1165 = vmatpush1.msra.mxu0 %v6281_v46 }
 0x29a   :  { %1166 = vmatprep.subr.mxu0 %v6284_v51 }
 0x29b   :  { %1167 = vmatpush1.msra.mxu0 %v6287_v55 }
 0x29c   :  { %1168 = vmatprep.subr.mxu0 %v6290_v12 }
 0x29d   :  { %1169 = vmatpush1.msra.mxu0 %v6293_v45 }
 0x29e   :  { %1170 = vmatprep.subr.mxu0 %v6296_v6 }
 0x29f   :  { %1171 = vmatpush1.msra.mxu0 %v6299_v49 }
 0x2a0   :  { %1172 = vmatprep.subr.mxu0 %v6302_v57 }
 0x2a1   :  { %1173 = vmatpush1.msra.mxu0 %v6305_v44 }
 0x2a2   :  { %1174 = vmatprep.subr.mxu0 %v6308_v47 }
 0x2a3   :  { %1175 = vmatpush1.msra.mxu0 %v6311_v48 }
 0x2a4   :  { %1176 = vmatprep.subr.mxu0 %v6314_v50 }
 0x2a5   :  { %1177 = vmatpush1.msra.mxu0 %v6317_v52 }
 0x2a6   :  { %1370 = vmatprep.subr.mxu0 %v6226_v22 }
 0x337   :  { %v988_v53 = vpop.f32.mrf.mxu0  ;;  %v1059_v54 = vpop.f32.mrf.mxu1 }
 0x338   :  { %v1068_v58 = vadd.f32 %v988_v53, %v7737_v56  ;;  %v1067_v11 = vadd.f32 %v6095_v4, %v1059_v54  ;;  %v6381_v53 = vld [vmem:[#allocation9 + $0x148] sm:$0xff]  ;;  %v6385_v54 = vld [vmem:[#allocation9 + $0x130] sm:$0xff]  ;;  %v6389_v56 = vld [vmem:[#allocation9 + $0x118] sm:$0xff] }
 0x339   :  { %v4852_v59 = vpop.f32.mrf.mxu1  ;;  %v990_v62 = vpop.f32.mrf.mxu0 }
 0x33a   :  { %v4345_v60 = vmul.f32 -1.442695, %v1068_v58  ;;  %v1075_v2 = vadd.f32 %v990_v62, %v7738_v1  ;;  %v6393_v58 = vld [vmem:[#allocation9 + $0x100] sm:$0xff]  ;;  %v6397_v59 = vld [vmem:[#allocation9 + $0xe8] sm:$0xff]  ;;  %v6403_v62 = vld [vmem:[#allocation9 + $0xb8] sm:$0xff] }
 0x33b   :  { %v6407_v1 = vld [vmem:[#allocation9 + $0xa0] sm:$0xff] }
 0x33c   :  { %5391 = vpow2.f32 %v4345_v60  ;;  %v4346_v3 = vmul.f32 -1.442695, %v1075_v2  ;;  %v6400_v60 = vld [vmem:[#allocation9 + $0xd0] sm:$0xff]  ;;  %v6411_v2 = vld [vmem:[#allocation9 + $0x88] sm:$0xff] }
 0x33e   :  { %5393 = vpow2.f32 %v4346_v3  ;;  %v6415_v3 = vld [vmem:[#allocation9 + $0x70] sm:$0xff] }
 0x349   :  { %v5392_v5 = vpop.eup %5391 }
 0x34a   :  { %v1072_v7 = vadd.f32 1.0, %v5392_v5  ;;  %v6419_v5 = vld [vmem:[#allocation9 + $0x58] sm:$0xff] }
 0x34b   :  { %v5394_v8 = vpop.eup %5393 }
 0x34c   :  { %5395 = vrcp.f32 %v1072_v7  ;;  %v1079_v9 = vadd.f32 1.0, %v5394_v8  ;;  %v6423_v7 = vld [vmem:[#allocation9 + $0x40] sm:$0xff]  ;;  %v6427_v8 = vld [vmem:[#allocation9 + $0x28] sm:$0xff] }
 0x34d   :  { %7739 = vst [vmem:[#allocation25_spill] sm:$0xff] %v6427_v8 }
 0x34e   :  { %5397 = vrcp.f32 %v1079_v9  ;;  %v6431_v9 = vld [vmem:[#allocation9 + $0x10] sm:$0xff] }
 0x34f   :  { %7740 = vst [vmem:[#allocation27_spill] sm:$0xff] %v6431_v9 }
 0x359   :  { %v5396_v13 = vpop.eup %5395 }
 0x35a   :  { %v1082_v14 = vmul.f32 %v5396_v13, %v1067_v11 }
 0x35b   :  { %v5398_v16 = vpop.eup %5397 }
 0x35c   :  { %v1083_v15 = vadd.f32 %v1082_v14, %v6085_v26  ;;  %v1085_v18 = vsub.f32 1.0, %v5398_v16  ;;  %v1087_v21 = vmul.f32 %v5398_v16, %v6185_v61  ;;  %v6373_v26 = vld [vmem:[#allocation9 + $0x178] sm:$0xff]  ;;  %v7741_v14 = vld [vmem:[#allocation31_spill] sm:$0xff] }
 0x35e   :  { %5399 = vtanh.f32 %v1083_v15 }
 0x36b   :  { %v5400_v19 = vpop.eup %5399 }
 0x36c   :  { %v1086_v20 = vmul.f32 %v5400_v19, %v1085_v18 }
 0x36e   :  { %v1088_v24 = vadd.f32 %v1087_v21, %v1086_v20  ;;  %v7742_v20 = vld [vmem:[#allocation32_spill] sm:$0xff] }
 0x370   :  { %v6332_v0 = vsel %vm4347_vm3, %v1088_v24, %v6185_v61  ;;  %v1094_v23 = vsel %vm4347_vm3, %v1088_v24, 0.0  ;;  %v6377_v61 = vld [vmem:[#allocation9 + $0x160] sm:$0xff] }
 0x371   :  { %1096 = vst [vmem:[#allocation13 + $0x10] sm:$0xff] %v1094_v23  ;;  %1211 = vmatmul.mubr.f32.vlgmr.msra.gmra.mxu0 %v6332_v0  ;;  %4886 = vmatmul.mubr.f32.vlgmr.msra.gmra.mxu1 %v6332_v0 }
 0x372   :  { %1371 = vmatpush1.msra.mxu0 %v6229_v28  ;;  %1434 = vmatprep.mubr.f32.mxu0 %v7725_v31 }
 0x373   :  { %1372 = vmatprep.subr.mxu0 %v6232_v29  ;;  %4920 = vmatprep.mubr.msk.f32.mxu1 %vm5706_vm0, %v7725_v31 }
 0x374   :  { %1373 = vmatpush1.msra.mxu0 %v6235_v30  ;;  %4889 = vmatpush3.msra.mxu1 %v6373_v26 }
 0x375   :  { %1374 = vmatprep.subr.mxu0 %v6238_v32  ;;  %4890 = vmatprep.subr.mxu1 %v7725_v31 }
 0x376   :  { %1375 = vmatpush1.msra.mxu0 %v6241_v33  ;;  %4891 = vmatpush3.msra.mxu1 %v6377_v61 }
 0x377   :  { %1376 = vmatprep.subr.mxu0 %v6244_v34  ;;  %4892 = vmatprep.subr.mxu1 %v7725_v31 }
 0x378   :  { %1377 = vmatpush1.msra.mxu0 %v6247_v35  ;;  %4893 = vmatpush3.msra.mxu1 %v6381_v53 }
 0x379   :  { %1378 = vmatprep.subr.mxu0 %v6250_v36  ;;  %4894 = vmatprep.subr.mxu1 %v7725_v31 }
 0x37a   :  { %1379 = vmatpush1.msra.mxu0 %v6253_v37  ;;  %4895 = vmatpush3.msra.mxu1 %v6385_v54 }
 0x37b   :  { %1380 = vmatprep.subr.mxu0 %v6256_v38  ;;  %4896 = vmatprep.subr.mxu1 %v7725_v31 }
 0x37c   :  { %1381 = vmatpush1.msra.mxu0 %v6259_v39  ;;  %4897 = vmatpush3.msra.mxu1 %v6389_v56 }
 0x37d   :  { %1382 = vmatprep.subr.mxu0 %v6262_v40  ;;  %4898 = vmatprep.subr.mxu1 %v7725_v31 }
 0x37e   :  { %1383 = vmatpush1.msra.mxu0 %v6265_v41  ;;  %4899 = vmatpush3.msra.mxu1 %v6393_v58 }
 0x37f   :  { %1384 = vmatprep.subr.mxu0 %v6268_v63  ;;  %4900 = vmatprep.subr.mxu1 %v7725_v31 }
 0x380   :  { %1385 = vmatpush1.msra.mxu0 %v6270_v25  ;;  %4901 = vmatpush3.msra.mxu1 %v6397_v59 }
 0x381   :  { %1386 = vmatprep.subr.mxu0 %v6272_v10  ;;  %4902 = vmatprep.subr.mxu1 %v7725_v31 }
 0x382   :  { %1387 = vmatpush1.msra.mxu0 %v6275_v42  ;;  %4903 = vmatpush3.msra.mxu1 %v6400_v60 }
 0x383   :  { %1388 = vmatprep.subr.mxu0 %v6278_v27  ;;  %4904 = vmatprep.subr.mxu1 %v7725_v31 }
 0x384   :  { %1389 = vmatpush1.msra.mxu0 %v6281_v46  ;;  %4905 = vmatpush3.msra.mxu1 %v6403_v62 }
 0x385   :  { %1390 = vmatprep.subr.mxu0 %v6284_v51  ;;  %4906 = vmatprep.subr.mxu1 %v7725_v31 }
 0x386   :  { %1391 = vmatpush1.msra.mxu0 %v6287_v55  ;;  %4907 = vmatpush3.msra.mxu1 %v6407_v1 }
 0x387   :  { %1392 = vmatprep.subr.mxu0 %v6290_v12  ;;  %4908 = vmatprep.subr.mxu1 %v7725_v31 }
 0x388   :  { %1393 = vmatpush1.msra.mxu0 %v6293_v45  ;;  %4909 = vmatpush3.msra.mxu1 %v6411_v2 }
 0x389   :  { %1394 = vmatprep.subr.mxu0 %v6296_v6  ;;  %4910 = vmatprep.subr.mxu1 %v7725_v31 }
 0x38a   :  { %1395 = vmatpush1.msra.mxu0 %v6299_v49  ;;  %4911 = vmatpush3.msra.mxu1 %v6415_v3 }
 0x38b   :  { %1396 = vmatprep.subr.mxu0 %v6302_v57  ;;  %4912 = vmatprep.subr.mxu1 %v7725_v31 }
 0x38c   :  { %1397 = vmatpush1.msra.mxu0 %v6305_v44  ;;  %4913 = vmatpush3.msra.mxu1 %v6419_v5 }
 0x38d   :  { %1398 = vmatprep.subr.mxu0 %v6308_v47  ;;  %4914 = vmatprep.subr.mxu1 %v7725_v31 }
 0x38e   :  { %1399 = vmatpush1.msra.mxu0 %v6311_v48  ;;  %4915 = vmatpush3.msra.mxu1 %v6423_v7 }
 0x38f   :  { %1400 = vmatprep.subr.mxu0 %v6314_v50  ;;  %4916 = vmatprep.subr.mxu1 %v7725_v31 }
 0x390   :  { %1401 = vmatpush1.msra.mxu0 %v6317_v52  ;;  %4917 = vmatpush3.msra.mxu1 %v6427_v8 }
 0x391   :  { %1594 = vmatprep.subr.mxu0 %v6226_v22  ;;  %4918 = vmatprep.subr.mxu1 %v7725_v31 }
 0x392   :  { %4919 = vmatpush3.msra.mxu1 %v6431_v9 }
 0x393   :  { %4923 = vmatprep.subr.mxu1 %v7725_v31 }
 0x431   :  { %v1212_v11 = vpop.f32.mrf.mxu0  ;;  %v1283_v13 = vpop.f32.mrf.mxu1 }
 0x432   :  { %v1292_v15 = vadd.f32 %v1212_v11, %v7741_v14  ;;  %v1291_v9 = vadd.f32 %v6095_v4, %v1283_v13 }
 0x433   :  { %v4887_v16 = vpop.f32.mrf.mxu1  ;;  %v1214_v19 = vpop.f32.mrf.mxu0 }
 0x434   :  { %v4348_v18 = vmul.f32 -1.442695, %v1292_v15  ;;  %v1299_v21 = vadd.f32 %v1214_v19, %v7742_v20 }
 0x436   :  { %5401 = vpow2.f32 %v4348_v18  ;;  %v4349_v24 = vmul.f32 -1.442695, %v1299_v21 }
 0x438   :  { %5403 = vpow2.f32 %v4349_v24  ;;  %v7749_v24 = vld [vmem:[#allocation33_spill] sm:$0xff] }
 0x443   :  { %v5402_v23 = vpop.eup %5401 }
 0x444   :  { %v1296_v22 = vadd.f32 1.0, %v5402_v23 }
 0x445   :  { %v5404_v52 = vpop.eup %5403 }
 0x446   :  { %5405 = vrcp.f32 %v1296_v22  ;;  %v1303_v50 = vadd.f32 1.0, %v5404_v52  ;;  %v7745_v52 = vld [vmem:[#allocation22_spill] sm:$0xff] }
 0x448   :  { %5407 = vrcp.f32 %v1303_v50 }
 0x453   :  { %v5406_v8 = vpop.eup %5405 }
 0x454   :  { %v1306_v48 = vmul.f32 %v5406_v8, %v1291_v9  ;;  %v7747_v8 = vld [vmem:[#allocation27_spill] sm:$0xff]  ;;  %v7748_v9 = vld [vmem:[#allocation21_spill] sm:$0xff] }
 0x455   :  { %v5408_v14 = vpop.eup %5407 }
 0x456   :  { %v1307_v11 = vadd.f32 %v1306_v48, %v6083_v43  ;;  %v1309_v15 = vsub.f32 1.0, %v5408_v14  ;;  %v1311_v19 = vmul.f32 %v5408_v14, %v6332_v0  ;;  %v7743_v43 = vld [vmem:[#allocation24_spill] sm:$0xff]  ;;  %v7744_v48 = vld [vmem:[#allocation25_spill] sm:$0xff] }
 0x458   :  { %5409 = vtanh.f32 %v1307_v11 }
 0x465   :  { %v5410_v16 = vpop.eup %5409 }
 0x466   :  { %v1310_v18 = vmul.f32 %v5410_v16, %v1309_v15  ;;  %v7750_v16 = vld [vmem:[#allocation34_spill] sm:$0xff] }
 0x468   :  { %v1312_v20 = vadd.f32 %v1311_v19, %v1310_v18 }
 0x46a   :  { %v6446_v22 = vsel %vm4350_vm4, %v1312_v20, %v6332_v0  ;;  %v1318_v50 = vsel %vm4350_vm4, %v1312_v20, 0.0  ;;  %v7746_v0 = vld [vmem:[#allocation23_spill] sm:$0xff] }
 0x46b   :  { %1320 = vst [vmem:[#allocation13 + $0x18] sm:$0xff] %v1318_v50  ;;  %1435 = vmatmul.mubr.f32.vlgmr.msra.gmra.mxu0 %v6446_v22  ;;  %4921 = vmatmul.mubr.f32.vlgmr.msra.gmra.mxu1 %v6446_v22 }
 0x46c   :  { %1595 = vmatpush1.msra.mxu0 %v6229_v28  ;;  %4924 = vmatpush3.msra.mxu1 %v6373_v26 }
 0x46d   :  { %1596 = vmatprep.subr.mxu0 %v6232_v29  ;;  %4925 = vmatprep.subr.mxu1 %v7725_v31 }
 0x46e   :  { %1597 = vmatpush1.msra.mxu0 %v6235_v30  ;;  %4926 = vmatpush3.msra.mxu1 %v6377_v61 }
 0x46f   :  { %1598 = vmatprep.subr.mxu0 %v6238_v32  ;;  %4927 = vmatprep.subr.mxu1 %v7725_v31 }
 0x470   :  { %1599 = vmatpush1.msra.mxu0 %v6241_v33  ;;  %4928 = vmatpush3.msra.mxu1 %v6381_v53 }
 0x471   :  { %1600 = vmatprep.subr.mxu0 %v6244_v34  ;;  %4929 = vmatprep.subr.mxu1 %v7725_v31 }
 0x472   :  { %1601 = vmatpush1.msra.mxu0 %v6247_v35  ;;  %4930 = vmatpush3.msra.mxu1 %v6385_v54 }
 0x473   :  { %1602 = vmatprep.subr.mxu0 %v6250_v36  ;;  %4931 = vmatprep.subr.mxu1 %v7725_v31 }
 0x474   :  { %1603 = vmatpush1.msra.mxu0 %v6253_v37  ;;  %4932 = vmatpush3.msra.mxu1 %v6389_v56 }
 0x475   :  { %1604 = vmatprep.subr.mxu0 %v6256_v38  ;;  %4933 = vmatprep.subr.mxu1 %v7725_v31 }
 0x476   :  { %1605 = vmatpush1.msra.mxu0 %v6259_v39  ;;  %4934 = vmatpush3.msra.mxu1 %v6393_v58 }
 0x477   :  { %1606 = vmatprep.subr.mxu0 %v6262_v40  ;;  %4935 = vmatprep.subr.mxu1 %v7725_v31 }
 0x478   :  { %1607 = vmatpush1.msra.mxu0 %v6265_v41  ;;  %4936 = vmatpush3.msra.mxu1 %v6397_v59 }
 0x479   :  { %1608 = vmatprep.subr.mxu0 %v6268_v63  ;;  %4937 = vmatprep.subr.mxu1 %v7725_v31 }
 0x47a   :  { %1609 = vmatpush1.msra.mxu0 %v6270_v25  ;;  %4938 = vmatpush3.msra.mxu1 %v6400_v60 }
 0x47b   :  { %1610 = vmatprep.subr.mxu0 %v6272_v10  ;;  %4939 = vmatprep.subr.mxu1 %v7725_v31 }
 0x47c   :  { %1611 = vmatpush1.msra.mxu0 %v6275_v42  ;;  %4940 = vmatpush3.msra.mxu1 %v6403_v62 }
 0x47d   :  { %1612 = vmatprep.subr.mxu0 %v6278_v27  ;;  %4941 = vmatprep.subr.mxu1 %v7725_v31 }
 0x47e   :  { %1613 = vmatpush1.msra.mxu0 %v6281_v46  ;;  %4942 = vmatpush3.msra.mxu1 %v6407_v1 }
 0x47f   :  { %1614 = vmatprep.subr.mxu0 %v6284_v51  ;;  %4943 = vmatprep.subr.mxu1 %v7725_v31 }
 0x480   :  { %1615 = vmatpush1.msra.mxu0 %v6287_v55  ;;  %4944 = vmatpush3.msra.mxu1 %v6411_v2 }
 0x481   :  { %1616 = vmatprep.subr.mxu0 %v6290_v12  ;;  %4945 = vmatprep.subr.mxu1 %v7725_v31 }
 0x482   :  { %1617 = vmatpush1.msra.mxu0 %v6293_v45  ;;  %4946 = vmatpush3.msra.mxu1 %v6415_v3 }
 0x483   :  { %1618 = vmatprep.subr.mxu0 %v6296_v6  ;;  %4947 = vmatprep.subr.mxu1 %v7725_v31 }
 0x484   :  { %1619 = vmatpush1.msra.mxu0 %v6299_v49  ;;  %4948 = vmatpush3.msra.mxu1 %v6419_v5 }
 0x485   :  { %1620 = vmatprep.subr.mxu0 %v6302_v57  ;;  %4949 = vmatprep.subr.mxu1 %v7725_v31 }
 0x486   :  { %1621 = vmatpush1.msra.mxu0 %v6305_v44  ;;  %4950 = vmatpush3.msra.mxu1 %v6423_v7 }
 0x487   :  { %1622 = vmatprep.subr.mxu0 %v6308_v47  ;;  %4951 = vmatprep.subr.mxu1 %v7725_v31 }
 0x488   :  { %1623 = vmatpush1.msra.mxu0 %v7743_v43  ;;  %4952 = vmatpush3.msra.mxu1 %v7744_v48  ;;  %v7751_v43 = vld [vmem:[#allocation42_spill] sm:$0xff] }
 0x489   :  { %1624 = vmatprep.subr.mxu0 %v7745_v52  ;;  %4953 = vmatprep.subr.mxu1 %v7725_v31 }
 0x48a   :  { %1625 = vmatpush1.msra.mxu0 %v7746_v0  ;;  %1658 = vmatprep.mubr.f32.mxu0 %v7725_v31 }
 0x48b   :  { %4954 = vmatpush3.msra.mxu1 %v7747_v8  ;;  %4955 = vmatprep.mubr.msk.f32.mxu1 %vm5706_vm0, %v7725_v31 }
 0x48c   :  { %1818 = vmatprep.subr.mxu0 %v7748_v9  ;;  %4958 = vmatprep.subr.mxu1 %v7725_v31 }
 0x52b   :  { %v1436_v13 = vpop.f32.mrf.mxu0  ;;  %v1507_v21 = vpop.f32.mrf.mxu1 }
 0x52c   :  { %v1516_v23 = vadd.f32 %v1436_v13, %v7749_v24  ;;  %v1515_v9 = vadd.f32 %v6095_v4, %v1507_v21  ;;  %v2016_v21 = vld [vmem:[#allocation9 + $0xb0] sm:$0xff] }
 0x52d   :  { %v4922_v11 = vpop.f32.mrf.mxu1  ;;  %v1438_v15 = vpop.f32.mrf.mxu0 }
 0x52e   :  { %v4351_v14 = vmul.f32 -1.442695, %v1516_v23  ;;  %v1523_v18 = vadd.f32 %v1438_v15, %v7750_v16 }
 0x530   :  { %5411 = vpow2.f32 %v4351_v14  ;;  %v4352_v19 = vmul.f32 -1.442695, %v1523_v18  ;;  %v2015_v18 = vld [vmem:[#allocation9 + $0xa8] sm:$0xff] }
 0x532   :  { %5413 = vpow2.f32 %v4352_v19  ;;  %v2013_v19 = vld [vmem:[#allocation9 + $0x98] sm:$0xff] }
 0x53d   :  { %v5412_v20 = vpop.eup %5411 }
 0x53e   :  { %v1520_v50 = vadd.f32 1.0, %v5412_v20  ;;  %v2012_v20 = vld [vmem:[#allocation9 + $0x90] sm:$0xff] }
 0x53f   :  { %v5414_v8 = vpop.eup %5413 }
 0x540   :  { %5415 = vrcp.f32 %v1520_v50  ;;  %v1527_v0 = vadd.f32 1.0, %v5414_v8  ;;  %v2018_v8 = vld [vmem:[#allocation9 + $0xc0] sm:$0xff] }
 0x541   :  { %v2010_v50 = vld [vmem:[#allocation9 + $0x80] sm:$0xff] }
 0x542   :  { %5417 = vrcp.f32 %v1527_v0  ;;  %v2019_v0 = vld [vmem:[#allocation9 + $0xc8] sm:$0xff] }
 0x54d   :  { %v5416_v52 = vpop.eup %5415 }
 0x54e   :  { %v1530_v48 = vmul.f32 %v5416_v52, %v1515_v9  ;;  %v2009_v9 = vld [vmem:[#allocation9 + $0x78] sm:$0xff] }
 0x54f   :  { %v5418_v24 = vpop.eup %5417 }
 0x550   :  { %v1531_v13 = vadd.f32 %v1530_v48, %v7751_v43  ;;  %v1533_v23 = vsub.f32 1.0, %v5418_v24  ;;  %v1535_v15 = vmul.f32 %v5418_v24, %v6446_v22  ;;  %v2006_v24 = vld [vmem:[#allocation9 + $0x60] sm:$0xff] }
 0x552   :  { %5419 = vtanh.f32 %v1531_v13  ;;  %v2007_v13 = vld [vmem:[#allocation9 + $0x68] sm:$0xff] }
 0x55f   :  { %v5420_v11 = vpop.eup %5419 }
 0x560   :  { %v1534_v14 = vmul.f32 %v5420_v11, %v1533_v23  ;;  %v2273_v23 = vld [vmem:[#allocation7 + $0x2f8] sm:$0xff]  ;;  %v2004_v11 = vld [vmem:[#allocation9 + $0x50] sm:$0xff] }
 0x562   :  { %v6524_v16 = vadd.f32 %v1535_v15, %v1534_v14  ;;  %v2003_v14 = vld [vmem:[#allocation9 + $0x48] sm:$0xff]  ;;  %v2001_v15 = vld [vmem:[#allocation9 + $0x38] sm:$0xff] }
 0x564   :  { %v6531_v4 = vsel %vm4353_vm5, %v6524_v16, %v6446_v22 }
 0x565   :  { %1659 = vmatmul.mubr.f32.vlgmr.msra.gmra.mxu0 %v6531_v4  ;;  %4956 = vmatmul.mubr.f32.vlgmr.msra.gmra.mxu1 %v6531_v4 }
 0x566   :  { %1819 = vmatpush1.msra.mxu0 %v6229_v28  ;;  %4959 = vmatpush3.msra.mxu1 %v6373_v26  ;;  %v7752_v28 = vld [vmem:[#allocation24_spill] sm:$0xff] }
 0x567   :  { %1820 = vmatprep.subr.mxu0 %v6232_v29  ;;  %4960 = vmatprep.subr.mxu1 %v7725_v31  ;;  %v7753_v29 = vld [vmem:[#allocation25_spill] sm:$0xff] }
 0x568   :  { %1821 = vmatpush1.msra.mxu0 %v6235_v30  ;;  %4961 = vmatpush3.msra.mxu1 %v6377_v61  ;;  %v7754_v30 = vld [vmem:[#allocation22_spill] sm:$0xff] }
 0x569   :  { %1822 = vmatprep.subr.mxu0 %v6238_v32  ;;  %4962 = vmatprep.subr.mxu1 %v7725_v31  ;;  %v7755_v32 = vld [vmem:[#allocation23_spill] sm:$0xff] }
 0x56a   :  { %1823 = vmatpush1.msra.mxu0 %v6241_v33  ;;  %4963 = vmatpush3.msra.mxu1 %v6381_v53  ;;  %v7756_v33 = vld [vmem:[#allocation27_spill] sm:$0xff] }
 0x56b   :  { %1824 = vmatprep.subr.mxu0 %v6244_v34  ;;  %4964 = vmatprep.subr.mxu1 %v7725_v31 }
 0x56c   :  { %1825 = vmatpush1.msra.mxu0 %v6247_v35  ;;  %4965 = vmatpush3.msra.mxu1 %v6385_v54 }
 0x56d   :  { %1826 = vmatprep.subr.mxu0 %v6250_v36  ;;  %4966 = vmatprep.subr.mxu1 %v7725_v31  ;;  %v7757_v36 = vld [vmem:[#allocation35_spill] sm:$0xff] }
 0x56e   :  { %1827 = vmatpush1.msra.mxu0 %v6253_v37  ;;  %4967 = vmatpush3.msra.mxu1 %v6389_v56 }
 0x56f   :  { %1828 = vmatprep.subr.mxu0 %v6256_v38  ;;  %4968 = vmatprep.subr.mxu1 %v7725_v31 }
 0x570   :  { %1829 = vmatpush1.msra.mxu0 %v6259_v39  ;;  %4969 = vmatpush3.msra.mxu1 %v6393_v58 }
 0x571   :  { %1830 = vmatprep.subr.mxu0 %v6262_v40  ;;  %4970 = vmatprep.subr.mxu1 %v7725_v31 }
 0x572   :  { %1831 = vmatpush1.msra.mxu0 %v6265_v41  ;;  %4971 = vmatpush3.msra.mxu1 %v6397_v59  ;;  %v7758_v41 = vld [vmem:[#allocation36_spill] sm:$0xff] }
 0x573   :  { %1832 = vmatprep.subr.mxu0 %v6268_v63  ;;  %4972 = vmatprep.subr.mxu1 %v7725_v31 }
 0x574   :  { %1833 = vmatpush1.msra.mxu0 %v6270_v25  ;;  %4973 = vmatpush3.msra.mxu1 %v6400_v60 }
 0x575   :  { %1834 = vmatprep.subr.mxu0 %v6272_v10  ;;  %4974 = vmatprep.subr.mxu1 %v7725_v31 }
 0x576   :  { %1835 = vmatpush1.msra.mxu0 %v6275_v42  ;;  %4975 = vmatpush3.msra.mxu1 %v6403_v62 }
 0x577   :  { %1836 = vmatprep.subr.mxu0 %v6278_v27  ;;  %4976 = vmatprep.subr.mxu1 %v7725_v31 }
 0x578   :  { %1837 = vmatpush1.msra.mxu0 %v6281_v46  ;;  %4977 = vmatpush3.msra.mxu1 %v6407_v1 }
 0x579   :  { %1838 = vmatprep.subr.mxu0 %v6284_v51  ;;  %4978 = vmatprep.subr.mxu1 %v7725_v31  ;;  %v6603_v51 = vld [vmem:[#allocation12] ss:$0 sm:$0xff] }
 0x57a   :  { %1839 = vmatpush1.msra.mxu0 %v6287_v55  ;;  %4979 = vmatpush3.msra.mxu1 %v6411_v2 }
 0x57b   :  { %1840 = vmatprep.subr.mxu0 %v6290_v12  ;;  %4980 = vmatprep.subr.mxu1 %v7725_v31 }
 0x57c   :  { %1841 = vmatpush1.msra.mxu0 %v6293_v45  ;;  %4981 = vmatpush3.msra.mxu1 %v6415_v3 }
 0x57d   :  { %1842 = vmatprep.subr.mxu0 %v6296_v6  ;;  %4982 = vmatprep.subr.mxu1 %v7725_v31  ;;  %v7759_v6 = vld [vmem:[#allocation41_spill] sm:$0xff] }
 0x57e   :  { %1843 = vmatpush1.msra.mxu0 %v6299_v49  ;;  %4983 = vmatpush3.msra.mxu1 %v6419_v5 }
 0x57f   :  { %1844 = vmatprep.subr.mxu0 %v6302_v57  ;;  %4984 = vmatprep.subr.mxu1 %v7725_v31 }
 0x580   :  { %1845 = vmatpush1.msra.mxu0 %v6305_v44  ;;  %4985 = vmatpush3.msra.mxu1 %v6423_v7 }
 0x581   :  { %1846 = vmatprep.subr.mxu0 %v6308_v47  ;;  %4986 = vmatprep.subr.mxu1 %v7725_v31 }
 0x582   :  { %1847 = vmatpush1.msra.mxu0 %v7752_v28  ;;  %4987 = vmatpush3.msra.mxu1 %v7753_v29  ;;  %v1998_v28 = vld [vmem:[#allocation9 + $0x20] sm:$0xff] }
 0x583   :  { %1848 = vmatprep.subr.mxu0 %v7754_v30  ;;  %4988 = vmatprep.subr.mxu1 %v7725_v31  ;;  %v1995_v30 = vld [vmem:[#allocation9 + $0x8] sm:$0xff] }
 0x584   :  { %1849 = vmatpush1.msra.mxu0 %v7755_v32  ;;  %1882 = vmatprep.mubr.f32.mxu0 %v7725_v31  ;;  %v1994_v32 = vld [vmem:[#allocation9] sm:$0xff] }
 0x585   :  { %4989 = vmatpush3.msra.mxu1 %v7756_v33  ;;  %4990 = vmatprep.mubr.msk.f32.mxu1 %vm5706_vm0, %v7725_v31 }
 0x586   :  { %4993 = vmatprep.subr.mxu1 %v7725_v31 }
 0x625   :  { %v1660_v34 = vpop.f32.mrf.mxu0  ;;  %v1731_v35 = vpop.f32.mrf.mxu1 }
 0x626   :  { %v1740_v37 = vadd.f32 %v1660_v34, %v7757_v36  ;;  %v1739_v55 = vadd.f32 %v6603_v51, %v1731_v35  ;;  %v7760_v36 = vld [vmem:[#allocation37_spill] sm:$0xff] }
 0x627   :  { %v4957_v38 = vpop.f32.mrf.mxu1  ;;  %v1662_v40 = vpop.f32.mrf.mxu0 }
 0x628   :  { %v4354_v39 = vmul.f32 -1.442695, %v1740_v37  ;;  %v1747_v63 = vadd.f32 %v1662_v40, %v7758_v41  ;;  %v7761_v41 = vld [vmem:[#allocation38_spill] sm:$0xff] }
 0x62a   :  { %5421 = vpow2.f32 %v4354_v39  ;;  %v4355_v25 = vmul.f32 -1.442695, %v1747_v63 }
 0x62c   :  { %5423 = vpow2.f32 %v4355_v25 }
 0x637   :  { %v5422_v10 = vpop.eup %5421 }
 0x638   :  { %v1744_v42 = vadd.f32 1.0, %v5422_v10 }
 0x639   :  { %v5424_v27 = vpop.eup %5423 }
 0x63a   :  { %5425 = vrcp.f32 %v1744_v42  ;;  %v1751_v46 = vadd.f32 1.0, %v5424_v27 }
 0x63c   :  { %5427 = vrcp.f32 %v1751_v46 }
 0x647   :  { %v5426_v12 = vpop.eup %5425 }
 0x648   :  { %v1754_v45 = vmul.f32 %v5426_v12, %v1739_v55 }
 0x649   :  { %v5428_v57 = vpop.eup %5427 }
 0x64a   :  { %v1755_v49 = vadd.f32 %v1754_v45, %v7759_v6  ;;  %v1757_v44 = vsub.f32 1.0, %v5428_v57  ;;  %v1759_v43 = vmul.f32 %v5428_v57, %v6531_v4  ;;  %v7762_v6 = vld [vmem:[#allocation44_spill] sm:$0xff] }
 0x64c   :  { %5429 = vtanh.f32 %v1755_v49 }
 0x659   :  { %v5430_v47 = vpop.eup %5429 }
 0x65a   :  { %v1758_v22 = vmul.f32 %v5430_v47, %v1757_v44 }
 0x65c   :  { %v6608_v48 = vadd.f32 %v1759_v43, %v1758_v22 }
 0x65e   :  { %v6615_v52 = vsel %vm4356_vm6, %v6608_v48, %v6531_v4  ;;  %v2000_v4 = vld [vmem:[#allocation9 + $0x30] sm:$0xff] }
 0x65f   :  { %1883 = vmatmul.mubr.f32.vlgmr.msra.gmra.mxu0 %v6615_v52  ;;  %4991 = vmatmul.mubr.f32.vlgmr.msra.gmra.mxu1 %v6615_v52 }
 0x660   :  { %4994 = vmatpush3.msra.mxu1 %v6373_v26  ;;  %2106 = vmatprep.mubr.f32.mxu0 %v7725_v31  ;;  %v2040_v26 = vld [vmem:[#allocation9 + $0x170] sm:$0xff] }
 0x661   :  { %4995 = vmatprep.subr.mxu1 %v7725_v31  ;;  %5025 = vmatprep.mubr.msk.f32.mxu1 %vm5706_vm0, %v7725_v31 }
 0x662   :  { %4996 = vmatpush3.msra.mxu1 %v6377_v61  ;;  %2042 = vmatprep.subr.mxu0 %v2040_v26  ;;  %v2039_v61 = vld [vmem:[#allocation9 + $0x168] sm:$0xff] }
 0x663   :  { %4997 = vmatprep.subr.mxu1 %v7725_v31  ;;  %2043 = vmatpush1.msra.mxu0 %v2039_v61  ;;  %v2271_v61 = vld [vmem:[#allocation7 + $0x2e8] sm:$0xff] }
 0x664   :  { %4998 = vmatpush3.msra.mxu1 %v6381_v53  ;;  %v2037_v53 = vld [vmem:[#allocation9 + $0x158] sm:$0xff] }
 0x665   :  { %4999 = vmatprep.subr.mxu1 %v7725_v31  ;;  %2044 = vmatprep.subr.mxu0 %v2037_v53 }
 0x666   :  { %5000 = vmatpush3.msra.mxu1 %v6385_v54  ;;  %v2036_v54 = vld [vmem:[#allocation9 + $0x150] sm:$0xff] }
 0x667   :  { %5001 = vmatprep.subr.mxu1 %v7725_v31  ;;  %2045 = vmatpush1.msra.mxu0 %v2036_v54  ;;  %v2269_v54 = vld [vmem:[#allocation7 + $0x2d8] sm:$0xff] }
 0x668   :  { %5002 = vmatpush3.msra.mxu1 %v6389_v56  ;;  %v2034_v56 = vld [vmem:[#allocation9 + $0x140] sm:$0xff] }
 0x669   :  { %5003 = vmatprep.subr.mxu1 %v7725_v31  ;;  %2046 = vmatprep.subr.mxu0 %v2034_v56  ;;  %v2270_v56 = vld [vmem:[#allocation7 + $0x2e0] sm:$0xff] }
 0x66a   :  { %5004 = vmatpush3.msra.mxu1 %v6393_v58  ;;  %v2033_v58 = vld [vmem:[#allocation9 + $0x138] sm:$0xff] }
 0x66b   :  { %5005 = vmatprep.subr.mxu1 %v7725_v31  ;;  %2047 = vmatpush1.msra.mxu0 %v2033_v58  ;;  %v2268_v58 = vld [vmem:[#allocation7 + $0x2d0] sm:$0xff] }
 0x66c   :  { %5006 = vmatpush3.msra.mxu1 %v6397_v59  ;;  %v2031_v59 = vld [vmem:[#allocation9 + $0x128] sm:$0xff] }
 0x66d   :  { %5007 = vmatprep.subr.mxu1 %v7725_v31  ;;  %2048 = vmatprep.subr.mxu0 %v2031_v59  ;;  %v2266_v59 = vld [vmem:[#allocation7 + $0x2c0] sm:$0xff] }
 0x66e   :  { %5008 = vmatpush3.msra.mxu1 %v6400_v60  ;;  %v2030_v60 = vld [vmem:[#allocation9 + $0x120] sm:$0xff] }
 0x66f   :  { %5009 = vmatprep.subr.mxu1 %v7725_v31  ;;  %2049 = vmatpush1.msra.mxu0 %v2030_v60  ;;  %v6669_v60 = vld [vmem:[#allocation13] sm:$0xff] }
 0x670   :  { %5010 = vmatpush3.msra.mxu1 %v6403_v62  ;;  %v2028_v62 = vld [vmem:[#allocation9 + $0x110] sm:$0xff] }
 0x671   :  { %5011 = vmatprep.subr.mxu1 %v7725_v31  ;;  %2050 = vmatprep.subr.mxu0 %v2028_v62  ;;  %v2267_v62 = vld [vmem:[#allocation7 + $0x2c8] sm:$0xff] }
 0x672   :  { %5012 = vmatpush3.msra.mxu1 %v6407_v1  ;;  %v2027_v1 = vld [vmem:[#allocation9 + $0x108] sm:$0xff] }
 0x673   :  { %5013 = vmatprep.subr.mxu1 %v7725_v31  ;;  %2051 = vmatpush1.msra.mxu0 %v2027_v1  ;;  %v2265_v1 = vld [vmem:[#allocation7 + $0x2b8] sm:$0xff] }
 0x674   :  { %5014 = vmatpush3.msra.mxu1 %v6411_v2  ;;  %v2025_v2 = vld [vmem:[#allocation9 + $0xf8] sm:$0xff] }
 0x675   :  { %5015 = vmatprep.subr.mxu1 %v7725_v31  ;;  %2052 = vmatprep.subr.mxu0 %v2025_v2  ;;  %v2264_v2 = vld [vmem:[#allocation7 + $0x2b0] sm:$0xff] }
 0x676   :  { %5016 = vmatpush3.msra.mxu1 %v6415_v3  ;;  %v2024_v3 = vld [vmem:[#allocation9 + $0xf0] sm:$0xff] }
 0x677   :  { %5017 = vmatprep.subr.mxu1 %v7725_v31  ;;  %2053 = vmatpush1.msra.mxu0 %v2024_v3  ;;  %v2262_v3 = vld [vmem:[#allocation7 + $0x2a0] sm:$0xff] }
 0x678   :  { %5018 = vmatpush3.msra.mxu1 %v6419_v5  ;;  %v2022_v5 = vld [vmem:[#allocation9 + $0xe0] sm:$0xff] }
 0x679   :  { %5019 = vmatprep.subr.mxu1 %v7725_v31  ;;  %2054 = vmatprep.subr.mxu0 %v2022_v5  ;;  %v2260_v5 = vld [vmem:[#allocation7 + $0x290] sm:$0xff] }
 0x67a   :  { %5020 = vmatpush3.msra.mxu1 %v6423_v7  ;;  %v2021_v7 = vld [vmem:[#allocation9 + $0xd8] sm:$0xff] }
 0x67b   :  { %5021 = vmatprep.subr.mxu1 %v7725_v31  ;;  %2055 = vmatpush1.msra.mxu0 %v2021_v7  ;;  %v2261_v7 = vld [vmem:[#allocation7 + $0x298] sm:$0xff] }
 0x67c   :  { %5022 = vmatpush3.msra.mxu1 %v7753_v29  ;;  %2056 = vmatprep.subr.mxu0 %v2019_v0  ;;  %v1997_v29 = vld [vmem:[#allocation9 + $0x18] sm:$0xff]  ;;  %v2259_v0 = vld [vmem:[#allocation7 + $0x288] sm:$0xff] }
 0x67d   :  { %5023 = vmatprep.subr.mxu1 %v7725_v31  ;;  %2057 = vmatpush1.msra.mxu0 %v2018_v8  ;;  %v2257_v8 = vld [vmem:[#allocation7 + $0x278] sm:$0xff] }
 0x67e   :  { %5024 = vmatpush3.msra.mxu1 %v7756_v33  ;;  %2058 = vmatprep.subr.mxu0 %v2016_v21  ;;  %v2272_v33 = vld [vmem:[#allocation7 + $0x2f0] sm:$0xff]  ;;  %v2258_v21 = vld [vmem:[#allocation7 + $0x280] sm:$0xff] }
 0x67f   :  { %2059 = vmatpush1.msra.mxu0 %v2015_v18  ;;  %5028 = vmatprep.subr.mxu1 %v2273_v23  ;;  %v2256_v18 = vld [vmem:[#allocation7 + $0x270] sm:$0xff] }
 0x680   :  { %2060 = vmatprep.subr.mxu0 %v2013_v19  ;;  %v2254_v19 = vld [vmem:[#allocation7 + $0x260] sm:$0xff] }
 0x681   :  { %2061 = vmatpush1.msra.mxu0 %v2012_v20  ;;  %v2255_v20 = vld [vmem:[#allocation7 + $0x268] sm:$0xff] }
 0x682   :  { %2062 = vmatprep.subr.mxu0 %v2010_v50  ;;  %v2253_v50 = vld [vmem:[#allocation7 + $0x258] sm:$0xff] }
 0x683   :  { %2063 = vmatpush1.msra.mxu0 %v2009_v9  ;;  %v2251_v9 = vld [vmem:[#allocation7 + $0x248] sm:$0xff] }
 0x684   :  { %2064 = vmatprep.subr.mxu0 %v2007_v13  ;;  %v2252_v13 = vld [vmem:[#allocation7 + $0x250] sm:$0xff] }
 0x685   :  { %2065 = vmatpush1.msra.mxu0 %v2006_v24  ;;  %v2250_v24 = vld [vmem:[#allocation7 + $0x240] sm:$0xff] }
 0x686   :  { %2066 = vmatprep.subr.mxu0 %v2004_v11  ;;  %v2249_v11 = vld [vmem:[#allocation7 + $0x238] sm:$0xff] }
 0x687   :  { %2067 = vmatpush1.msra.mxu0 %v2003_v14  ;;  %v2247_v14 = vld [vmem:[#allocation7 + $0x228] sm:$0xff] }
 0x688   :  { %2068 = vmatprep.subr.mxu0 %v2001_v15  ;;  %v2245_v15 = vld [vmem:[#allocation7 + $0x218] sm:$0xff] }
 0x689   :  { %2069 = vmatpush1.msra.mxu0 %v2000_v4  ;;  %v2246_v4 = vld [vmem:[#allocation7 + $0x220] sm:$0xff] }
 0x68a   :  { %2070 = vmatprep.subr.mxu0 %v1998_v28  ;;  %v2244_v28 = vld [vmem:[#allocation7 + $0x210] sm:$0xff] }
 0x68b   :  { %2071 = vmatpush1.msra.mxu0 %v1997_v29  ;;  %v2242_v29 = vld [vmem:[#allocation7 + $0x200] sm:$0xff] }
 0x68c   :  { %2072 = vmatprep.subr.mxu0 %v1995_v30  ;;  %v2243_v30 = vld [vmem:[#allocation7 + $0x208] sm:$0xff] }
 0x68d   :  { %2073 = vmatpush1.msra.mxu0 %v1994_v32  ;;  %v2241_v32 = vld [vmem:[#allocation7 + $0x1f8] sm:$0xff] }
 0x68e   :  { %2292 = vmatprep.subr.mxu0 %v2272_v33  ;;  %v2239_v33 = vld [vmem:[#allocation7 + $0x1e8] sm:$0xff] }
 0x71f   :  { %v1884_v34 = vpop.f32.mrf.mxu0  ;;  %v1955_v35 = vpop.f32.mrf.mxu1 }
 0x720   :  { %v1964_v37 = vadd.f32 %v1884_v34, %v7760_v36  ;;  %v1963_v55 = vadd.f32 %v6603_v51, %v1955_v35  ;;  %v2240_v34 = vld [vmem:[#allocation7 + $0x1f0] sm:$0xff]  ;;  %v2238_v35 = vld [vmem:[#allocation7 + $0x1e0] sm:$0xff] }
 0x721   :  { %v4992_v38 = vpop.f32.mrf.mxu1  ;;  %v1886_v40 = vpop.f32.mrf.mxu0  ;;  %v2236_v36 = vld [vmem:[#allocation7 + $0x1d0] sm:$0xff] }
 0x722   :  { %v4357_v39 = vmul.f32 -1.442695, %v1964_v37  ;;  %v1971_v63 = vadd.f32 %v1886_v40, %v7761_v41  ;;  %v2237_v37 = vld [vmem:[#allocation7 + $0x1d8] sm:$0xff]  ;;  %v2235_v38 = vld [vmem:[#allocation7 + $0x1c8] sm:$0xff]  ;;  %v2234_v40 = vld [vmem:[#allocation7 + $0x1c0] sm:$0xff] }
 0x723   :  { %v2232_v41 = vld [vmem:[#allocation7 + $0x1b0] sm:$0xff] }
 0x724   :  { %5431 = vpow2.f32 %v4357_v39  ;;  %v4358_v25 = vmul.f32 -1.442695, %v1971_v63  ;;  %v2233_v39 = vld [vmem:[#allocation7 + $0x1b8] sm:$0xff]  ;;  %v2230_v63 = vld [vmem:[#allocation7 + $0x1a0] sm:$0xff] }
 0x726   :  { %5433 = vpow2.f32 %v4358_v25  ;;  %v2231_v25 = vld [vmem:[#allocation7 + $0x1a8] sm:$0xff] }
 0x731   :  { %v5432_v10 = vpop.eup %5431 }
 0x732   :  { %v1968_v42 = vadd.f32 1.0, %v5432_v10  ;;  %v2229_v10 = vld [vmem:[#allocation7 + $0x198] sm:$0xff] }
 0x733   :  { %v5434_v27 = vpop.eup %5433 }
 0x734   :  { %5435 = vrcp.f32 %v1968_v42  ;;  %v1975_v46 = vadd.f32 1.0, %v5434_v27  ;;  %v2227_v42 = vld [vmem:[#allocation7 + $0x188] sm:$0xff]  ;;  %v2228_v27 = vld [vmem:[#allocation7 + $0x190] sm:$0xff] }
 0x736   :  { %5437 = vrcp.f32 %v1975_v46  ;;  %v2226_v46 = vld [vmem:[#allocation7 + $0x180] sm:$0xff] }
 0x741   :  { %v5436_v12 = vpop.eup %5435 }
 0x742   :  { %v1978_v45 = vmul.f32 %v5436_v12, %v1963_v55  ;;  %v2218_v55 = vld [vmem:[#allocation13 + $0x8] sm:$0xff]  ;;  %v2219_v12 = vld [vmem:[#allocation13 + $0x10] sm:$0xff] }
 0x743   :  { %v5438_v57 = vpop.eup %5437 }
 0x744   :  { %v1979_v49 = vadd.f32 %v1978_v45, %v7762_v6  ;;  %v1981_v44 = vsub.f32 1.0, %v5438_v57  ;;  %v1983_v43 = vmul.f32 %v5438_v57, %v6615_v52  ;;  %v2220_v45 = vld [vmem:[#allocation13 + $0x18] sm:$0xff]  ;;  %v6700_v6 = vld [vmem:[#allocation9 + $0x2f0] sm:$0xff] }
 0x745   :  { %7763 = vst [vmem:[#allocation28_spill] sm:$0xff] %v6700_v6  ;;  %v6712_v57 = vld [vmem:[#allocation9 + $0x2c0] sm:$0xff] }
 0x746   :  { %5439 = vtanh.f32 %v1979_v49  ;;  %v6703_v49 = vld [vmem:[#allocation9 + $0x2e8] sm:$0xff] }
 0x753   :  { %v5440_v47 = vpop.eup %5439 }
 0x754   :  { %v1982_v22 = vmul.f32 %v5440_v47, %v1981_v44  ;;  %v6715_v44 = vld [vmem:[#allocation9 + $0x2b8] sm:$0xff]  ;;  %v6718_v47 = vld [vmem:[#allocation9 + $0x2a8] sm:$0xff] }
 0x756   :  { %v6658_v26 = vadd.f32 %v1983_v43, %v1982_v22  ;;  %v6721_v22 = vld [vmem:[#allocation9 + $0x2a0] sm:$0xff]  ;;  %v6724_v43 = vld [vmem:[#allocation9 + $0x290] sm:$0xff] }
 0x758   :  { %v6665_v53 = vsel %vm4359_vm7, %v6658_v26, %v6615_v52  ;;  %v2263_v52 = vld [vmem:[#allocation7 + $0x2a8] sm:$0xff] }
 0x759   :  { %2107 = vmatmul.mubr.f32.vlgmr.msra.gmra.mxu0 %v6665_v53  ;;  %5026 = vmatmul.mubr.f32.vlgmr.msra.gmra.mxu1 %v6665_v53 }
 0x75a   :  { %2293 = vmatpush1.msra.mxu0 %v2271_v61  ;;  %5029 = vmatpush3.msra.mxu1 %v2273_v23  ;;  %v2248_v23 = vld [vmem:[#allocation7 + $0x230] sm:$0xff]  ;;  %v6730_v61 = vld [vmem:[#allocation9 + $0x278] sm:$0xff] }
 0x75b   :  { %2294 = vmatprep.subr.mxu0 %v2269_v54  ;;  %5030 = vmatprep.subr.mxu1 %v2270_v56  ;;  %v6733_v54 = vld [vmem:[#allocation9 + $0x270] sm:$0xff] }
 0x75c   :  { %5060 = vmatprep.mubr.f32.mxu1 %v6669_v60  ;;  %2295 = vmatpush1.msra.mxu0 %v2268_v58  ;;  %v6739_v58 = vld [vmem:[#allocation9 + $0x258] sm:$0xff] }
 0x75d   :  { %5031 = vmatpush3.msra.mxu1 %v2270_v56  ;;  %2296 = vmatprep.subr.mxu0 %v2266_v59  ;;  %v6736_v56 = vld [vmem:[#allocation9 + $0x260] sm:$0xff]  ;;  %v6742_v59 = vld [vmem:[#allocation9 + $0x248] sm:$0xff] }
 0x75e   :  { %5032 = vmatprep.subr.mxu1 %v2267_v62  ;;  %2297 = vmatpush1.msra.mxu0 %v2265_v1  ;;  %v6751_v1 = vld [vmem:[#allocation9 + $0x228] sm:$0xff] }
 0x75f   :  { %5033 = vmatpush3.msra.mxu1 %v2267_v62  ;;  %2298 = vmatprep.subr.mxu0 %v2263_v52  ;;  %v6748_v62 = vld [vmem:[#allocation9 + $0x230] sm:$0xff]  ;;  %v6754_v52 = vld [vmem:[#allocation9 + $0x218] sm:$0xff] }
 0x760   :  { %5034 = vmatprep.subr.mxu1 %v2264_v2  ;;  %2299 = vmatpush1.msra.mxu0 %v2262_v3  ;;  %v6760_v3 = vld [vmem:[#allocation9 + $0x200] sm:$0xff] }
 0x761   :  { %5035 = vmatpush3.msra.mxu1 %v2264_v2  ;;  %2300 = vmatprep.subr.mxu0 %v2260_v5  ;;  %v6757_v2 = vld [vmem:[#allocation9 + $0x210] sm:$0xff]  ;;  %v6763_v5 = vld [vmem:[#allocation9 + $0x1f8] sm:$0xff] }
 0x762   :  { %5036 = vmatprep.subr.mxu1 %v2261_v7  ;;  %2301 = vmatpush1.msra.mxu0 %v2259_v0  ;;  %v6769_v0 = vld [vmem:[#allocation9 + $0x1e0] sm:$0xff] }
 0x763   :  { %5037 = vmatpush3.msra.mxu1 %v2261_v7  ;;  %2302 = vmatprep.subr.mxu0 %v2257_v8  ;;  %v6766_v7 = vld [vmem:[#allocation9 + $0x1e8] sm:$0xff]  ;;  %v6772_v8 = vld [vmem:[#allocation9 + $0x1d0] sm:$0xff] }
 0x764   :  { %5038 = vmatprep.subr.mxu1 %v2258_v21  ;;  %2303 = vmatpush1.msra.mxu0 %v2256_v18  ;;  %v6778_v18 = vld [vmem:[#allocation9 + $0x1b8] sm:$0xff] }
 0x765   :  { %5039 = vmatpush3.msra.mxu1 %v2258_v21  ;;  %2304 = vmatprep.subr.mxu0 %v2254_v19  ;;  %v6775_v21 = vld [vmem:[#allocation9 + $0x1c8] sm:$0xff]  ;;  %v6781_v19 = vld [vmem:[#allocation9 + $0x1b0] sm:$0xff] }
 0x766   :  { %5040 = vmatprep.subr.mxu1 %v2255_v20  ;;  %2305 = vmatpush1.msra.mxu0 %v2253_v50  ;;  %v6787_v50 = vld [vmem:[#allocation9 + $0x198] sm:$0xff] }
 0x767   :  { %5041 = vmatpush3.msra.mxu1 %v2255_v20  ;;  %2306 = vmatprep.subr.mxu0 %v2251_v9  ;;  %v6784_v20 = vld [vmem:[#allocation9 + $0x1a0] sm:$0xff]  ;;  %7765 = vst [vmem:[#allocation30_spill] sm:$0xff] %v6787_v50  ;;  %v6789_v9 = vld [vmem:[#allocation9 + $0x188] sm:$0xff] }
 0x768   :  { %5042 = vmatprep.subr.mxu1 %v2252_v13  ;;  %2307 = vmatpush1.msra.mxu0 %v2250_v24  ;;  %7764 = vst [vmem:[#allocation29_spill] sm:$0xff] %v6784_v20  ;;  %7766 = vst [vmem:[#allocation31_spill] sm:$0xff] %v6789_v9  ;;  %v6795_v24 = vld [vmem:[#allocation9 + $0x2f8] sm:$0xff] }
 0x769   :  { %5043 = vmatpush3.msra.mxu1 %v2252_v13  ;;  %2308 = vmatprep.subr.mxu0 %v2248_v23  ;;  %v6791_v13 = vld [vmem:[#allocation9 + $0x180] sm:$0xff] }
 0x76a   :  { %5044 = vmatprep.subr.mxu1 %v2249_v11  ;;  %2309 = vmatpush1.msra.mxu0 %v2247_v14  ;;  %7767 = vst [vmem:[#allocation32_spill] sm:$0xff] %v6791_v13  ;;  %v6797_v23 = vld [vmem:[#allocation9 + $0x2e0] sm:$0xff]  ;;  %v6807_v14 = vld [vmem:[#allocation9 + $0x2b0] sm:$0xff] }
 0x76b   :  { %5045 = vmatpush3.msra.mxu1 %v2249_v11  ;;  %2310 = vmatprep.subr.mxu0 %v2245_v15  ;;  %v6802_v11 = vld [vmem:[#allocation9 + $0x2c8] sm:$0xff]  ;;  %v6811_v15 = vld [vmem:[#allocation9 + $0x298] sm:$0xff] }
 0x76c   :  { %5046 = vmatprep.subr.mxu1 %v2246_v4  ;;  %2311 = vmatpush1.msra.mxu0 %v2244_v28  ;;  %v6819_v28 = vld [vmem:[#allocation9 + $0x268] sm:$0xff] }
 0x76d   :  { %5047 = vmatpush3.msra.mxu1 %v2246_v4  ;;  %2312 = vmatprep.subr.mxu0 %v2242_v29  ;;  %v6815_v4 = vld [vmem:[#allocation9 + $0x280] sm:$0xff]  ;;  %v6823_v29 = vld [vmem:[#allocation9 + $0x250] sm:$0xff] }
 0x76e   :  { %5048 = vmatprep.subr.mxu1 %v2243_v30  ;;  %2313 = vmatpush1.msra.mxu0 %v2241_v32  ;;  %v6831_v32 = vld [vmem:[#allocation9 + $0x220] sm:$0xff] }
 0x76f   :  { %5049 = vmatpush3.msra.mxu1 %v2243_v30  ;;  %2314 = vmatprep.subr.mxu0 %v2239_v33  ;;  %v6827_v30 = vld [vmem:[#allocation9 + $0x238] sm:$0xff]  ;;  %v6835_v33 = vld [vmem:[#allocation9 + $0x208] sm:$0xff] }
 0x770   :  { %5050 = vmatprep.subr.mxu1 %v2240_v34  ;;  %2315 = vmatpush1.msra.mxu0 %v2238_v35  ;;  %v6843_v35 = vld [vmem:[#allocation9 + $0x1d8] sm:$0xff] }
 0x771   :  { %5051 = vmatpush3.msra.mxu1 %v2240_v34  ;;  %2316 = vmatprep.subr.mxu0 %v2236_v36  ;;  %v6839_v34 = vld [vmem:[#allocation9 + $0x1f0] sm:$0xff]  ;;  %v6847_v36 = vld [vmem:[#allocation9 + $0x1c0] sm:$0xff] }
 0x772   :  { %5052 = vmatprep.subr.mxu1 %v2237_v37  ;;  %2317 = vmatpush1.msra.mxu0 %v2235_v38  ;;  %v6855_v38 = vld [vmem:[#allocation9 + $0x190] sm:$0xff] }
 0x773   :  { %5053 = vmatpush3.msra.mxu1 %v2237_v37  ;;  %2318 = vmatprep.subr.mxu0 %v2233_v39  ;;  %v6851_v37 = vld [vmem:[#allocation9 + $0x1a8] sm:$0xff]  ;;  %7769 = vst [vmem:[#allocation33_spill] sm:$0xff] %v6855_v38 }
 0x774   :  { %5054 = vmatprep.subr.mxu1 %v2234_v40  ;;  %2319 = vmatpush1.msra.mxu0 %v2232_v41  ;;  %7768 = vst [vmem:[#allocation21_spill] sm:$0xff] %v6851_v37  ;;  %v7770_v41 = vld [vmem:[#allocation39_spill] sm:$0xff] }
 0x775   :  { %5055 = vmatpush3.msra.mxu1 %v2234_v40  ;;  %2320 = vmatprep.subr.mxu0 %v2230_v63 }
 0x776   :  { %5056 = vmatprep.subr.mxu1 %v2231_v25  ;;  %2321 = vmatpush1.msra.mxu0 %v2229_v10 }
 0x777   :  { %5057 = vmatpush3.msra.mxu1 %v2231_v25  ;;  %2322 = vmatprep.subr.mxu0 %v2227_v42 }
 0x778   :  { %5058 = vmatprep.subr.mxu1 %v2228_v27  ;;  %2323 = vmatpush1.msra.mxu0 %v2226_v46 }
 0x779   :  { %2356 = vmatprep.mubr.f32.mxu0 %v7725_v31  ;;  %5059 = vmatpush3.msra.mxu1 %v2228_v27  ;;  %v7771_v27 = vld [vmem:[#allocation40_spill] sm:$0xff] }
 0x77a   :  { %2357 = vmatmul.mubr.f32.vlgmr.msra.gmra.mxu0 %v6669_v60  ;;  %5061 = vmatmul.mubr.f32.vlgmr.msra.gmra.mxu1 %v2218_v55  ;;  %v6745_v60 = vld [vmem:[#allocation9 + $0x240] sm:$0xff] }
 0x77b   :  { %5063 = vmatprep.mubr.f32.mxu1 %v2219_v12  ;;  %2362 = vmatprep.mubr.f32.mxu0 %v7725_v31 }
 0x77c   :  { %5072 = vmatprep.subr.mxu1 %v7725_v31  ;;  %2593 = vmatprep.subr.mxu0 %v6700_v6 }
 0x77d   :  { %2594 = vmatpush1.msra.mxu0 %v6703_v49  ;;  %5073 = vmatpush3.msra.mxu1 %v6795_v24 }
 0x77e   :  { %2363 = vmatmul.mubr.f32.gmra.mxu0 %v2218_v55  ;;  %5064 = vmatmul.mubr.f32.gmra.mxu1 %v2220_v45 }
 0x77f   :  { %5533 = vmatprep.mubr.msk.f32.mxu1 %vm4353_vm5, %v6524_v16  ;;  %2368 = vmatprep.mubr.f32.mxu0 %v7725_v31 }
 0x780   :  { %5074 = vmatprep.subr.mxu1 %v7725_v31 }
 0x781   :  { %5075 = vmatpush3.msra.mxu1 %v6797_v23 }
 0x782   :  { %2369 = vmatmul.mubr.f32.gmra.mxu0 %v2219_v12  ;;  %5534 = vmatmul.mubr.msk.f32.gmra.mxu1 %vm4356_vm6, %v6608_v48 }
 0x783   :  { %5535 = vmatprep.mubr.msk.f32.mxu1 %vm4359_vm7, %v6658_v26  ;;  %2374 = vmatprep.mubr.f32.mxu0 %v7725_v31 }
 0x784   :  { %5076 = vmatprep.subr.mxu1 %v7725_v31 }
 0x785   :  { %5077 = vmatpush3.msra.mxu1 %v6802_v11 }
 0x786   :  { %2375 = vmatmul.mubr.f32.gmra.mxu0 %v2220_v45  ;;  %5078 = vmatprep.subr.mxu1 %v7725_v31 }
 0x787   :  { %2380 = vmatprep.mubr.f32.mxu0 %v7725_v31  ;;  %5079 = vmatpush3.msra.mxu1 %v6807_v14 }
 0x788   :  { %5080 = vmatprep.subr.mxu1 %v7725_v31 }
 0x789   :  { %5081 = vmatpush3.msra.mxu1 %v6811_v15 }
 0x78a   :  { %5536 = vmatmul.mubr.msk.f32.gmra.mxu0 %vm4353_vm5, %v6524_v16  ;;  %v6706_v16 = vld [vmem:[#allocation9 + $0x2d8] sm:$0xff]  ;;  %5082 = vmatprep.subr.mxu1 %v7725_v31 }
 0x78b   :  { %2386 = vmatprep.mubr.f32.mxu0 %v7725_v31  ;;  %2595 = vmatprep.subr.mxu0 %v6706_v16 }
 0x78c   :  { %5083 = vmatpush3.msra.mxu1 %v6815_v4 }
 0x78d   :  { %5084 = vmatprep.subr.mxu1 %v7725_v31 }
 0x78e   :  { %5537 = vmatmul.mubr.msk.f32.gmra.mxu0 %vm4356_vm6, %v6608_v48  ;;  %v6709_v48 = vld [vmem:[#allocation9 + $0x2d0] sm:$0xff]  ;;  %5085 = vmatpush3.msra.mxu1 %v6819_v28 }
 0x78f   :  { %2392 = vmatprep.mubr.f32.mxu0 %v7725_v31  ;;  %2596 = vmatpush1.msra.mxu0 %v6709_v48 }
 0x790   :  { %2597 = vmatprep.subr.mxu0 %v6712_v57  ;;  %5086 = vmatprep.subr.mxu1 %v7725_v31 }
 0x791   :  { %2598 = vmatpush1.msra.mxu0 %v6715_v44  ;;  %5087 = vmatpush3.msra.mxu1 %v6823_v29 }
 0x792   :  { %5538 = vmatmul.mubr.msk.f32.gmra.mxu0 %vm4359_vm7, %v6658_v26  ;;  %2599 = vmatprep.subr.mxu0 %v6718_v47  ;;  %v6727_v26 = vld [vmem:[#allocation9 + $0x288] sm:$0xff] }
 0x793   :  { %2398 = vmatprep.mubr.f32.mxu0 %v7725_v31  ;;  %2600 = vmatpush1.msra.mxu0 %v6721_v22 }
 0x794   :  { %2601 = vmatprep.subr.mxu0 %v6724_v43  ;;  %5088 = vmatprep.subr.mxu1 %v7725_v31 }
 0x795   :  { %2602 = vmatpush1.msra.mxu0 %v6727_v26  ;;  %5089 = vmatpush3.msra.mxu1 %v6827_v30 }
 0x796   :  { %2603 = vmatprep.subr.mxu0 %v6730_v61  ;;  %5090 = vmatprep.subr.mxu1 %v7725_v31 }
 0x797   :  { %2604 = vmatpush1.msra.mxu0 %v6733_v54  ;;  %5091 = vmatpush3.msra.mxu1 %v6831_v32 }
 0x798   :  { %2605 = vmatprep.subr.mxu0 %v6736_v56  ;;  %5092 = vmatprep.subr.mxu1 %v7725_v31 }
 0x799   :  { %2606 = vmatpush1.msra.mxu0 %v6739_v58  ;;  %5093 = vmatpush3.msra.mxu1 %v6835_v33 }
 0x79a   :  { %2607 = vmatprep.subr.mxu0 %v6742_v59  ;;  %5094 = vmatprep.subr.mxu1 %v7725_v31 }
 0x79b   :  { %2608 = vmatpush1.msra.mxu0 %v6745_v60  ;;  %5095 = vmatpush3.msra.mxu1 %v6839_v34 }
 0x79c   :  { %2609 = vmatprep.subr.mxu0 %v6748_v62  ;;  %5096 = vmatprep.subr.mxu1 %v7725_v31 }
 0x79d   :  { %2610 = vmatpush1.msra.mxu0 %v6751_v1  ;;  %5097 = vmatpush3.msra.mxu1 %v6843_v35 }
 0x79e   :  { %2611 = vmatprep.subr.mxu0 %v6754_v52  ;;  %5098 = vmatprep.subr.mxu1 %v7725_v31 }
 0x79f   :  { %2612 = vmatpush1.msra.mxu0 %v6757_v2  ;;  %5099 = vmatpush3.msra.mxu1 %v6847_v36 }
 0x7a0   :  { %2613 = vmatprep.subr.mxu0 %v6760_v3  ;;  %5100 = vmatprep.subr.mxu1 %v7725_v31 }
 0x7a1   :  { %2614 = vmatpush1.msra.mxu0 %v6763_v5  ;;  %5101 = vmatpush3.msra.mxu1 %v6851_v37 }
 0x7a2   :  { %2615 = vmatprep.subr.mxu0 %v6766_v7  ;;  %5102 = vmatprep.subr.mxu1 %v7725_v31 }
 0x7a3   :  { %2616 = vmatpush1.msra.mxu0 %v6769_v0  ;;  %5103 = vmatpush3.msra.mxu1 %v6855_v38 }
 0x7a4   :  { %2617 = vmatprep.subr.mxu0 %v6772_v8  ;;  %5107 = vmatprep.subr.mxu1 %v7725_v31 }
 0x7a5   :  { %2618 = vmatpush1.msra.mxu0 %v6775_v21 }
 0x7a6   :  { %2619 = vmatprep.subr.mxu0 %v6778_v18 }
 0x7a7   :  { %2620 = vmatpush1.msra.mxu0 %v6781_v19 }
 0x7a8   :  { %2621 = vmatprep.subr.mxu0 %v6784_v20 }
 0x7a9   :  { %2622 = vmatpush1.msra.mxu0 %v6787_v50  ;;  %v7772_v50 = vld [vmem:[#allocation43_spill] sm:$0xff] }
 0x7aa   :  { %2623 = vmatprep.subr.mxu0 %v6789_v9 }
 0x7ab   :  { %2624 = vmatpush1.msra.mxu0 %v6791_v13 }
 0x7ac   :  { %2812 = vmatprep.subr.mxu0 %v6700_v6 }
 0x819   :  { %v2108_v39 = vpop.f32.mrf.mxu0  ;;  %v2179_v40 = vpop.f32.mrf.mxu1 }
 0x81a   :  { %v2188_v63 = vadd.f32 %v2108_v39, %v7770_v41  ;;  %v2187_v38 = vadd.f32 %v6603_v51, %v2179_v40  ;;  %v7773_v51 = vld [vmem:[#allocation30_spill] sm:$0xff] }
 0x81b   :  { %v5027_v25 = vpop.f32.mrf.mxu1  ;;  %v2110_v42 = vpop.f32.mrf.mxu0 }
 0x81c   :  { %v4360_v10 = vmul.f32 -1.442695, %v2188_v63  ;;  %v2195_v46 = vadd.f32 %v2110_v42, %v7771_v27 }
 0x81e   :  { %5441 = vpow2.f32 %v4360_v10  ;;  %v4361_v55 = vmul.f32 -1.442695, %v2195_v46 }
 0x820   :  { %5443 = vpow2.f32 %v4361_v55 }
 0x82b   :  { %v5442_v12 = vpop.eup %5441 }
 0x82c   :  { %v2192_v45 = vadd.f32 1.0, %v5442_v12 }
 0x82d   :  { %v5444_v6 = vpop.eup %5443 }
 0x82e   :  { %5445 = vrcp.f32 %v2192_v45  ;;  %v2199_v13 = vadd.f32 1.0, %v5444_v6 }
 0x830   :  { %5447 = vrcp.f32 %v2199_v13  ;;  %v7777_v13 = vld [vmem:[#allocation33_spill] sm:$0xff] }
 0x83b   :  { %v5446_v9 = vpop.eup %5445 }
 0x83c   :  { %v2202_v37 = vmul.f32 %v5446_v9, %v2187_v38  ;;  %v7776_v9 = vld [vmem:[#allocation32_spill] sm:$0xff]  ;;  %v2358_v38 = vpop.f32.mrf.mxu0 }
 0x83d   :  { %v5448_v41 = vpop.eup %5447 }
 0x83e   :  { %v2203_v39 = vadd.f32 %v2202_v37, %v7772_v50  ;;  %v2205_v63 = vsub.f32 1.0, %v5448_v41  ;;  %v2207_v42 = vmul.f32 %v5448_v41, %v6665_v53  ;;  %v7775_v50 = vld [vmem:[#allocation31_spill] sm:$0xff]  ;;  %v7778_v37 = vld [vmem:[#allocation28_spill] sm:$0xff]  ;;  %v2360_v40 = vpop.f32.mrf.mxu0 }
 0x840   :  { %5449 = vtanh.f32 %v2203_v39  ;;  %v6946_v46 = vpop.f32.mrf.mxu0 }
 0x841   :  { %7779 = vst [vmem:[#allocation34_spill] sm:$0xff] %v6946_v46 }
 0x842   :  { %v6948_v55 = vpop.f32.mrf.mxu0 }
 0x843   :  { %7780 = vst [vmem:[#allocation42_spill] sm:$0xff] %v6948_v55 }
 0x844   :  { %v6950_v12 = vpop.f32.mrf.mxu0 }
 0x845   :  { %7781 = vst [vmem:[#allocation24_spill] sm:$0xff] %v6950_v12 }
 0x846   :  { %v6952_v45 = vpop.f32.mrf.mxu0 }
 0x847   :  { %7782 = vst [vmem:[#allocation25_spill] sm:$0xff] %v6952_v45 }
 0x848   :  { %v6954_v39 = vpop.f32.mrf.mxu0 }
 0x849   :  { %7783 = vst [vmem:[#allocation22_spill] sm:$0xff] %v6954_v39 }
 0x84a   :  { %v6956_v41 = vpop.f32.mrf.mxu0 }
 0x84b   :  { %7784 = vst [vmem:[#allocation23_spill] sm:$0xff] %v6956_v41  ;;  %v2275_v41 = vld [vmem:[#allocation10 + $0x3] sm:$0x7] }
 0x84d   :  { %v5450_v25 = vpop.eup %5449 }
 0x84e   :  { %v2206_v10 = vmul.f32 %v5450_v25, %v2205_v63  ;;  %v6958_v63 = vpop.f32.mrf.mxu1  ;;  %v6960_v25 = vpop.f32.mrf.mxu0 }
 0x84f   :  { %7785 = vst [vmem:[#allocation27_spill] sm:$0xff] %v6958_v63  ;;  %7786 = vst [vmem:[#allocation35_spill] sm:$0xff] %v6960_v25  ;;  %v7796_v25 = vld [vmem:[#allocation26_spill] sm:$0xff] }
 0x850   :  { %v2208_v27 = vadd.f32 %v2207_v42, %v2206_v10  ;;  %v2471_v10 = vpop.f32.mrf.mxu1  ;;  %v6962_v42 = vpop.f32.mrf.mxu0 }
 0x851   :  { %7787 = vst [vmem:[#allocation36_spill] sm:$0xff] %v6962_v42 }
 0x852   :  { %v2212_v6 = vsel %vm4362_vm8, %v2208_v27, %v6665_v53  ;;  %5539 = vmatmul.mubr.msk.f32.gmra.mxu0 %vm4362_vm8, %v2208_v27  ;;  %5540 = vmatmul.mubr.msk.f32.gmra.mxu1 %vm4362_vm8, %v2208_v27  ;;  %v7774_v53 = vld [vmem:[#allocation21_spill] sm:$0xff]  ;;  %v6964_v27 = vpop.f32.mrf.mxu1 }
 0x853   :  { %4301 = vst [vmem:[#allocation14] sm:$0xff] %v2212_v6  ;;  %2657 = vmatprep.mubr.f32.mxu0 %v7725_v31  ;;  %5104 = vmatprep.mubr.msk.f32.mxu1 %vm5706_vm0, %v7725_v31  ;;  %7788 = vst [vmem:[#allocation41_spill] sm:$0xff] %v6964_v27  ;;  %v6966_v6 = vpop.f32.mrf.mxu0 }
 0x854   :  { %7789 = vst [vmem:[#allocation37_spill] sm:$0xff] %v6966_v6  ;;  %v6968_v55 = vpop.f32.mrf.mxu1 }
 0x855   :  { %7790 = vst [vmem:[#allocation38_spill] sm:$0xff] %v6968_v55  ;;  %v6970_v12 = vpop.f32.mrf.mxu0 }
 0x856   :  { %2658 = vmatmul.mubr.f32.vlgmr.msra.gmra.mxu0 %v7725_v31  ;;  %5105 = vmatmul.mubr.f32.vlgmr.msra.gmra.mxu1 %v7725_v31  ;;  %7791 = vst [vmem:[#allocation44_spill] sm:$0xff] %v6970_v12  ;;  %v6972_v45 = vpop.f32.mrf.mxu1 }
 0x857   :  { %2813 = vmatpush1.msra.mxu0 %v6703_v49  ;;  %5108 = vmatpush3.msra.mxu1 %v6795_v24  ;;  %7792 = vst [vmem:[#allocation39_spill] sm:$0xff] %v6972_v45  ;;  %v6974_v39 = vpop.f32.mrf.mxu0 }
 0x858   :  { %2814 = vmatprep.subr.mxu0 %v6706_v16  ;;  %5109 = vmatprep.subr.mxu1 %v7725_v31  ;;  %7793 = vst [vmem:[#allocation40_spill] sm:$0xff] %v6974_v39  ;;  %v6976_v46 = vpop.f32.mrf.mxu1 }
 0x859   :  { %2815 = vmatpush1.msra.mxu0 %v6709_v48  ;;  %5110 = vmatpush3.msra.mxu1 %v6797_v23  ;;  %7794 = vst [vmem:[#allocation43_spill] sm:$0xff] %v6976_v46  ;;  %v6978_v63 = vpop.f32.mrf.mxu0  ;;  %v7803_v46 = vsub.s32 1, %v7796_v25 }
 0x85a   :  { %2816 = vmatprep.subr.mxu0 %v6712_v57  ;;  %5111 = vmatprep.subr.mxu1 %v7725_v31  ;;  %7795 = vst [vmem:[#allocation45_spill] sm:$0xff] %v6978_v63 }
 0x85b   :  { %2817 = vmatpush1.msra.mxu0 %v6715_v44  ;;  %5112 = vmatpush3.msra.mxu1 %v6802_v11 }
 0x85c   :  { %2818 = vmatprep.subr.mxu0 %v6718_v47  ;;  %5113 = vmatprep.subr.mxu1 %v7725_v31 }
 0x85d   :  { %2819 = vmatpush1.msra.mxu0 %v6721_v22  ;;  %5114 = vmatpush3.msra.mxu1 %v6807_v14 }
 0x85e   :  { %2820 = vmatprep.subr.mxu0 %v6724_v43  ;;  %5115 = vmatprep.subr.mxu1 %v7725_v31 }
 0x85f   :  { %2821 = vmatpush1.msra.mxu0 %v6727_v26  ;;  %5116 = vmatpush3.msra.mxu1 %v6811_v15 }
 0x860   :  { %2822 = vmatprep.subr.mxu0 %v6730_v61  ;;  %5117 = vmatprep.subr.mxu1 %v7725_v31 }
 0x861   :  { %2823 = vmatpush1.msra.mxu0 %v6733_v54  ;;  %5118 = vmatpush3.msra.mxu1 %v6815_v4 }
 0x862   :  { %2824 = vmatprep.subr.mxu0 %v6736_v56  ;;  %5119 = vmatprep.subr.mxu1 %v7725_v31 }
 0x863   :  { %2825 = vmatpush1.msra.mxu0 %v6739_v58  ;;  %5120 = vmatpush3.msra.mxu1 %v6819_v28 }
 0x864   :  { %2826 = vmatprep.subr.mxu0 %v6742_v59  ;;  %5121 = vmatprep.subr.mxu1 %v7725_v31 }
 0x865   :  { %2827 = vmatpush1.msra.mxu0 %v6745_v60  ;;  %5122 = vmatpush3.msra.mxu1 %v6823_v29 }
 0x866   :  { %2828 = vmatprep.subr.mxu0 %v6748_v62  ;;  %5123 = vmatprep.subr.mxu1 %v7725_v31 }
 0x867   :  { %2829 = vmatpush1.msra.mxu0 %v6751_v1  ;;  %5124 = vmatpush3.msra.mxu1 %v6827_v30 }
 0x868   :  { %2830 = vmatprep.subr.mxu0 %v6754_v52  ;;  %5125 = vmatprep.subr.mxu1 %v7725_v31 }
 0x869   :  { %2831 = vmatpush1.msra.mxu0 %v6757_v2  ;;  %5126 = vmatpush3.msra.mxu1 %v6831_v32 }
 0x86a   :  { %2832 = vmatprep.subr.mxu0 %v6760_v3  ;;  %5127 = vmatprep.subr.mxu1 %v7725_v31 }
 0x86b   :  { %2833 = vmatpush1.msra.mxu0 %v6763_v5  ;;  %5128 = vmatpush3.msra.mxu1 %v6835_v33 }
 0x86c   :  { %2834 = vmatprep.subr.mxu0 %v6766_v7  ;;  %5129 = vmatprep.subr.mxu1 %v7725_v31 }
 0x86d   :  { %2835 = vmatpush1.msra.mxu0 %v6769_v0  ;;  %5130 = vmatpush3.msra.mxu1 %v6839_v34 }
 0x86e   :  { %2836 = vmatprep.subr.mxu0 %v6772_v8  ;;  %5131 = vmatprep.subr.mxu1 %v7725_v31 }
 0x86f   :  { %2837 = vmatpush1.msra.mxu0 %v6775_v21  ;;  %5132 = vmatpush3.msra.mxu1 %v6843_v35 }
 0x870   :  { %2838 = vmatprep.subr.mxu0 %v6778_v18  ;;  %5133 = vmatprep.subr.mxu1 %v7725_v31 }
 0x871   :  { %2839 = vmatpush1.msra.mxu0 %v6781_v19  ;;  %5134 = vmatpush3.msra.mxu1 %v6847_v36 }
 0x872   :  { %2840 = vmatprep.subr.mxu0 %v6784_v20  ;;  %5135 = vmatprep.subr.mxu1 %v7725_v31 }
 0x873   :  { %2841 = vmatpush1.msra.mxu0 %v7773_v51  ;;  %5136 = vmatpush3.msra.mxu1 %v7774_v53 }
 0x874   :  { %2842 = vmatprep.subr.mxu0 %v7775_v50  ;;  %5137 = vmatprep.subr.mxu1 %v7725_v31 }
 0x875   :  { %2843 = vmatpush1.msra.mxu0 %v7776_v9  ;;  %2876 = vmatprep.mubr.f32.mxu0 %v7725_v31  ;;  %v6995_v9 = vrot.slane %v2275_v41, %v7803_v46 }
 0x876   :  { %5138 = vmatpush3.msra.mxu1 %v7777_v13  ;;  %5139 = vmatprep.mubr.msk.f32.mxu1 %vm5706_vm0, %v7725_v31 }
 0x877   :  { %3031 = vmatprep.subr.mxu0 %v7778_v37  ;;  %5142 = vmatprep.subr.mxu1 %v7725_v31  ;;  %v7797_v37 = vsub.s32 0, %v7796_v25 }
 0x879   :  { %v6982_v42 = vrot.slane %v2275_v41, %v7797_v37 }
 0x87b   :  { %7798 = vst [vmem:[#allocation26_spill] sm:$0xff] %v6982_v42  ;;  %v2359_v45 = vadd.f32 %v2358_v38, %v6982_v42  ;;  %v6998_v42 = vld [vmem:[#allocation12 + $0x1] ss:$0 sm:$0xff] }
 0x912   :  { %v6984_v27 = vpop.f32.mrf.mxu0  ;;  %v6986_v6 = vpop.f32.mrf.mxu1 }
 0x913   :  { %7799 = vst [vmem:[#allocation46_spill] sm:$0xff] %v6984_v27  ;;  %7800 = vst [vmem:[#allocation47_spill] sm:$0xff] %v6986_v6  ;;  %v2361_v27 = vadd.f32 %v2360_v40, %v6995_v9 }
 0x914   :  { %v6988_v55 = vpop.f32.mrf.mxu0  ;;  %v6990_v12 = vpop.f32.mrf.mxu1 }
 0x915   :  { %7801 = vst [vmem:[#allocation48_spill] sm:$0xff] %v6988_v55  ;;  %7802 = vst [vmem:[#allocation49_spill] sm:$0xff] %v6990_v12 }
 0x916   :  { %v2659_v39 = vpop.f32.mrf.mxu0  ;;  %v2730_v13 = vpop.f32.mrf.mxu1 }
 0x917   :  { %v2738_v63 = vadd.f32 %v2659_v39, %v2359_v45  ;;  %v2737_v46 = vadd.f32 %v6998_v42, %v2730_v13  ;;  %v7804_v45 = vsub.s32 2, %v7796_v25  ;;  %v7807_v25 = vld [vmem:[#allocation21_spill] sm:$0xff] }
 0x918   :  { %v5106_v50 = vpop.f32.mrf.mxu1  ;;  %v2661_v53 = vpop.f32.mrf.mxu0 }
 0x919   :  { %v4364_v37 = vmul.f32 -1.442695, %v2738_v63  ;;  %v2745_v6 = vadd.f32 %v2661_v53, %v2361_v27  ;;  %v7003_v50 = vrot.slane %v2275_v41, %v7804_v45  ;;  %v7806_v41 = vld [vmem:[#allocation30_spill] sm:$0xff]  ;;  %v7811_v45 = vld [vmem:[#allocation28_spill] sm:$0xff] }
 0x91b   :  { %5451 = vpow2.f32 %v4364_v37  ;;  %v4365_v51 = vmul.f32 -1.442695, %v2745_v6  ;;  %v2472_v40 = vadd.f32 %v2471_v10, %v7003_v50  ;;  %v7808_v10 = vld [vmem:[#allocation31_spill] sm:$0xff] }
 0x91d   :  { %5453 = vpow2.f32 %v4365_v51 }
 0x928   :  { %v5452_v55 = vpop.eup %5451 }
 0x929   :  { %v2742_v12 = vadd.f32 1.0, %v5452_v55 }
 0x92a   :  { %v5454_v38 = vpop.eup %5453 }
 0x92b   :  { %5455 = vrcp.f32 %v2742_v12  ;;  %v2749_v20 = vadd.f32 1.0, %v5454_v38  ;;  %v7809_v38 = vld [vmem:[#allocation32_spill] sm:$0xff] }
 0x92d   :  { %5457 = vrcp.f32 %v2749_v20  ;;  %v7805_v20 = vld [vmem:[#allocation29_spill] sm:$0xff] }
 0x938   :  { %v5456_v39 = vpop.eup %5455 }
 0x939   :  { %v2752_v53 = vmul.f32 %v5456_v39, %v2737_v46  ;;  %v7810_v46 = vld [vmem:[#allocation33_spill] sm:$0xff]  ;;  %v7812_v39 = vld [vmem:[#allocation26_spill] sm:$0xff] }
 0x93a   :  { %v5458_v51 = vpop.eup %5457 }
 0x93b   :  { %v2753_v63 = vadd.f32 %v2752_v53, %v2472_v40  ;;  %v2755_v55 = vsub.f32 1.0, %v5458_v51  ;;  %v2757_v6 = vmul.f32 0.0, %v5458_v51  ;;  %v7813_v40 = vld [vmem:[#allocation34_spill] sm:$0xff] }
 0x93c   :  { %v2365_v53 = vadd.f32 %v7813_v40, %v7812_v39 }
 0x93d   :  { %5459 = vtanh.f32 %v2753_v63 }
 0x94a   :  { %v5460_v12 = vpop.eup %5459 }
 0x94b   :  { %v2756_v27 = vmul.f32 %v5460_v12, %v2755_v55 }
 0x94d   :  { %v2758_v37 = vadd.f32 %v2757_v6, %v2756_v27 }
 0x94f   :  { %4382 = vmatmul.mubr.msk.f32.vlgmr.msra.gmra.mxu0 %vm4341_vm1, %v2758_v37  ;;  %5140 = vmatmul.mubr.msk.f32.vlgmr.msra.gmra.mxu1 %vm4341_vm1, %v2758_v37  ;;  %v7012_v13 = vsel %vm4341_vm1, %v2758_v37, 0.0  ;;  %v7814_v37 = vld [vmem:[#allocation42_spill] sm:$0xff] }
 0x950   :  { %3032 = vmatpush1.msra.mxu0 %v6703_v49  ;;  %5143 = vmatpush3.msra.mxu1 %v6795_v24  ;;  %2762 = vst [vmem:[#allocation13] sm:$0xff] %v7012_v13 }
 0x951   :  { %3033 = vmatprep.subr.mxu0 %v6706_v16  ;;  %5144 = vmatprep.subr.mxu1 %v7725_v31 }
 0x952   :  { %3034 = vmatpush1.msra.mxu0 %v6709_v48  ;;  %5145 = vmatpush3.msra.mxu1 %v6797_v23 }
 0x953   :  { %3035 = vmatprep.subr.mxu0 %v6712_v57  ;;  %5146 = vmatprep.subr.mxu1 %v7725_v31 }
 0x954   :  { %3036 = vmatpush1.msra.mxu0 %v6715_v44  ;;  %5147 = vmatpush3.msra.mxu1 %v6802_v11 }
 0x955   :  { %3037 = vmatprep.subr.mxu0 %v6718_v47  ;;  %5148 = vmatprep.subr.mxu1 %v7725_v31 }
 0x956   :  { %3038 = vmatpush1.msra.mxu0 %v6721_v22  ;;  %5149 = vmatpush3.msra.mxu1 %v6807_v14 }
 0x957   :  { %3039 = vmatprep.subr.mxu0 %v6724_v43  ;;  %5150 = vmatprep.subr.mxu1 %v7725_v31 }
 0x958   :  { %3040 = vmatpush1.msra.mxu0 %v6727_v26  ;;  %5151 = vmatpush3.msra.mxu1 %v6811_v15 }
 0x959   :  { %3041 = vmatprep.subr.mxu0 %v6730_v61  ;;  %5152 = vmatprep.subr.mxu1 %v7725_v31 }
 0x95a   :  { %3042 = vmatpush1.msra.mxu0 %v6733_v54  ;;  %5153 = vmatpush3.msra.mxu1 %v6815_v4 }
 0x95b   :  { %3043 = vmatprep.subr.mxu0 %v6736_v56  ;;  %5154 = vmatprep.subr.mxu1 %v7725_v31 }
 0x95c   :  { %3044 = vmatpush1.msra.mxu0 %v6739_v58  ;;  %5155 = vmatpush3.msra.mxu1 %v6819_v28 }
 0x95d   :  { %3045 = vmatprep.subr.mxu0 %v6742_v59  ;;  %5156 = vmatprep.subr.mxu1 %v7725_v31 }
 0x95e   :  { %3046 = vmatpush1.msra.mxu0 %v6745_v60  ;;  %5157 = vmatpush3.msra.mxu1 %v6823_v29 }
 0x95f   :  { %3047 = vmatprep.subr.mxu0 %v6748_v62  ;;  %5158 = vmatprep.subr.mxu1 %v7725_v31 }
 0x960   :  { %3048 = vmatpush1.msra.mxu0 %v6751_v1  ;;  %5159 = vmatpush3.msra.mxu1 %v6827_v30 }
 0x961   :  { %3049 = vmatprep.subr.mxu0 %v6754_v52  ;;  %5160 = vmatprep.subr.mxu1 %v7725_v31 }
 0x962   :  { %3050 = vmatpush1.msra.mxu0 %v6757_v2  ;;  %5161 = vmatpush3.msra.mxu1 %v6831_v32 }
 0x963   :  { %3051 = vmatprep.subr.mxu0 %v6760_v3  ;;  %5162 = vmatprep.subr.mxu1 %v7725_v31 }
 0x964   :  { %3052 = vmatpush1.msra.mxu0 %v6763_v5  ;;  %5163 = vmatpush3.msra.mxu1 %v6835_v33 }
 0x965   :  { %3053 = vmatprep.subr.mxu0 %v6766_v7  ;;  %5164 = vmatprep.subr.mxu1 %v7725_v31 }
 0x966   :  { %3054 = vmatpush1.msra.mxu0 %v6769_v0  ;;  %5165 = vmatpush3.msra.mxu1 %v6839_v34 }
 0x967   :  { %3055 = vmatprep.subr.mxu0 %v6772_v8  ;;  %5166 = vmatprep.subr.mxu1 %v7725_v31 }
 0x968   :  { %3056 = vmatpush1.msra.mxu0 %v6775_v21  ;;  %5167 = vmatpush3.msra.mxu1 %v6843_v35 }
 0x969   :  { %3057 = vmatprep.subr.mxu0 %v6778_v18  ;;  %5168 = vmatprep.subr.mxu1 %v7725_v31 }
 0x96a   :  { %3058 = vmatpush1.msra.mxu0 %v6781_v19  ;;  %5169 = vmatpush3.msra.mxu1 %v6847_v36 }
 0x96b   :  { %3059 = vmatprep.subr.mxu0 %v7805_v20  ;;  %5170 = vmatprep.subr.mxu1 %v7725_v31 }
 0x96c   :  { %3060 = vmatpush1.msra.mxu0 %v7806_v41  ;;  %5171 = vmatpush3.msra.mxu1 %v7807_v25 }
 0x96d   :  { %3061 = vmatprep.subr.mxu0 %v7808_v10  ;;  %5172 = vmatprep.subr.mxu1 %v7725_v31 }
 0x96e   :  { %3062 = vmatpush1.msra.mxu0 %v7809_v38  ;;  %3095 = vmatprep.mubr.f32.mxu0 %v7725_v31  ;;  %v2367_v38 = vadd.f32 %v7814_v37, %v6995_v9 }
 0x96f   :  { %5173 = vmatpush3.msra.mxu1 %v7810_v46  ;;  %5174 = vmatprep.mubr.msk.f32.mxu1 %vm5706_vm0, %v7725_v31 }
 0x970   :  { %3250 = vmatprep.subr.mxu0 %v7811_v45  ;;  %5177 = vmatprep.subr.mxu1 %v7725_v31 }
 0xa0f   :  { %v2878_v63 = vpop.f32.mrf.mxu0  ;;  %v2949_v51 = vpop.f32.mrf.mxu1 }
 0xa10   :  { %v2957_v55 = vadd.f32 %v2878_v63, %v2365_v53  ;;  %v2956_v40 = vadd.f32 %v6998_v42, %v2949_v51  ;;  %v7815_v53 = vld [vmem:[#allocation27_spill] sm:$0xff] }
 0xa11   :  { %v5141_v12 = vpop.f32.mrf.mxu1  ;;  %v2880_v6 = vpop.f32.mrf.mxu0  ;;  %v2477_v63 = vadd.f32 %v7815_v53, %v7003_v50  ;;  %v7222_v53 = vld [vmem:[#allocation9 + $0x288] sm:$0xff] }
 0xa12   :  { %v4366_v27 = vmul.f32 -1.442695, %v2957_v55  ;;  %v2964_v46 = vadd.f32 %v2880_v6, %v2367_v38  ;;  %v7212_v6 = vld [vmem:[#allocation9 + $0x2a0] sm:$0xff] }
 0xa14   :  { %5461 = vpow2.f32 %v4366_v27  ;;  %v4367_v10 = vmul.f32 -1.442695, %v2964_v46 }
 0xa16   :  { %5463 = vpow2.f32 %v4367_v10 }
 0xa21   :  { %v5462_v25 = vpop.eup %5461 }
 0xa22   :  { %v2961_v45 = vadd.f32 1.0, %v5462_v25 }
 0xa23   :  { %v5464_v41 = vpop.eup %5463 }
 0xa24   :  { %5465 = vrcp.f32 %v2961_v45  ;;  %v2968_v20 = vadd.f32 1.0, %v5464_v41  ;;  %v7214_v45 = vld [vmem:[#allocation9 + $0x2b0] sm:$0xff] }
 0xa26   :  { %5467 = vrcp.f32 %v2968_v20  ;;  %v7200_v20 = vld [vmem:[#allocation9 + $0x2d0] sm:$0xff] }
 0xa31   :  { %v5466_v39 = vpop.eup %5465 }
 0xa32   :  { %v2971_v55 = vmul.f32 %v5466_v39, %v2956_v40  ;;  %v7209_v39 = vld [vmem:[#allocation9 + $0x2a8] sm:$0xff]  ;;  %v7218_v40 = vld [vmem:[#allocation9 + $0x290] sm:$0xff] }
 0xa33   :  { %v5468_v37 = vpop.eup %5467 }
 0xa34   :  { %v2972_v12 = vadd.f32 %v2971_v55, %v2477_v63  ;;  %v2974_v27 = vsub.f32 1.0, %v5468_v37  ;;  %v2976_v10 = vmul.f32 %v5468_v37, %v7012_v13  ;;  %v7224_v63 = vld [vmem:[#allocation9 + $0x298] sm:$0xff]  ;;  %v7234_v37 = vld [vmem:[#allocation9 + $0x280] sm:$0xff] }
 0xa35   :  { %v7228_v55 = vld [vmem:[#allocation9 + $0x278] sm:$0xff] }
 0xa36   :  { %5469 = vtanh.f32 %v2972_v12  ;;  %v7232_v12 = vld [vmem:[#allocation9 + $0x270] sm:$0xff] }
 0xa43   :  { %v5470_v38 = vpop.eup %5469 }
 0xa44   :  { %v2975_v46 = vmul.f32 %v5470_v38, %v2974_v27  ;;  %v7238_v27 = vld [vmem:[#allocation9 + $0x260] sm:$0xff]  ;;  %v7240_v38 = vld [vmem:[#allocation9 + $0x258] sm:$0xff] }
 0xa46   :  { %v2977_v25 = vadd.f32 %v2976_v10, %v2975_v46  ;;  %v7242_v46 = vld [vmem:[#allocation9 + $0x268] sm:$0xff] }
 0xa47   :  { %v7246_v10 = vld [vmem:[#allocation9 + $0x248] sm:$0xff] }
 0xa48   :  { %v7093_v41 = vsel %vm4344_vm2, %v2977_v25, %v7012_v13  ;;  %v2980_v51 = vsel %vm4344_vm2, %v2977_v25, 0.0  ;;  %v7197_v13 = vld [vmem:[#allocation9 + $0x2d8] sm:$0xff]  ;;  %v7248_v25 = vld [vmem:[#allocation9 + $0x240] sm:$0xff] }
 0xa49   :  { %2981 = vst [vmem:[#allocation13 + $0x8] sm:$0xff] %v2980_v51  ;;  %3096 = vmatmul.mubr.f32.vlgmr.msra.gmra.mxu0 %v7093_v41  ;;  %5175 = vmatmul.mubr.f32.vlgmr.msra.gmra.mxu1 %v7093_v41  ;;  %v7254_v51 = vld [vmem:[#allocation9 + $0x230] sm:$0xff] }
 0xa4a   :  { %3251 = vmatpush1.msra.mxu0 %v6703_v49  ;;  %5178 = vmatpush3.msra.mxu1 %v6795_v24  ;;  %v7816_v49 = vld [vmem:[#allocation29_spill] sm:$0xff] }
 0xa4b   :  { %3252 = vmatprep.subr.mxu0 %v6706_v16  ;;  %5179 = vmatprep.subr.mxu1 %v7725_v31  ;;  %v7817_v16 = vld [vmem:[#allocation30_spill] sm:$0xff] }
 0xa4c   :  { %3253 = vmatpush1.msra.mxu0 %v6709_v48  ;;  %5180 = vmatpush3.msra.mxu1 %v6797_v23  ;;  %v7818_v48 = vld [vmem:[#allocation21_spill] sm:$0xff] }
 0xa4d   :  { %3254 = vmatprep.subr.mxu0 %v6712_v57  ;;  %5181 = vmatprep.subr.mxu1 %v7725_v31  ;;  %v7819_v57 = vld [vmem:[#allocation31_spill] sm:$0xff] }
 0xa4e   :  { %3255 = vmatpush1.msra.mxu0 %v6715_v44  ;;  %5182 = vmatpush3.msra.mxu1 %v6802_v11  ;;  %v7820_v44 = vld [vmem:[#allocation32_spill] sm:$0xff] }
 0xa4f   :  { %3256 = vmatprep.subr.mxu0 %v6718_v47  ;;  %5183 = vmatprep.subr.mxu1 %v7725_v31  ;;  %v7821_v47 = vld [vmem:[#allocation33_spill] sm:$0xff] }
 0xa50   :  { %3257 = vmatpush1.msra.mxu0 %v6721_v22  ;;  %5184 = vmatpush3.msra.mxu1 %v6807_v14  ;;  %v7822_v22 = vld [vmem:[#allocation26_spill] sm:$0xff] }
 0xa51   :  { %3258 = vmatprep.subr.mxu0 %v6724_v43  ;;  %5185 = vmatprep.subr.mxu1 %v7725_v31  ;;  %v7823_v43 = vld [vmem:[#allocation24_spill] sm:$0xff] }
 0xa52   :  { %3259 = vmatpush1.msra.mxu0 %v6727_v26  ;;  %5186 = vmatpush3.msra.mxu1 %v6811_v15  ;;  %v2371_v26 = vadd.f32 %v7823_v43, %v7822_v22  ;;  %v7278_v43 = vld [vmem:[#allocation9 + $0x1f8] sm:$0xff] }
 0xa53   :  { %3260 = vmatprep.subr.mxu0 %v6730_v61  ;;  %5187 = vmatprep.subr.mxu1 %v7725_v31 }
 0xa54   :  { %3261 = vmatpush1.msra.mxu0 %v6733_v54  ;;  %5188 = vmatpush3.msra.mxu1 %v6815_v4 }
 0xa55   :  { %3262 = vmatprep.subr.mxu0 %v6736_v56  ;;  %5189 = vmatprep.subr.mxu1 %v7725_v31 }
 0xa56   :  { %3263 = vmatpush1.msra.mxu0 %v6739_v58  ;;  %5190 = vmatpush3.msra.mxu1 %v6819_v28 }
 0xa57   :  { %3264 = vmatprep.subr.mxu0 %v6742_v59  ;;  %5191 = vmatprep.subr.mxu1 %v7725_v31 }
 0xa58   :  { %3265 = vmatpush1.msra.mxu0 %v6745_v60  ;;  %5192 = vmatpush3.msra.mxu1 %v6823_v29 }
 0xa59   :  { %3266 = vmatprep.subr.mxu0 %v6748_v62  ;;  %5193 = vmatprep.subr.mxu1 %v7725_v31  ;;  %v7824_v62 = vld [vmem:[#allocation25_spill] sm:$0xff] }
 0xa5a   :  { %3267 = vmatpush1.msra.mxu0 %v6751_v1  ;;  %5194 = vmatpush3.msra.mxu1 %v6827_v30  ;;  %v2373_v1 = vadd.f32 %v7824_v62, %v6995_v9  ;;  %v7304_v62 = vld [vmem:[#allocation9 + $0x1b8] sm:$0xff] }
 0xa5b   :  { %3268 = vmatprep.subr.mxu0 %v6754_v52  ;;  %5195 = vmatprep.subr.mxu1 %v7725_v31 }
 0xa5c   :  { %3269 = vmatpush1.msra.mxu0 %v6757_v2  ;;  %5196 = vmatpush3.msra.mxu1 %v6831_v32 }
 0xa5d   :  { %3270 = vmatprep.subr.mxu0 %v6760_v3  ;;  %5197 = vmatprep.subr.mxu1 %v7725_v31 }
 0xa5e   :  { %3271 = vmatpush1.msra.mxu0 %v6763_v5  ;;  %5198 = vmatpush3.msra.mxu1 %v6835_v33 }
 0xa5f   :  { %3272 = vmatprep.subr.mxu0 %v6766_v7  ;;  %5199 = vmatprep.subr.mxu1 %v7725_v31 }
 0xa60   :  { %3273 = vmatpush1.msra.mxu0 %v6769_v0  ;;  %5200 = vmatpush3.msra.mxu1 %v6839_v34 }
 0xa61   :  { %3274 = vmatprep.subr.mxu0 %v6772_v8  ;;  %5201 = vmatprep.subr.mxu1 %v7725_v31 }
 0xa62   :  { %3275 = vmatpush1.msra.mxu0 %v6775_v21  ;;  %5202 = vmatpush3.msra.mxu1 %v6843_v35 }
 0xa63   :  { %3276 = vmatprep.subr.mxu0 %v6778_v18  ;;  %5203 = vmatprep.subr.mxu1 %v7725_v31  ;;  %v7825_v18 = vld [vmem:[#allocation38_spill] sm:$0xff] }
 0xa64   :  { %3277 = vmatpush1.msra.mxu0 %v6781_v19  ;;  %5204 = vmatpush3.msra.mxu1 %v6847_v36  ;;  %v2482_v19 = vadd.f32 %v7825_v18, %v7003_v50  ;;  %v7191_v36 = vld [vmem:[#allocation9 + $0x2f0] sm:$0xff] }
 0xa65   :  { %3278 = vmatprep.subr.mxu0 %v7816_v49  ;;  %5205 = vmatprep.subr.mxu1 %v7725_v31  ;;  %7826 = vst [vmem:[#allocation28_spill] sm:$0xff] %v7191_v36  ;;  %v7258_v49 = vld [vmem:[#allocation9 + $0x228] sm:$0xff] }
 0xa66   :  { %3279 = vmatpush1.msra.mxu0 %v7817_v16  ;;  %5206 = vmatpush3.msra.mxu1 %v7818_v48  ;;  %v7260_v16 = vld [vmem:[#allocation9 + $0x238] sm:$0xff] }
 0xa67   :  { %3280 = vmatprep.subr.mxu0 %v7819_v57  ;;  %5207 = vmatprep.subr.mxu1 %v7725_v31  ;;  %v7264_v48 = vld [vmem:[#allocation9 + $0x218] sm:$0xff]  ;;  %v7268_v57 = vld [vmem:[#allocation9 + $0x210] sm:$0xff] }
 0xa68   :  { %3281 = vmatpush1.msra.mxu0 %v7820_v44  ;;  %3314 = vmatprep.mubr.f32.mxu0 %v7725_v31  ;;  %v7270_v44 = vld [vmem:[#allocation9 + $0x220] sm:$0xff] }
 0xa69   :  { %5208 = vmatpush3.msra.mxu1 %v7821_v47  ;;  %5209 = vmatprep.mubr.msk.f32.mxu1 %vm5706_vm0, %v7725_v31  ;;  %v7274_v47 = vld [vmem:[#allocation9 + $0x200] sm:$0xff] }
 0xa6a   :  { %5212 = vmatprep.subr.mxu1 %v7725_v31  ;;  %3469 = vmatprep.subr.mxu0 %v7191_v36 }
 0xb09   :  { %v3097_v61 = vpop.f32.mrf.mxu0  ;;  %v3168_v54 = vpop.f32.mrf.mxu1 }
 0xb0a   :  { %v3176_v56 = vadd.f32 %v3097_v61, %v2371_v26  ;;  %v3175_v8 = vadd.f32 %v6998_v42, %v3168_v54  ;;  %v7280_v26 = vld [vmem:[#allocation9 + $0x208] sm:$0xff]  ;;  %v7288_v54 = vld [vmem:[#allocation9 + $0x1e0] sm:$0xff] }
 0xb0b   :  { %v5176_v58 = vpop.f32.mrf.mxu1  ;;  %v3099_v60 = vpop.f32.mrf.mxu0  ;;  %v7284_v61 = vld [vmem:[#allocation9 + $0x1e8] sm:$0xff] }
 0xb0c   :  { %v4368_v59 = vmul.f32 -1.442695, %v3176_v56  ;;  %v3183_v52 = vadd.f32 %v3099_v60, %v2373_v1  ;;  %v7290_v56 = vld [vmem:[#allocation9 + $0x1f0] sm:$0xff]  ;;  %v7300_v60 = vld [vmem:[#allocation9 + $0x1d8] sm:$0xff] }
 0xb0d   :  { %v7294_v58 = vld [vmem:[#allocation9 + $0x1d0] sm:$0xff]  ;;  %7827 = vst [vmem:[#allocation34_spill] sm:$0xff] %v7300_v60 }
 0xb0e   :  { %5471 = vpow2.f32 %v4368_v59  ;;  %v4369_v2 = vmul.f32 -1.442695, %v3183_v52  ;;  %v7298_v59 = vld [vmem:[#allocation9 + $0x1c8] sm:$0xff]  ;;  %v7308_v1 = vld [vmem:[#allocation9 + $0x1b0] sm:$0xff]  ;;  %v7310_v52 = vld [vmem:[#allocation9 + $0x1c0] sm:$0xff] }
 0xb0f   :  { %7828 = vst [vmem:[#allocation42_spill] sm:$0xff] %v7310_v52 }
 0xb10   :  { %5473 = vpow2.f32 %v4369_v2  ;;  %v7314_v2 = vld [vmem:[#allocation9 + $0x1a0] sm:$0xff] }
 0xb11   :  { %7829 = vst [vmem:[#allocation27_spill] sm:$0xff] %v7314_v2 }
 0xb1b   :  { %v5472_v3 = vpop.eup %5471 }
 0xb1c   :  { %v3180_v5 = vadd.f32 1.0, %v5472_v3  ;;  %v7318_v3 = vld [vmem:[#allocation9 + $0x198] sm:$0xff] }
 0xb1d   :  { %v5474_v7 = vpop.eup %5473  ;;  %7830 = vst [vmem:[#allocation29_spill] sm:$0xff] %v7318_v3 }
 0xb1e   :  { %5475 = vrcp.f32 %v3180_v5  ;;  %v3187_v0 = vadd.f32 1.0, %v5474_v7  ;;  %v7320_v5 = vld [vmem:[#allocation9 + $0x1a8] sm:$0xff] }
 0xb1f   :  { %7831 = vst [vmem:[#allocation30_spill] sm:$0xff] %v7320_v5  ;;  %v7324_v7 = vld [vmem:[#allocation9 + $0x188] sm:$0xff] }
 0xb20   :  { %5477 = vrcp.f32 %v3187_v0  ;;  %7832 = vst [vmem:[#allocation21_spill] sm:$0xff] %v7324_v7  ;;  %v7328_v0 = vld [vmem:[#allocation9 + $0x180] sm:$0xff] }
 0xb21   :  { %7833 = vst [vmem:[#allocation31_spill] sm:$0xff] %v7328_v0 }
 0xb2b   :  { %v5476_v21 = vpop.eup %5475 }
 0xb2c   :  { %v3190_v14 = vmul.f32 %v5476_v21, %v3175_v8  ;;  %v7330_v8 = vld [vmem:[#allocation9 + $0x190] sm:$0xff]  ;;  %v7835_v21 = vld [vmem:[#allocation22_spill] sm:$0xff] }
 0xb2d   :  { %v5478_v4 = vpop.eup %5477  ;;  %7834 = vst [vmem:[#allocation32_spill] sm:$0xff] %v7330_v8  ;;  %v2377_v18 = vadd.f32 %v7835_v21, %v7822_v22 }
 0xb2e   :  { %v3191_v15 = vadd.f32 %v3190_v14, %v2482_v19  ;;  %v3193_v28 = vsub.f32 1.0, %v5478_v4  ;;  %v3195_v32 = vmul.f32 %v5478_v4, %v7093_v41 }
 0xb30   :  { %5479 = vtanh.f32 %v3191_v15 }
 0xb3d   :  { %v5480_v29 = vpop.eup %5479 }
 0xb3e   :  { %v3194_v30 = vmul.f32 %v5480_v29, %v3193_v28 }
 0xb40   :  { %v3196_v33 = vadd.f32 %v3195_v32, %v3194_v30  ;;  %v7836_v30 = vld [vmem:[#allocation23_spill] sm:$0xff] }
 0xb41   :  { %v2379_v32 = vadd.f32 %v7836_v30, %v6995_v9 }
 0xb42   :  { %v7176_v34 = vsel %vm4347_vm3, %v3196_v33, %v7093_v41  ;;  %v3199_v35 = vsel %vm4347_vm3, %v3196_v33, 0.0  ;;  %v7250_v41 = vld [vmem:[#allocation9 + $0x250] sm:$0xff] }
 0xb43   :  { %3200 = vst [vmem:[#allocation13 + $0x10] sm:$0xff] %v3199_v35  ;;  %3315 = vmatmul.mubr.f32.vlgmr.msra.gmra.mxu0 %v7176_v34  ;;  %5210 = vmatmul.mubr.f32.vlgmr.msra.gmra.mxu1 %v7176_v34 }
 0xb44   :  { %5213 = vmatpush3.msra.mxu1 %v6795_v24  ;;  %3533 = vmatprep.mubr.f32.mxu0 %v7725_v31  ;;  %v7194_v24 = vld [vmem:[#allocation9 + $0x2e8] sm:$0xff] }
 0xb45   :  { %5214 = vmatprep.subr.mxu1 %v7725_v31  ;;  %5244 = vmatprep.mubr.msk.f32.mxu1 %vm5706_vm0, %v7725_v31 }
 0xb46   :  { %5215 = vmatpush3.msra.mxu1 %v6797_v23  ;;  %3470 = vmatpush1.msra.mxu0 %v7194_v24  ;;  %v7203_v23 = vld [vmem:[#allocation9 + $0x2c0] sm:$0xff] }
 0xb47   :  { %5216 = vmatprep.subr.mxu1 %v7725_v31  ;;  %3471 = vmatprep.subr.mxu0 %v7197_v13 }
 0xb48   :  { %5217 = vmatpush3.msra.mxu1 %v6802_v11  ;;  %3472 = vmatpush1.msra.mxu0 %v7200_v20  ;;  %v7206_v11 = vld [vmem:[#allocation9 + $0x2b8] sm:$0xff] }
 0xb49   :  { %5218 = vmatprep.subr.mxu1 %v7725_v31  ;;  %3473 = vmatprep.subr.mxu0 %v7203_v23 }
 0xb4a   :  { %3474 = vmatpush1.msra.mxu0 %v7206_v11  ;;  %5219 = vmatpush3.msra.mxu1 %v7214_v45 }
 0xb4b   :  { %3475 = vmatprep.subr.mxu0 %v7209_v39  ;;  %5220 = vmatprep.subr.mxu1 %v7725_v31 }
 0xb4c   :  { %3476 = vmatpush1.msra.mxu0 %v7212_v6  ;;  %5221 = vmatpush3.msra.mxu1 %v7224_v63 }
 0xb4d   :  { %3477 = vmatprep.subr.mxu0 %v7218_v40  ;;  %5222 = vmatprep.subr.mxu1 %v7725_v31 }
 0xb4e   :  { %3478 = vmatpush1.msra.mxu0 %v7222_v53  ;;  %5223 = vmatpush3.msra.mxu1 %v7234_v37 }
 0xb4f   :  { %3479 = vmatprep.subr.mxu0 %v7228_v55  ;;  %5224 = vmatprep.subr.mxu1 %v7725_v31 }
 0xb50   :  { %3480 = vmatpush1.msra.mxu0 %v7232_v12  ;;  %5225 = vmatpush3.msra.mxu1 %v7242_v46 }
 0xb51   :  { %3481 = vmatprep.subr.mxu0 %v7238_v27  ;;  %5226 = vmatprep.subr.mxu1 %v7725_v31 }
 0xb52   :  { %3482 = vmatpush1.msra.mxu0 %v7240_v38  ;;  %5227 = vmatpush3.msra.mxu1 %v7250_v41 }
 0xb53   :  { %3483 = vmatprep.subr.mxu0 %v7246_v10  ;;  %5228 = vmatprep.subr.mxu1 %v7725_v31 }
 0xb54   :  { %3484 = vmatpush1.msra.mxu0 %v7248_v25  ;;  %5229 = vmatpush3.msra.mxu1 %v7260_v16 }
 0xb55   :  { %3485 = vmatprep.subr.mxu0 %v7254_v51  ;;  %5230 = vmatprep.subr.mxu1 %v7725_v31 }
 0xb56   :  { %3486 = vmatpush1.msra.mxu0 %v7258_v49  ;;  %5231 = vmatpush3.msra.mxu1 %v7270_v44 }
 0xb57   :  { %3487 = vmatprep.subr.mxu0 %v7264_v48  ;;  %5232 = vmatprep.subr.mxu1 %v7725_v31 }
 0xb58   :  { %3488 = vmatpush1.msra.mxu0 %v7268_v57  ;;  %5233 = vmatpush3.msra.mxu1 %v7280_v26 }
 0xb59   :  { %3489 = vmatprep.subr.mxu0 %v7274_v47  ;;  %5234 = vmatprep.subr.mxu1 %v7725_v31 }
 0xb5a   :  { %3490 = vmatpush1.msra.mxu0 %v7278_v43  ;;  %5235 = vmatpush3.msra.mxu1 %v7290_v56 }
 0xb5b   :  { %3491 = vmatprep.subr.mxu0 %v7284_v61  ;;  %5236 = vmatprep.subr.mxu1 %v7725_v31 }
 0xb5c   :  { %3492 = vmatpush1.msra.mxu0 %v7288_v54  ;;  %5237 = vmatpush3.msra.mxu1 %v7300_v60 }
 0xb5d   :  { %3493 = vmatprep.subr.mxu0 %v7294_v58  ;;  %5238 = vmatprep.subr.mxu1 %v7725_v31 }
 0xb5e   :  { %3494 = vmatpush1.msra.mxu0 %v7298_v59  ;;  %5239 = vmatpush3.msra.mxu1 %v7310_v52 }
 0xb5f   :  { %3495 = vmatprep.subr.mxu0 %v7304_v62  ;;  %5240 = vmatprep.subr.mxu1 %v7725_v31 }
 0xb60   :  { %3496 = vmatpush1.msra.mxu0 %v7308_v1  ;;  %5241 = vmatpush3.msra.mxu1 %v7320_v5 }
 0xb61   :  { %3497 = vmatprep.subr.mxu0 %v7314_v2  ;;  %5242 = vmatprep.subr.mxu1 %v7725_v31 }
 0xb62   :  { %3498 = vmatpush1.msra.mxu0 %v7318_v3  ;;  %5243 = vmatpush3.msra.mxu1 %v7330_v8 }
 0xb63   :  { %3499 = vmatprep.subr.mxu0 %v7324_v7  ;;  %5247 = vmatprep.subr.mxu1 %v7725_v31 }
 0xb64   :  { %3500 = vmatpush1.msra.mxu0 %v7328_v0 }
 0xb65   :  { %3688 = vmatprep.subr.mxu0 %v7191_v36 }
 0xc03   :  { %v3316_v19 = vpop.f32.mrf.mxu0  ;;  %v3387_v14 = vpop.f32.mrf.mxu1 }
 0xc04   :  { %v3395_v15 = vadd.f32 %v3316_v19, %v2377_v18  ;;  %v3394_v21 = vadd.f32 %v6998_v42, %v3387_v14  ;;  %v7837_v18 = vld [vmem:[#allocation41_spill] sm:$0xff]  ;;  %v7838_v14 = vld [vmem:[#allocation34_spill] sm:$0xff] }
 0xc05   :  { %v5211_v4 = vpop.f32.mrf.mxu1  ;;  %v3318_v29 = vpop.f32.mrf.mxu0  ;;  %v2487_v19 = vadd.f32 %v7837_v18, %v7003_v50  ;;  %v7841_v18 = vld [vmem:[#allocation32_spill] sm:$0xff] }
 0xc06   :  { %v4370_v28 = vmul.f32 -1.442695, %v3395_v15  ;;  %v3402_v33 = vadd.f32 %v3318_v29, %v2379_v32 }
 0xc08   :  { %5481 = vpow2.f32 %v4370_v28  ;;  %v4371_v35 = vmul.f32 -1.442695, %v3402_v33 }
 0xc0a   :  { %5483 = vpow2.f32 %v4371_v35  ;;  %v7839_v35 = vld [vmem:[#allocation42_spill] sm:$0xff] }
 0xc15   :  { %v5482_v8 = vpop.eup %5481 }
 0xc16   :  { %v3399_v5 = vadd.f32 1.0, %v5482_v8 }
 0xc17   :  { %v5484_v52 = vpop.eup %5483 }
 0xc18   :  { %5485 = vrcp.f32 %v3399_v5  ;;  %v3406_v60 = vadd.f32 1.0, %v5484_v52 }
 0xc1a   :  { %5487 = vrcp.f32 %v3406_v60  ;;  %v7400_v60 = vld [vmem:[#allocation9 + $0x2c8] sm:$0xff] }
 0xc25   :  { %v5486_v22 = vpop.eup %5485 }
 0xc26   :  { %v3409_v15 = vmul.f32 %v5486_v22, %v3394_v21  ;;  %v7392_v22 = vld [vmem:[#allocation9 + $0x2f8] sm:$0xff]  ;;  %v7840_v21 = vld [vmem:[#allocation30_spill] sm:$0xff] }
 0xc27   :  { %v5488_v30 = vpop.eup %5487 }
 0xc28   :  { %v3410_v4 = vadd.f32 %v3409_v15, %v2487_v19  ;;  %v3412_v28 = vsub.f32 1.0, %v5488_v30  ;;  %v3414_v33 = vmul.f32 %v5488_v30, %v7176_v34  ;;  %v7842_v19 = vld [vmem:[#allocation26_spill] sm:$0xff]  ;;  %v7843_v15 = vld [vmem:[#allocation35_spill] sm:$0xff] }
 0xc2a   :  { %5489 = vtanh.f32 %v3410_v4  ;;  %v2383_v4 = vadd.f32 %v7843_v15, %v7842_v19 }
 0xc37   :  { %v5490_v29 = vpop.eup %5489 }
 0xc38   :  { %v3413_v32 = vmul.f32 %v5490_v29, %v3412_v28 }
 0xc3a   :  { %v3415_v8 = vadd.f32 %v3414_v33, %v3413_v32 }
 0xc3c   :  { %v7351_v52 = vsel %vm4350_vm4, %v3415_v8, %v7176_v34  ;;  %v3418_v5 = vsel %vm4350_vm4, %v3415_v8, 0.0  ;;  %v7396_v34 = vld [vmem:[#allocation9 + $0x2e0] sm:$0xff] }
 0xc3d   :  { %3419 = vst [vmem:[#allocation13 + $0x18] sm:$0xff] %v3418_v5  ;;  %3534 = vmatmul.mubr.f32.vlgmr.msra.gmra.mxu0 %v7351_v52  ;;  %5245 = vmatmul.mubr.f32.vlgmr.msra.gmra.mxu1 %v7351_v52  ;;  %v7844_v5 = vld [vmem:[#allocation36_spill] sm:$0xff] }
 0xc3e   :  { %3689 = vmatpush1.msra.mxu0 %v7194_v24  ;;  %3752 = vmatprep.mubr.f32.mxu0 %v7725_v31 }
 0xc3f   :  { %3690 = vmatprep.subr.mxu0 %v7197_v13  ;;  %5279 = vmatprep.mubr.msk.f32.mxu1 %vm5706_vm0, %v7725_v31 }
 0xc40   :  { %3691 = vmatpush1.msra.mxu0 %v7200_v20  ;;  %5248 = vmatpush3.msra.mxu1 %v7392_v22 }
 0xc41   :  { %3692 = vmatprep.subr.mxu0 %v7203_v23  ;;  %5249 = vmatprep.subr.mxu1 %v7725_v31 }
 0xc42   :  { %3693 = vmatpush1.msra.mxu0 %v7206_v11  ;;  %5250 = vmatpush3.msra.mxu1 %v7396_v34 }
 0xc43   :  { %3694 = vmatprep.subr.mxu0 %v7209_v39  ;;  %5251 = vmatprep.subr.mxu1 %v7725_v31 }
 0xc44   :  { %3695 = vmatpush1.msra.mxu0 %v7212_v6  ;;  %5252 = vmatpush3.msra.mxu1 %v7400_v60 }
 0xc45   :  { %3696 = vmatprep.subr.mxu0 %v7218_v40  ;;  %5253 = vmatprep.subr.mxu1 %v7725_v31 }
 0xc46   :  { %3697 = vmatpush1.msra.mxu0 %v7222_v53  ;;  %5254 = vmatpush3.msra.mxu1 %v7214_v45 }
 0xc47   :  { %3698 = vmatprep.subr.mxu0 %v7228_v55  ;;  %5255 = vmatprep.subr.mxu1 %v7725_v31 }
 0xc48   :  { %3699 = vmatpush1.msra.mxu0 %v7232_v12  ;;  %5256 = vmatpush3.msra.mxu1 %v7224_v63 }
 0xc49   :  { %3700 = vmatprep.subr.mxu0 %v7238_v27  ;;  %5257 = vmatprep.subr.mxu1 %v7725_v31 }
 0xc4a   :  { %3701 = vmatpush1.msra.mxu0 %v7240_v38  ;;  %5258 = vmatpush3.msra.mxu1 %v7234_v37 }
 0xc4b   :  { %3702 = vmatprep.subr.mxu0 %v7246_v10  ;;  %5259 = vmatprep.subr.mxu1 %v7725_v31 }
 0xc4c   :  { %3703 = vmatpush1.msra.mxu0 %v7248_v25  ;;  %5260 = vmatpush3.msra.mxu1 %v7242_v46 }
 0xc4d   :  { %3704 = vmatprep.subr.mxu0 %v7254_v51  ;;  %5261 = vmatprep.subr.mxu1 %v7725_v31 }
 0xc4e   :  { %3705 = vmatpush1.msra.mxu0 %v7258_v49  ;;  %5262 = vmatpush3.msra.mxu1 %v7250_v41 }
 0xc4f   :  { %3706 = vmatprep.subr.mxu0 %v7264_v48  ;;  %5263 = vmatprep.subr.mxu1 %v7725_v31 }
 0xc50   :  { %3707 = vmatpush1.msra.mxu0 %v7268_v57  ;;  %5264 = vmatpush3.msra.mxu1 %v7260_v16 }
 0xc51   :  { %3708 = vmatprep.subr.mxu0 %v7274_v47  ;;  %5265 = vmatprep.subr.mxu1 %v7725_v31 }
 0xc52   :  { %3709 = vmatpush1.msra.mxu0 %v7278_v43  ;;  %5266 = vmatpush3.msra.mxu1 %v7270_v44 }
 0xc53   :  { %3710 = vmatprep.subr.mxu0 %v7284_v61  ;;  %5267 = vmatprep.subr.mxu1 %v7725_v31 }
 0xc54   :  { %3711 = vmatpush1.msra.mxu0 %v7288_v54  ;;  %5268 = vmatpush3.msra.mxu1 %v7280_v26 }
 0xc55   :  { %3712 = vmatprep.subr.mxu0 %v7294_v58  ;;  %5269 = vmatprep.subr.mxu1 %v7725_v31 }
 0xc56   :  { %3713 = vmatpush1.msra.mxu0 %v7298_v59  ;;  %5270 = vmatpush3.msra.mxu1 %v7290_v56 }
 0xc57   :  { %3714 = vmatprep.subr.mxu0 %v7304_v62  ;;  %5271 = vmatprep.subr.mxu1 %v7725_v31 }
 0xc58   :  { %3715 = vmatpush1.msra.mxu0 %v7308_v1  ;;  %5272 = vmatpush3.msra.mxu1 %v7838_v14 }
 0xc59   :  { %3716 = vmatprep.subr.mxu0 %v7314_v2  ;;  %5273 = vmatprep.subr.mxu1 %v7725_v31 }
 0xc5a   :  { %3717 = vmatpush1.msra.mxu0 %v7318_v3  ;;  %5274 = vmatpush3.msra.mxu1 %v7839_v35 }
 0xc5b   :  { %3718 = vmatprep.subr.mxu0 %v7324_v7  ;;  %5275 = vmatprep.subr.mxu1 %v7725_v31 }
 0xc5c   :  { %3719 = vmatpush1.msra.mxu0 %v7328_v0  ;;  %5276 = vmatpush3.msra.mxu1 %v7840_v21 }
 0xc5d   :  { %3907 = vmatprep.subr.mxu0 %v7191_v36  ;;  %5277 = vmatprep.subr.mxu1 %v7725_v31  ;;  %v2385_v36 = vadd.f32 %v7844_v5, %v6995_v9 }
 0xc5e   :  { %5278 = vmatpush3.msra.mxu1 %v7841_v18 }
 0xc5f   :  { %5282 = vmatprep.subr.mxu1 %v7725_v31 }
 0xcfd   :  { %v3535_v30 = vpop.f32.mrf.mxu0  ;;  %v3606_v28 = vpop.f32.mrf.mxu1 }
 0xcfe   :  { %v3614_v29 = vadd.f32 %v3535_v30, %v2383_v4  ;;  %v3613_v15 = vadd.f32 %v6998_v42, %v3606_v28  ;;  %v7845_v4 = vld [vmem:[#allocation43_spill] sm:$0xff] }
 0xcff   :  { %v5246_v32 = vpop.f32.mrf.mxu1  ;;  %v3537_v8 = vpop.f32.mrf.mxu0  ;;  %v2492_v30 = vadd.f32 %v7845_v4, %v7003_v50  ;;  %v7850_v28 = vld [vmem:[#allocation31_spill] sm:$0xff]  ;;  %v7853_v4 = vld [vmem:[#allocation26_spill] sm:$0xff] }
 0xd00   :  { %v4372_v33 = vmul.f32 -1.442695, %v3614_v29  ;;  %v3621_v0 = vadd.f32 %v3537_v8, %v2385_v36  ;;  %v7851_v8 = vld [vmem:[#allocation32_spill] sm:$0xff] }
 0xd02   :  { %5491 = vpow2.f32 %v4372_v33  ;;  %v4373_v7 = vmul.f32 -1.442695, %v3621_v0 }
 0xd04   :  { %5493 = vpow2.f32 %v4373_v7 }
 0xd0f   :  { %v5492_v21 = vpop.eup %5491 }
 0xd10   :  { %v3618_v18 = vadd.f32 1.0, %v5492_v21 }
 0xd11   :  { %v5494_v3 = vpop.eup %5493 }
 0xd12   :  { %5495 = vrcp.f32 %v3618_v18  ;;  %v3625_v2 = vadd.f32 1.0, %v5494_v3  ;;  %v7848_v18 = vld [vmem:[#allocation30_spill] sm:$0xff] }
 0xd14   :  { %5497 = vrcp.f32 %v3625_v2  ;;  %v7846_v2 = vld [vmem:[#allocation27_spill] sm:$0xff] }
 0xd1f   :  { %v5496_v19 = vpop.eup %5495 }
 0xd20   :  { %v3628_v29 = vmul.f32 %v5496_v19, %v3613_v15  ;;  %v7849_v19 = vld [vmem:[#allocation21_spill] sm:$0xff]  ;;  %v7852_v15 = vld [vmem:[#allocation28_spill] sm:$0xff] }
 0xd21   :  { %v5498_v5 = vpop.eup %5497 }
 0xd22   :  { %v3629_v32 = vadd.f32 %v3628_v29, %v2492_v30  ;;  %v3631_v33 = vsub.f32 1.0, %v5498_v5  ;;  %v3633_v7 = vmul.f32 %v5498_v5, %v7351_v52  ;;  %v7854_v30 = vld [vmem:[#allocation37_spill] sm:$0xff] }
 0xd23   :  { %v2389_v29 = vadd.f32 %v7854_v30, %v7853_v4 }
 0xd24   :  { %5499 = vtanh.f32 %v3629_v32 }
 0xd31   :  { %v5500_v36 = vpop.eup %5499 }
 0xd32   :  { %v3632_v0 = vmul.f32 %v5500_v36, %v3631_v33 }
 0xd34   :  { %v3634_v21 = vadd.f32 %v3633_v7, %v3632_v0 }
 0xd36   :  { %v7441_v3 = vsel %vm4353_vm5, %v3634_v21, %v7351_v52  ;;  %v3637_v42 = vsel %vm4353_vm5, %v3634_v21, 0.0  ;;  %v7847_v52 = vld [vmem:[#allocation29_spill] sm:$0xff]  ;;  %v7855_v21 = vld [vmem:[#allocation44_spill] sm:$0xff] }
 0xd37   :  { %3638 = vst [vmem:[#allocation13 + $0x20] sm:$0xff] %v3637_v42  ;;  %3753 = vmatmul.mubr.f32.vlgmr.msra.gmra.mxu0 %v7441_v3  ;;  %5280 = vmatmul.mubr.f32.vlgmr.msra.gmra.mxu1 %v7441_v3  ;;  %v2391_v42 = vadd.f32 %v7855_v21, %v6995_v9 }
 0xd38   :  { %3908 = vmatpush1.msra.mxu0 %v7194_v24  ;;  %5283 = vmatpush3.msra.mxu1 %v7392_v22 }
 0xd39   :  { %3909 = vmatprep.subr.mxu0 %v7197_v13  ;;  %5284 = vmatprep.subr.mxu1 %v7725_v31 }
 0xd3a   :  { %3910 = vmatpush1.msra.mxu0 %v7200_v20  ;;  %5285 = vmatpush3.msra.mxu1 %v7396_v34 }
 0xd3b   :  { %3911 = vmatprep.subr.mxu0 %v7203_v23  ;;  %5286 = vmatprep.subr.mxu1 %v7725_v31 }
 0xd3c   :  { %3912 = vmatpush1.msra.mxu0 %v7206_v11  ;;  %5287 = vmatpush3.msra.mxu1 %v7400_v60 }
 0xd3d   :  { %3913 = vmatprep.subr.mxu0 %v7209_v39  ;;  %5288 = vmatprep.subr.mxu1 %v7725_v31 }
 0xd3e   :  { %3914 = vmatpush1.msra.mxu0 %v7212_v6  ;;  %5289 = vmatpush3.msra.mxu1 %v7214_v45 }
 0xd3f   :  { %3915 = vmatprep.subr.mxu0 %v7218_v40  ;;  %5290 = vmatprep.subr.mxu1 %v7725_v31 }
 0xd40   :  { %3916 = vmatpush1.msra.mxu0 %v7222_v53  ;;  %5291 = vmatpush3.msra.mxu1 %v7224_v63 }
 0xd41   :  { %3917 = vmatprep.subr.mxu0 %v7228_v55  ;;  %5292 = vmatprep.subr.mxu1 %v7725_v31 }
 0xd42   :  { %3918 = vmatpush1.msra.mxu0 %v7232_v12  ;;  %5293 = vmatpush3.msra.mxu1 %v7234_v37 }
 0xd43   :  { %3919 = vmatprep.subr.mxu0 %v7238_v27  ;;  %5294 = vmatprep.subr.mxu1 %v7725_v31 }
 0xd44   :  { %3920 = vmatpush1.msra.mxu0 %v7240_v38  ;;  %5295 = vmatpush3.msra.mxu1 %v7242_v46 }
 0xd45   :  { %3921 = vmatprep.subr.mxu0 %v7246_v10  ;;  %5296 = vmatprep.subr.mxu1 %v7725_v31 }
 0xd46   :  { %3922 = vmatpush1.msra.mxu0 %v7248_v25  ;;  %5297 = vmatpush3.msra.mxu1 %v7250_v41 }
 0xd47   :  { %3923 = vmatprep.subr.mxu0 %v7254_v51  ;;  %5298 = vmatprep.subr.mxu1 %v7725_v31 }
 0xd48   :  { %3924 = vmatpush1.msra.mxu0 %v7258_v49  ;;  %5299 = vmatpush3.msra.mxu1 %v7260_v16 }
 0xd49   :  { %3925 = vmatprep.subr.mxu0 %v7264_v48  ;;  %5300 = vmatprep.subr.mxu1 %v7725_v31 }
 0xd4a   :  { %3926 = vmatpush1.msra.mxu0 %v7268_v57  ;;  %5301 = vmatpush3.msra.mxu1 %v7270_v44 }
 0xd4b   :  { %3927 = vmatprep.subr.mxu0 %v7274_v47  ;;  %5302 = vmatprep.subr.mxu1 %v7725_v31 }
 0xd4c   :  { %3928 = vmatpush1.msra.mxu0 %v7278_v43  ;;  %5303 = vmatpush3.msra.mxu1 %v7280_v26 }
 0xd4d   :  { %3929 = vmatprep.subr.mxu0 %v7284_v61  ;;  %5304 = vmatprep.subr.mxu1 %v7725_v31 }
 0xd4e   :  { %3930 = vmatpush1.msra.mxu0 %v7288_v54  ;;  %5305 = vmatpush3.msra.mxu1 %v7290_v56 }
 0xd4f   :  { %3931 = vmatprep.subr.mxu0 %v7294_v58  ;;  %5306 = vmatprep.subr.mxu1 %v7725_v31 }
 0xd50   :  { %3932 = vmatpush1.msra.mxu0 %v7298_v59  ;;  %5307 = vmatpush3.msra.mxu1 %v7838_v14 }
 0xd51   :  { %3933 = vmatprep.subr.mxu0 %v7304_v62  ;;  %5308 = vmatprep.subr.mxu1 %v7725_v31 }
 0xd52   :  { %3934 = vmatpush1.msra.mxu0 %v7308_v1  ;;  %5309 = vmatpush3.msra.mxu1 %v7839_v35 }
 0xd53   :  { %3935 = vmatprep.subr.mxu0 %v7846_v2  ;;  %5310 = vmatprep.subr.mxu1 %v7725_v31  ;;  %v7518_v2 = vld [vmem:[#allocation12 + $0x1] ss:$0 sm:$0xff] }
 0xd54   :  { %3936 = vmatpush1.msra.mxu0 %v7847_v52  ;;  %5311 = vmatpush3.msra.mxu1 %v7848_v18 }
 0xd55   :  { %3937 = vmatprep.subr.mxu0 %v7849_v19  ;;  %5312 = vmatprep.subr.mxu1 %v7725_v31 }
 0xd56   :  { %3938 = vmatpush1.msra.mxu0 %v7850_v28  ;;  %3971 = vmatprep.mubr.f32.mxu0 %v7725_v31 }
 0xd57   :  { %5313 = vmatpush3.msra.mxu1 %v7851_v8  ;;  %5314 = vmatprep.mubr.msk.f32.mxu1 %vm5706_vm0, %v7725_v31 }
 0xd58   :  { %4126 = vmatprep.subr.mxu0 %v7852_v15  ;;  %5317 = vmatprep.subr.mxu1 %v7725_v31 }
 0xdf7   :  { %v3754_v32 = vpop.f32.mrf.mxu0  ;;  %v3825_v5 = vpop.f32.mrf.mxu1 }
 0xdf8   :  { %v3833_v33 = vadd.f32 %v3754_v32, %v2389_v29  ;;  %v3832_v30 = vadd.f32 %v7518_v2, %v3825_v5  ;;  %v7856_v32 = vld [vmem:[#allocation39_spill] sm:$0xff] }
 0xdf9   :  { %v5281_v36 = vpop.f32.mrf.mxu1  ;;  %v3756_v7 = vpop.f32.mrf.mxu0 }
 0xdfa   :  { %v4374_v0 = vmul.f32 -1.442695, %v3833_v33  ;;  %v3840_v8 = vadd.f32 %v3756_v7, %v2391_v42  ;;  %v2497_v33 = vadd.f32 %v7856_v32, %v7003_v50 }
 0xdfc   :  { %5501 = vpow2.f32 %v4374_v0  ;;  %v4375_v28 = vmul.f32 -1.442695, %v3840_v8 }
 0xdfe   :  { %5503 = vpow2.f32 %v4375_v28 }
 0xe09   :  { %v5502_v19 = vpop.eup %5501 }
 0xe0a   :  { %v3837_v15 = vadd.f32 1.0, %v5502_v19 }
 0xe0b   :  { %v5504_v18 = vpop.eup %5503 }
 0xe0c   :  { %5505 = vrcp.f32 %v3837_v15  ;;  %v3844_v52 = vadd.f32 1.0, %v5504_v18  ;;  %v7867_v15 = vld [vmem:[#allocation48_spill] sm:$0xff] }
 0xe0e   :  { %5507 = vrcp.f32 %v3844_v52 }
 0xe19   :  { %v5506_v29 = vpop.eup %5505 }
 0xe1a   :  { %v3847_v36 = vmul.f32 %v5506_v29, %v3832_v30  ;;  %v2403_v30 = vadd.f32 %v7867_v15, %v6995_v9 }
 0xe1b   :  { %v5508_v0 = vpop.eup %5507 }
 0xe1c   :  { %v3848_v21 = vadd.f32 %v3847_v36, %v2497_v33  ;;  %v3850_v8 = vsub.f32 1.0, %v5508_v0  ;;  %v3852_v19 = vmul.f32 %v5508_v0, %v7441_v3 }
 0xe1e   :  { %5509 = vtanh.f32 %v3848_v21 }
 0xe2b   :  { %v5510_v28 = vpop.eup %5509 }
 0xe2c   :  { %v3851_v7 = vmul.f32 %v5510_v28, %v3850_v8  ;;  %v7868_v28 = vld [vmem:[#allocation47_spill] sm:$0xff] }
 0xe2e   :  { %v3853_v42 = vadd.f32 %v3852_v19, %v3851_v7  ;;  %v2507_v7 = vadd.f32 %v7868_v28, %v7003_v50 }
 0xe30   :  { %v7527_v18 = vsel %vm4356_vm6, %v3853_v42, %v7441_v3  ;;  %v3856_v5 = vsel %vm4356_vm6, %v3853_v42, 0.0 }
 0xe31   :  { %3857 = vst [vmem:[#allocation13 + $0x28] sm:$0xff] %v3856_v5  ;;  %3972 = vmatmul.mubr.f32.vlgmr.msra.gmra.mxu0 %v7527_v18  ;;  %5315 = vmatmul.mubr.f32.vlgmr.msra.gmra.mxu1 %v7527_v18 }
 0xe32   :  { %4127 = vmatpush1.msra.mxu0 %v7194_v24  ;;  %5318 = vmatpush3.msra.mxu1 %v7392_v22  ;;  %v7857_v24 = vld [vmem:[#allocation27_spill] sm:$0xff] }
 0xe33   :  { %4128 = vmatprep.subr.mxu0 %v7197_v13  ;;  %5319 = vmatprep.subr.mxu1 %v7725_v31  ;;  %v7858_v13 = vld [vmem:[#allocation29_spill] sm:$0xff] }
 0xe34   :  { %4129 = vmatpush1.msra.mxu0 %v7200_v20  ;;  %5320 = vmatpush3.msra.mxu1 %v7396_v34  ;;  %v7859_v20 = vld [vmem:[#allocation30_spill] sm:$0xff] }
 0xe35   :  { %4130 = vmatprep.subr.mxu0 %v7203_v23  ;;  %5321 = vmatprep.subr.mxu1 %v7725_v31  ;;  %v7860_v23 = vld [vmem:[#allocation21_spill] sm:$0xff] }
 0xe36   :  { %4131 = vmatpush1.msra.mxu0 %v7206_v11  ;;  %5322 = vmatpush3.msra.mxu1 %v7400_v60  ;;  %v7861_v11 = vld [vmem:[#allocation31_spill] sm:$0xff] }
 0xe37   :  { %4132 = vmatprep.subr.mxu0 %v7209_v39  ;;  %5323 = vmatprep.subr.mxu1 %v7725_v31  ;;  %v7862_v39 = vld [vmem:[#allocation32_spill] sm:$0xff] }
 0xe38   :  { %4133 = vmatpush1.msra.mxu0 %v7212_v6  ;;  %5324 = vmatpush3.msra.mxu1 %v7214_v45  ;;  %v7863_v6 = vld [vmem:[#allocation40_spill] sm:$0xff] }
 0xe39   :  { %4134 = vmatprep.subr.mxu0 %v7218_v40  ;;  %5325 = vmatprep.subr.mxu1 %v7725_v31  ;;  %v2395_v45 = vadd.f32 %v7863_v6, %v7853_v4 }
 0xe3a   :  { %4135 = vmatpush1.msra.mxu0 %v7222_v53  ;;  %5326 = vmatpush3.msra.mxu1 %v7224_v63 }
 0xe3b   :  { %4136 = vmatprep.subr.mxu0 %v7228_v55  ;;  %5327 = vmatprep.subr.mxu1 %v7725_v31 }
 0xe3c   :  { %4137 = vmatpush1.msra.mxu0 %v7232_v12  ;;  %5328 = vmatpush3.msra.mxu1 %v7234_v37 }
 0xe3d   :  { %4138 = vmatprep.subr.mxu0 %v7238_v27  ;;  %5329 = vmatprep.subr.mxu1 %v7725_v31  ;;  %v7864_v27 = vld [vmem:[#allocation45_spill] sm:$0xff] }
 0xe3e   :  { %4139 = vmatpush1.msra.mxu0 %v7240_v38  ;;  %5330 = vmatpush3.msra.mxu1 %v7242_v46  ;;  %v2397_v38 = vadd.f32 %v7864_v27, %v6995_v9 }
 0xe3f   :  { %4140 = vmatprep.subr.mxu0 %v7246_v10  ;;  %5331 = vmatprep.subr.mxu1 %v7725_v31 }
 0xe40   :  { %4141 = vmatpush1.msra.mxu0 %v7248_v25  ;;  %5332 = vmatpush3.msra.mxu1 %v7250_v41 }
 0xe41   :  { %4142 = vmatprep.subr.mxu0 %v7254_v51  ;;  %5333 = vmatprep.subr.mxu1 %v7725_v31 }
 0xe42   :  { %4143 = vmatpush1.msra.mxu0 %v7258_v49  ;;  %5334 = vmatpush3.msra.mxu1 %v7260_v16 }
 0xe43   :  { %4144 = vmatprep.subr.mxu0 %v7264_v48  ;;  %5335 = vmatprep.subr.mxu1 %v7725_v31  ;;  %v7865_v48 = vld [vmem:[#allocation49_spill] sm:$0xff] }
 0xe44   :  { %4145 = vmatpush1.msra.mxu0 %v7268_v57  ;;  %5336 = vmatpush3.msra.mxu1 %v7270_v44  ;;  %v2502_v57 = vadd.f32 %v7865_v48, %v7003_v50 }
 0xe45   :  { %4146 = vmatprep.subr.mxu0 %v7274_v47  ;;  %5337 = vmatprep.subr.mxu1 %v7725_v31 }
 0xe46   :  { %4147 = vmatpush1.msra.mxu0 %v7278_v43  ;;  %5338 = vmatpush3.msra.mxu1 %v7280_v26 }
 0xe47   :  { %4148 = vmatprep.subr.mxu0 %v7284_v61  ;;  %5339 = vmatprep.subr.mxu1 %v7725_v31 }
 0xe48   :  { %4149 = vmatpush1.msra.mxu0 %v7288_v54  ;;  %5340 = vmatpush3.msra.mxu1 %v7290_v56 }
 0xe49   :  { %4150 = vmatprep.subr.mxu0 %v7294_v58  ;;  %5341 = vmatprep.subr.mxu1 %v7725_v31 }
 0xe4a   :  { %4151 = vmatpush1.msra.mxu0 %v7298_v59  ;;  %5342 = vmatpush3.msra.mxu1 %v7838_v14 }
 0xe4b   :  { %4152 = vmatprep.subr.mxu0 %v7304_v62  ;;  %5343 = vmatprep.subr.mxu1 %v7725_v31 }
 0xe4c   :  { %4153 = vmatpush1.msra.mxu0 %v7308_v1  ;;  %5344 = vmatpush3.msra.mxu1 %v7839_v35  ;;  %v7866_v1 = vld [vmem:[#allocation46_spill] sm:$0xff] }
 0xe4d   :  { %4154 = vmatprep.subr.mxu0 %v7857_v24  ;;  %5345 = vmatprep.subr.mxu1 %v7725_v31  ;;  %v2401_v22 = vadd.f32 %v7866_v1, %v7853_v4 }
 0xe4e   :  { %4155 = vmatpush1.msra.mxu0 %v7858_v13  ;;  %5346 = vmatpush3.msra.mxu1 %v7859_v20 }
 0xe4f   :  { %4156 = vmatprep.subr.mxu0 %v7860_v23  ;;  %5347 = vmatprep.subr.mxu1 %v7725_v31 }
 0xe50   :  { %4157 = vmatpush1.msra.mxu0 %v7861_v11  ;;  %4190 = vmatprep.mubr.f32.mxu0 %v7725_v31 }
 0xe51   :  { %5348 = vmatpush3.msra.mxu1 %v7862_v39  ;;  %5349 = vmatprep.mubr.msk.f32.mxu1 %vm5706_vm0, %v7725_v31 }
 0xef1   :  { %v3973_v40 = vpop.f32.mrf.mxu0  ;;  %v4044_v53 = vpop.f32.mrf.mxu1 }
 0xef2   :  { %v4052_v63 = vadd.f32 %v3973_v40, %v2395_v45  ;;  %v4051_v49 = vadd.f32 %v7518_v2, %v4044_v53 }
 0xef3   :  { %v5316_v55 = vpop.f32.mrf.mxu1  ;;  %v3975_v37 = vpop.f32.mrf.mxu0 }
 0xef4   :  { %v4376_v12 = vmul.f32 -1.442695, %v4052_v63  ;;  %v4059_v46 = vadd.f32 %v3975_v37, %v2397_v38 }
 0xef6   :  { %5511 = vpow2.f32 %v4376_v12  ;;  %v4377_v10 = vmul.f32 -1.442695, %v4059_v46 }
 0xef8   :  { %5513 = vpow2.f32 %v4377_v10 }
 0xf03   :  { %v5512_v25 = vpop.eup %5511 }
 0xf04   :  { %v4056_v41 = vadd.f32 1.0, %v5512_v25 }
 0xf05   :  { %v5514_v31 = vpop.eup %5513 }
 0xf06   :  { %5515 = vrcp.f32 %v4056_v41  ;;  %v4063_v51 = vadd.f32 1.0, %v5514_v31 }
 0xf08   :  { %5517 = vrcp.f32 %v4063_v51 }
 0xf13   :  { %v5516_v16 = vpop.eup %5515 }
 0xf14   :  { %v4066_v44 = vmul.f32 %v5516_v16, %v4051_v49 }
 0xf15   :  { %v5518_v43 = vpop.eup %5517 }
 0xf16   :  { %v4067_v47 = vadd.f32 %v4066_v44, %v2502_v57  ;;  %v4069_v26 = vsub.f32 1.0, %v5518_v43  ;;  %v4071_v56 = vmul.f32 %v5518_v43, %v7527_v18 }
 0xf18   :  { %5519 = vtanh.f32 %v4067_v47 }
 0xf25   :  { %v5520_v61 = vpop.eup %5519 }
 0xf26   :  { %v4070_v54 = vmul.f32 %v5520_v61, %v4069_v26 }
 0xf28   :  { %v4072_v58 = vadd.f32 %v4071_v56, %v4070_v54 }
 0xf2a   :  { %v4073_v59 = vsel %vm4359_vm7, %v4072_v58, %v7527_v18  ;;  %v4075_v62 = vsel %vm4359_vm7, %v4072_v58, 0.0 }
 0xf2b   :  { %4076 = vst [vmem:[#allocation13 + $0x30] sm:$0xff] %v4075_v62  ;;  %4191 = vmatmul.mubr.f32.vlgmr.msra.gmra.mxu0 %v4073_v59  ;;  %5350 = vmatmul.mubr.f32.vlgmr.msra.gmra.mxu1 %v4073_v59 }
 0xfeb   :  { %v4192_v34 = vpop.f32.mrf.mxu0  ;;  %v4263_v60 = vpop.f32.mrf.mxu1 }
 0xfec   :  { %v4271_v14 = vadd.f32 %v4192_v34, %v2401_v22  ;;  %v4270_v4 = vadd.f32 %v7518_v2, %v4263_v60 }
 0xfed   :  { %v5351_v35 = vpop.f32.mrf.mxu1  ;;  %v4194_v52 = vpop.f32.mrf.mxu0 }
 0xfee   :  { %v4378_v3 = vmul.f32 -1.442695, %v4271_v14  ;;  %v4278_v29 = vadd.f32 %v4194_v52, %v2403_v30 }
 0xff0   :  { %5521 = vpow2.f32 %v4378_v3  ;;  %v4379_v32 = vmul.f32 -1.442695, %v4278_v29 }
 0xff2   :  { %5523 = vpow2.f32 %v4379_v32 }
 0xffd   :  { %v5522_v33 = vpop.eup %5521 }
 0xffe   :  { %v4275_v36 = vadd.f32 1.0, %v5522_v33 }
 0xfff   :  { %v5524_v21 = vpop.eup %5523 }
0x1000   :  { %5525 = vrcp.f32 %v4275_v36  ;;  %v4282_v0 = vadd.f32 1.0, %v5524_v21 }
0x1002   :  { %5527 = vrcp.f32 %v4282_v0 }
0x100d   :  { %v5526_v8 = vpop.eup %5525 }
0x100e   :  { %v4285_v19 = vmul.f32 %v5526_v8, %v4270_v4 }
0x100f   :  { %v5528_v9 = vpop.eup %5527 }
0x1010   :  { %v4286_v42 = vadd.f32 %v4285_v19, %v2507_v7  ;;  %v4288_v18 = vsub.f32 1.0, %v5528_v9  ;;  %v4290_v13 = vmul.f32 %v5528_v9, %v4073_v59 }
0x1012   :  { %5529 = vtanh.f32 %v4286_v42 }
0x101f   :  { %v5530_v5 = vpop.eup %5529 }
0x1020   :  { %v4289_v24 = vmul.f32 %v5530_v5, %v4288_v18 }
0x1022   :  { %v4291_v20 = vadd.f32 %v4290_v13, %v4289_v24 }
0x1024   :  { %v4294_v2 = vsel %vm4362_vm8, %v4291_v20, 0.0  ;;  %v4292_v50 = vsel %vm4362_vm8, %v4291_v20, %v4073_v59 }
0x1025   :  { %4295 = vst [vmem:[#allocation13 + $0x38] sm:$0xff] %v4294_v2  ;;  %4302 = vst [vmem:[#allocation14 + $0x8] sm:$0xff] %v4292_v50 }
0x1026   :  { %5652 = shalt.err (!%p5649_p1)
}
0x1027   :  { %4314 = dma.vmem_to_hbm [thread:$0]  %s4309_s27, 1024, %s7640_s6, [#allocation6], %s5698_s17, %s5698_s17, %s5699_s18  }
0x1028   :  { %s5661_s14 = scalar_lea.vmem %s4321_s10, 256  ;;  %p5666_p3 = scmp.lt.s32.totalorder %s4321_s10, %s4321_s10 }
0x1029   :  { %p5662_p2 = scmp.ne.s32.totalorder %s4321_s10, %s5661_s14  ;;  %p5667_p4 = scmp.lt.s32.totalorder %s5661_s14, %s5661_s14 }
0x102b   :  { %p5668_p5 = por %p5667_p4, %p5666_p3 }
0x102d   :  { %p5669_p6 = pnand %p5668_p5, %p5662_p2 }
0x102f   :  { %5672 = shalt.err (!%p5669_p6)
}
0x1030   :  { %4326 = dma.vmem_to_hbm [thread:$0]  %s4321_s10, 256, %s7641_s7, [#allocation15], %s5698_s17, %s5698_s17, %s5699_s18  }
0x1031   :  { %5687 = dma.done.wait [#allocation6], 1024  }
0x1032   :  { %5688 = vsyncadd [#allocation6], 4294966272 }
0x1033   :  { %5689 = dma.done.wait [#allocation15], 256  }
0x1034   :  { %5690 = vsyncadd [#allocation15], 4294967040 }
0x1035   :  { %4333 = vsyncpa [#allocation5], 1 }
0x1036   :  { %4334 = vsyncpa [#allocation8], 1 }
0x1037   :  { %4335 = vsyncpa [#allocation11], 1 }
0x1038   :  { %4336 = vsyncpa [#allocation6], 1 }
0x1039   :  { %4337 = vsyncpa [#allocation15], 1 }

</bundles_post_ra>
